<compile_context>
chip_gen: v7x
topology: tpu7x:2x2x1
jax: 0.10.0
libtpu: 0.0.40
codegen_flags: <defaults>
</compile_context>

<pallas_src>
import numpy as np

import jax
import jax.numpy as jnp
from jax.experimental import pallas as pl
from jax.experimental.pallas import tpu as pltpu


def make_gin_kernel(nj, tk, resident_x):
    def gin_kernel(counts_ref, kidx_ref, eps_ref, adj_ref, x_ref, xs_ref,
                   w_ref, b_ref, o_ref, acc_ref):
        # counts_ref: SMEM (ni,)      int32  #nonzero adjacency k-blocks per row tile
        # kidx_ref  : SMEM (ni*nj,)   int32  compacted k-block indices (flattened 1-D)
        # eps_ref   : SMEM (1,)       f32    trainable epsilon
        # adj_ref   : VMEM (tm, tk)   int8   adjacency tile (0/1)
        # x_ref     : VMEM (N,F)|(tk,F) bf16 features for aggregation
        # xs_ref    : VMEM (tm, F)    f32    self-term feature rows of this tile
        # w_ref     : VMEM (F, H)     bf16   apply_func (Linear) weight
        # b_ref     : VMEM (1, H)     f32    apply_func (Linear) bias
        # o_ref     : VMEM (tm, H)    f32    output row tile (resident across j)
        # acc_ref   : VMEM (tm, F)    f32    aggregation accumulator scratch
        i = pl.program_id(0)
        j = pl.program_id(1)

        @pl.when(j == 0)
        def _init():
            acc_ref[...] = jnp.zeros_like(acc_ref)

        # Aggregation over compacted nonzero adjacency blocks only; padded
        # trailing grid steps (j >= counts[i]) do no work (and re-DMA nothing,
        # since their block index repeats the last real one).
        @pl.when(j < counts_ref[i])
        def _accumulate():
            a = adj_ref[...].astype(jnp.bfloat16)   # int8 -> bf16 upcast on VPU
            if resident_x:
                kblk = kidx_ref[i * nj + j]
                off = pl.multiple_of(kblk * tk, tk)
                xk = x_ref[pl.ds(off, tk), :]       # slice of resident features
            else:
                xk = x_ref[...]                     # streamed (tk, F) tile
            acc_ref[...] += jnp.dot(a, xk, preferred_element_type=jnp.float32)

        # Finalize once per row tile: self term, apply_func matmul, bias.
        @pl.when(j == nj - 1)
        def _finalize():
            scale = 1.0 + eps_ref[0]
            h = scale * xs_ref[...] + acc_ref[...]
            out = jnp.dot(h.astype(jnp.bfloat16), w_ref[...],
                          preferred_element_type=jnp.float32) + b_ref[...]
            o_ref[...] = out.astype(o_ref.dtype)

    return gin_kernel


def gin_layer(adj, x, eps, w, b, *, tm=512, tk=512, resident_x=None):
    N, F = x.shape
    H = w.shape[1]
    tm = min(tm, N)
    tk = min(tk, N)
    assert N % tm == 0 and N % tk == 0, "N must be divisible by tm and tk"
    assert F % 128 == 0 and H % 128 == 0, "F and H must be lane-aligned (128)"
    assert tm % 32 == 0 and tk % 128 == 0, "int8 tiles need tm%32==0, tk%128==0"

    ni, nk = N // tm, N // tk

    # ---- host-side block compaction: skip both DMA and MXU of all-zero
    # adjacency (tm, tk) blocks.  `any` (not sum>0) so weighted/signed edges
    # would still be detected correctly.
    adj_np = np.asarray(adj)
    blk_nnz = adj_np.reshape(ni, tm, nk, tk).any(axis=(1, 3))          # (ni, nk)
    counts_np = blk_nnz.sum(axis=1).astype(np.int32)                   # (ni,)
    nj = max(int(counts_np.max()), 1)
    kidx_np = np.zeros((ni, nj), dtype=np.int32)
    for r in range(ni):
        ks = np.flatnonzero(blk_nnz[r]).astype(np.int32)
        if ks.size:
            kidx_np[r, :ks.size] = ks
            kidx_np[r, ks.size:] = ks[-1]   # pad with last valid block index:
                                            # identical consecutive indices => no re-DMA
    counts = jnp.asarray(counts_np)
    kidx = jnp.asarray(kidx_np.reshape(-1))   # 1-D: tiny next-pow2 SMEM padding

    # int8 adjacency is lossless for a 0/1 graph: 1 byte/entry on the dominant
    # N^2 HBM stream.  Features bf16 for the aggregation matmul (f32 accum);
    # self term / bias stay f32.  W pre-cast to bf16 (native MXU datapath).
    adj_i8 = adj.astype(jnp.int8)
    x_bf16 = x.astype(jnp.bfloat16)
    w_bf16 = w.astype(jnp.bfloat16)

    if resident_x is None:
        # Keep the whole bf16 feature matrix resident in VMEM (one HBM read
        # total) when its double-buffered footprint is modest (fits v7x too).
        resident_x = (2 * N * F * 2) <= (16 << 20)

    if resident_x:
        x_spec = pl.BlockSpec((N, F), lambda i, j, cnt, kix: (0, 0))
    else:
        x_spec = pl.BlockSpec((tk, F),
                              lambda i, j, cnt, kix: (kix[i * nj + j], 0))

    grid_spec = pltpu.PrefetchScalarGridSpec(
        num_scalar_prefetch=2,                 # counts, kidx
        grid=(ni, nj),                         # rows parallel, reduction last
        in_specs=[
            pl.BlockSpec(memory_space=pltpu.MemorySpace.SMEM),           # eps (1,)
            pl.BlockSpec((tm, tk),
                         lambda i, j, cnt, kix: (i, kix[i * nj + j])),   # adj (int8)
            x_spec,                                                      # x (agg, bf16)
            pl.BlockSpec((tm, F), lambda i, j, cnt, kix: (i, 0)),        # x (self, f32)
            pl.BlockSpec((F, H), lambda i, j, cnt, kix: (0, 0)),         # W (bf16)
            pl.BlockSpec((1, H), lambda i, j, cnt, kix: (0, 0)),         # bias (f32)
        ],
        out_specs=pl.BlockSpec((tm, H), lambda i, j, cnt, kix: (i, 0)),
        scratch_shapes=[pltpu.VMEM((tm, F), jnp.float32)],               # accumulator
    )

    return pl.pallas_call(
        make_gin_kernel(nj, tk, resident_x),
        out_shape=jax.ShapeDtypeStruct((N, H), jnp.float32),
        grid_spec=grid_spec,
        compiler_params=pltpu.CompilerParams(
            dimension_semantics=("parallel", "arbitrary"),
            # Sized for 512-1024 tiles + resident features; stays under v7x's
            # 64 MiB physical VMEM and well under v5e/v6e's 128 MiB.
            vmem_limit_bytes=48 * 1024 * 1024,
        ),
    )(counts, kidx, eps, adj_i8, x_bf16, x, w_bf16, b)


def gin_reference(adj, x, eps, w, b):
    out = (1.0 + eps[0]) * x + adj @ x
    return out @ w + b


if __name__ == "__main__":
    key = jax.random.PRNGKey(0)
    k_adj, k_x, k_w, k_b = jax.random.split(key, 4)

    N, F, H = 1024, 128, 128   # nodes, in-features, out-features

    # Deterministic "graph": random binary adjacency, with one all-zero
    # (row-tile 0, col-tile 1) 512x512 block so the compacted block-skip path
    # (including padded grid steps) is exercised.
    adj = jax.random.bernoulli(k_adj, p=0.05, shape=(N, N)).astype(jnp.float32)
    adj = adj.at[: N // 2, N // 2:].set(0.0)

    x = jax.random.normal(k_x, (N, F), dtype=jnp.float32)

    # GINLayer params: eps (trainable scalar), apply_func = Linear(F, H).
    eps = jnp.array([0.25], dtype=jnp.float32)
    w = jax.random.normal(k_w, (F, H), dtype=jnp.float32) * 0.05
    b = jax.random.normal(k_b, (1, H), dtype=jnp.float32) * 0.05

    ref = gin_reference(adj, x, eps, w, b)

    # Exercise both feature paths: resident-in-VMEM and streamed-per-k-block.
    for resident in (True, False):
        out = gin_layer(adj, x, eps, w, b, tm=512, tk=512, resident_x=resident)
        out = jax.block_until_ready(out)
        assert out.shape == (N, H)
        max_err = float(jnp.max(jnp.abs(out - ref)))
        # Tolerance reflects bf16 features in the aggregation and bf16 h/W in
        # the finalize matmul (accumulation is f32 throughout).
        assert jnp.allclose(out, ref, atol=1e-1, rtol=2e-2), (resident, max_err)

    print("KERNEL_OK")
</pallas_src>

<mosaic_0001>
module attributes {stable_mosaic.version = 11 : i64} {
  func.func @gin_kernel(%arg0: i32, %arg1: i32, %arg2: memref<2xi32, #tpu.memory_space<smem>>, %arg3: memref<4xi32, #tpu.memory_space<smem>>, %arg4: memref<1xf32, #tpu.memory_space<smem>>, %arg5: memref<512x512xi8, #tpu.memory_space<vmem>>, %arg6: memref<1024x128xbf16, #tpu.memory_space<vmem>>, %arg7: memref<512x128xf32, #tpu.memory_space<vmem>>, %arg8: memref<128x128xbf16, #tpu.memory_space<vmem>>, %arg9: memref<1x128xf32, #tpu.memory_space<vmem>>, %arg10: memref<512x128xf32, #tpu.memory_space<vmem>>, %arg11: memref<512x128xf32, #tpu.memory_space<vmem>>) attributes {dimension_semantics = [#tpu.dimension_semantics<parallel>, #tpu.dimension_semantics<arbitrary>], iteration_bounds = array<i64: 2, 2>, scalar_prefetch = 2 : i64, scratch_operands = 1 : i64, tpu.core_type = #tpu.core_type<tc>, window_params = [{transform_indices = @transform_0, window_bounds = array<i64: 1>}, {transform_indices = @transform_1, window_bounds = array<i64: 512, 512>}, {pipeline_mode = #tpu.pipeline_mode<synchronous>, transform_indices = @transform_2, window_bounds = array<i64: 1024, 128>}, {transform_indices = @transform_3, window_bounds = array<i64: 512, 128>}, {pipeline_mode = #tpu.pipeline_mode<synchronous>, transform_indices = @transform_4, window_bounds = array<i64: 128, 128>}, {pipeline_mode = #tpu.pipeline_mode<synchronous>, transform_indices = @transform_5, window_bounds = array<i64: 1, 128>}, {transform_indices = @transform_6, window_bounds = array<i64: 512, 128>}]} {
    %c0_i32 = arith.constant 0 : i32
    %0 = arith.cmpi eq, %arg1, %c0_i32 : i32
    %1 = arith.extui %0 : i1 to i32
    %c0_i32_0 = arith.constant 0 : i32
    %2 = arith.cmpi ne, %1, %c0_i32_0 : i32
    scf.if %2 {
      %cst = arith.constant 0.000000e+00 : f32
      %11 = vector.broadcast %cst : f32 to vector<512x128xf32>
      %c0 = arith.constant 0 : index
      %c0_3 = arith.constant 0 : index
      %12 = vector.load %arg11[%c0, %c0_3] : memref<512x128xf32, #tpu.memory_space<vmem>>, vector<512x128xf32>
      tpu.vector_store %arg11[%c0, %c0_3], %11 {strides = array<i32>} : memref<512x128xf32, #tpu.memory_space<vmem>>, vector<512x128xf32>,
    } else {
    }
    %3 = arith.index_cast %arg0 : i32 to index
    %4 = memref.load %arg2[%3] : memref<2xi32, #tpu.memory_space<smem>>
    %5 = arith.cmpi slt, %arg1, %4 : i32
    %6 = arith.extui %5 : i1 to i32
    %c0_i32_1 = arith.constant 0 : i32
    %7 = arith.cmpi ne, %6, %c0_i32_1 : i32
    scf.if %7 {
      %c0 = arith.constant 0 : index
      %c0_3 = arith.constant 0 : index
      %11 = vector.load %arg5[%c0, %c0_3] : memref<512x512xi8, #tpu.memory_space<vmem>>, vector<512x512xi8>
      %12 = arith.sitofp %11 : vector<512x512xi8> to vector<512x512xbf16>
      %c2_i32 = arith.constant 2 : i32
      %13 = arith.muli %arg0, %c2_i32 : i32
      %14 = arith.addi %13, %arg1 : i32
      %15 = arith.index_cast %14 : i32 to index
      %16 = memref.load %arg3[%15] : memref<4xi32, #tpu.memory_space<smem>>
      %c512_i32 = arith.constant 512 : i32
      %17 = arith.muli %16, %c512_i32 : i32
      %18 = tpu.assume_multiple %17, 512 : i32
      %19 = arith.index_cast %18 : i32 to index
      %c0_4 = arith.constant 0 : index
      %20 = vector.load %arg6[%19, %c0_4] : memref<1024x128xbf16, #tpu.memory_space<vmem>>, vector<512x128xbf16>
      %c0_5 = arith.constant 0 : index
      %c0_6 = arith.constant 0 : index
      %21 = vector.load %arg11[%c0_5, %c0_6] : memref<512x128xf32, #tpu.memory_space<vmem>>, vector<512x128xf32>
      %cst = arith.constant dense<0.000000e+00> : vector<512x128xf32>
      %22 = tpu.matmul %12, %20, %cst {dimension_numbers = #tpu.dot_dimension_numbers<[1], [0], [0], [1], [0, 0, 1, 1], [], []>} : vector<512x512xbf16>, vector<512x128xbf16>, vector<512x128xf32> -> vector<512x128xf32>
      %23 = arith.addf %21, %22 : vector<512x128xf32>
      %c0_7 = arith.constant 0 : index
      %c0_8 = arith.constant 0 : index
      %24 = vector.load %arg11[%c0_7, %c0_8] : memref<512x128xf32, #tpu.memory_space<vmem>>, vector<512x128xf32>
      tpu.vector_store %arg11[%c0_7, %c0_8], %23 {strides = array<i32>} : memref<512x128xf32, #tpu.memory_space<vmem>>, vector<512x128xf32>,
    } else {
    }
    %c1_i32 = arith.constant 1 : i32
    %8 = arith.cmpi eq, %arg1, %c1_i32 : i32
    %9 = arith.extui %8 : i1 to i32
    %c0_i32_2 = arith.constant 0 : i32
    %10 = arith.cmpi ne, %9, %c0_i32_2 : i32
    scf.if %10 {
      %c0 = arith.constant 0 : index
      %11 = memref.load %arg4[%c0] : memref<1xf32, #tpu.memory_space<smem>>
      %cst = arith.constant 1.000000e+00 : f32
      %12 = arith.addf %cst, %11 : f32
      %c0_3 = arith.constant 0 : index
      %c0_4 = arith.constant 0 : index
      %13 = vector.load %arg7[%c0_3, %c0_4] : memref<512x128xf32, #tpu.memory_space<vmem>>, vector<512x128xf32>
      %14 = vector.broadcast %12 : f32 to vector<512x128xf32>
      %15 = arith.mulf %14, %13 : vector<512x128xf32>
      %c0_5 = arith.constant 0 : index
      %c0_6 = arith.constant 0 : index
      %16 = vector.load %arg11[%c0_5, %c0_6] : memref<512x128xf32, #tpu.memory_space<vmem>>, vector<512x128xf32>
      %17 = arith.addf %15, %16 : vector<512x128xf32>
      %18 = arith.truncf %17 : vector<512x128xf32> to vector<512x128xbf16>
      %c0_7 = arith.constant 0 : index
      %c0_8 = arith.constant 0 : index
      %19 = vector.load %arg8[%c0_7, %c0_8] : memref<128x128xbf16, #tpu.memory_space<vmem>>, vector<128x128xbf16>
      %cst_9 = arith.constant dense<0.000000e+00> : vector<512x128xf32>
      %20 = tpu.matmul %18, %19, %cst_9 {dimension_numbers = #tpu.dot_dimension_numbers<[1], [0], [0], [1], [0, 0, 1, 1], [], []>} : vector<512x128xbf16>, vector<128x128xbf16>, vector<512x128xf32> -> vector<512x128xf32>
      %c0_10 = arith.constant 0 : index
      %c0_11 = arith.constant 0 : index
      %21 = vector.load %arg9[%c0_10, %c0_11] : memref<1x128xf32, #tpu.memory_space<vmem>>, vector<1x128xf32>
      %22 = vector.broadcast %21 : vector<1x128xf32> to vector<512x128xf32>
      %23 = arith.addf %20, %22 : vector<512x128xf32>
      %c0_12 = arith.constant 0 : index
      %c0_13 = arith.constant 0 : index
      %24 = vector.load %arg10[%c0_12, %c0_13] : memref<512x128xf32, #tpu.memory_space<vmem>>, vector<512x128xf32>
      tpu.vector_store %arg10[%c0_12, %c0_13], %23 {strides = array<i32>} : memref<512x128xf32, #tpu.memory_space<vmem>>, vector<512x128xf32>,
    } else {
    }
    return
  }
  func.func @transform_0(%arg0: i32, %arg1: i32, %arg2: memref<2xi32, #tpu.memory_space<smem>>, %arg3: memref<4xi32, #tpu.memory_space<smem>>) -> i32 {
    %c0_i32 = arith.constant 0 : i32
    %c0_i32_0 = arith.constant 0 : i32
    return %c0_i32 : i32
  }
  func.func @transform_1(%arg0: i32, %arg1: i32, %arg2: memref<2xi32, #tpu.memory_space<smem>>, %arg3: memref<4xi32, #tpu.memory_space<smem>>) -> (i32, i32) {
    %c2_i32 = arith.constant 2 : i32
    %0 = arith.muli %arg0, %c2_i32 : i32
    %1 = arith.addi %0, %arg1 : i32
    %2 = arith.index_cast %1 : i32 to index
    %3 = memref.load %arg3[%2] : memref<4xi32, #tpu.memory_space<smem>>
    %c0_i32 = arith.constant 0 : i32
    return %arg0, %3 : i32, i32
  }
  func.func @transform_2(%arg0: i32, %arg1: i32, %arg2: memref<2xi32, #tpu.memory_space<smem>>, %arg3: memref<4xi32, #tpu.memory_space<smem>>) -> (i32, i32) {
    %c0_i32 = arith.constant 0 : i32
    %c0_i32_0 = arith.constant 0 : i32
    %c0_i32_1 = arith.constant 0 : i32
    return %c0_i32, %c0_i32_0 : i32, i32
  }
  func.func @transform_3(%arg0: i32, %arg1: i32, %arg2: memref<2xi32, #tpu.memory_space<smem>>, %arg3: memref<4xi32, #tpu.memory_space<smem>>) -> (i32, i32) {
    %c0_i32 = arith.constant 0 : i32
    %c0_i32_0 = arith.constant 0 : i32
    return %arg0, %c0_i32 : i32, i32
  }
  func.func @transform_4(%arg0: i32, %arg1: i32, %arg2: memref<2xi32, #tpu.memory_space<smem>>, %arg3: memref<4xi32, #tpu.memory_space<smem>>) -> (i32, i32) {
    %c0_i32 = arith.constant 0 : i32
    %c0_i32_0 = arith.constant 0 : i32
    %c0_i32_1 = arith.constant 0 : i32
    return %c0_i32, %c0_i32_0 : i32, i32
  }
  func.func @transform_5(%arg0: i32, %arg1: i32, %arg2: memref<2xi32, #tpu.memory_space<smem>>, %arg3: memref<4xi32, #tpu.memory_space<smem>>) -> (i32, i32) {
    %c0_i32 = arith.constant 0 : i32
    %c0_i32_0 = arith.constant 0 : i32
    %c0_i32_1 = arith.constant 0 : i32
    return %c0_i32, %c0_i32_0 : i32, i32
  }
  func.func @transform_6(%arg0: i32, %arg1: i32, %arg2: memref<2xi32, #tpu.memory_space<smem>>, %arg3: memref<4xi32, #tpu.memory_space<smem>>) -> (i32, i32) {
    %c0_i32 = arith.constant 0 : i32
    %c0_i32_0 = arith.constant 0 : i32
    return %arg0, %c0_i32 : i32, i32
  }
}

</mosaic_0001>

<bundles_post_ra>
// kernel: tpu_custom_call.1
= control target key start
LH: loop header
LB: loop body
LE: loop exit
PB: predicated region body
PF: predicated region fallthrough
CT: control target
= control target key end

     0   :  { %s4168_s0 = inlined_call_operand.vmem [shape: s32[2], index: 0, kind: input, shape index: {}]   ;;  %s4169_s3 = inlined_call_operand.hbm [shape: s8[1024,1024], index: 3, kind: input, shape index: {}]   ;;  %s4170_s4 = inlined_call_operand.hbm [shape: bf16[1024,128], index: 4, kind: input, shape index: {}]   ;;  %s4171_s5 = inlined_call_operand.hbm [shape: f32[1024,128], index: 5, kind: input, shape index: {}]   ;;  %s4172_s6 = inlined_call_operand.hbm [shape: bf16[128,128], index: 6, kind: input, shape index: {}]   ;;  %s4173_s7 = inlined_call_operand.vmem [shape: f32[1,128], index: 7, kind: input, shape index: {}]   ;;  %s4174_s8 = inlined_call_operand.hbm [shape: f32[1024,128], index: 8, kind: output, shape index: {}]   ;;  %s4175_s1 = inlined_call_operand.vmem [shape: s32[4], index: 1, kind: input, shape index: {}]   ;;  %s4176_s2 = inlined_call_operand.<no memory space> [shape: f32[1], index: 2, kind: input, shape index: {}]  }
   0x1   :  { %4195 = sst [smem:[#allocation31_spill]] %s4170_s4  ;;  %s13_s29 = sshll.u32 %s4168_s0, 4  ;;  %s14_s29 = int_to_ptr.vmem [resolvable:$true] %s13_s29 }
   0x2   :  { %4196 = sst [smem:[#allocation32_spill]] %s4173_s7  ;;  %s17_s10 = sshll.u32 %s4175_s1, 4  ;;  %s18_s10 = int_to_ptr.vmem [resolvable:$true] %s17_s10 }
   0x3   :  { %4197 = sst [smem:[#allocation33_spill]] %s4174_s8  ;;  %s2942_s11 = scalar_lea.vmem %s14_s29, 16 }
   0x4   :  { %p2943_p0 = scmp.ne.s32.totalorder %s14_s29, %s2942_s11  ;;  %p2947_p1 = scmp.lt.s32.totalorder %s14_s29, %s14_s29 }
   0x5   :  { %p2948_p2 = scmp.lt.s32.totalorder %s2942_s11, %s2942_s11 }
   0x7   :  { %p2949_p3 = por %p2948_p2, %p2947_p1 }
   0x9   :  { %p2950_p4 = pnand %p2949_p3, %p2943_p0 }
   0xb   :  { %2953 = shalt.err (!%p2950_p4)  }
   0xc   :  { %s3220_s12 = smov [#allocation4]   ;;  %s2954_s13 = scalar_lea.vmem %s18_s10, 16 }
   0xd   :  { %16 = dma.vmem_to_smem %s14_s29, 16, %s3220_s12, [#allocation3] }
   0xe   :  { %p2955_p5 = scmp.ne.s32.totalorder %s18_s10, %s2954_s13  ;;  %p2959_p6 = scmp.lt.s32.totalorder %s18_s10, %s18_s10 }
   0xf   :  { %p2960_p7 = scmp.lt.s32.totalorder %s2954_s13, %s2954_s13 }
  0x11   :  { %p2961_p8 = por %p2960_p7, %p2959_p6 }
  0x13   :  { %p2962_p9 = pnand %p2961_p8, %p2955_p5 }
  0x15   :  { %2965 = shalt.err (!%p2962_p9)  }
  0x16   :  { %s3221_s0 = smov [#allocation5]   ;;  %21 = sst [smem:[#allocation6]] %s4176_s2 }
  0x17   :  { %20 = dma.vmem_to_smem %s18_s10, 16, %s3221_s0, [#allocation3] }
  0x18   :  { %3154 = dma.done.wait [#allocation3], 32 }
  0x19   :  { %3155 = vsyncadd [#allocation3], 4294967264 }
  0x1a   :  { %23 = sfence }
  0x1b   :  { %24 = vsyncpa [#allocation8], 0 }
  0x1c   :  { %26 = vsyncpa [#allocation8 + $0x1], 0 }
  0x1d   :  { %27 = vsyncpa [#allocation11], 0 }
  0x1e   :  { %28 = vsyncpa [#allocation9], 0 }
  0x1f   :  { %30 = vsyncpa [#allocation9 + $0x1], 0  ;;  %s3292_s15 = smov 0   ;;  %s3294_s16 = smov 0  }
  0x20   :  { %s3296_s17 = smov 0   ;;  %s3298_s18 = smov 0  }
  0x21   :  { %s3300_s19 = smov 0   ;;  %s3302_s20 = smov 0  }
  0x22   :  { %s3304_s2 = smov 0   ;;  %s3306_s21 = smov 0  }
  0x23   :  { %s3308_s22 = smov 0   ;;  %s3310_s23 = smov 0  }
  0x24   :  { %s3312_s24 = smov 0  }
  0x25 LB: > { %4198 = sst [smem:[#allocation23_spill]] %s3178_s15  ;;  %s3346_s25 = sadd.s32 4294967295, %s3218_s24   ;;  %s3218_s24 = sphi %s3312_s24, %s36_s24   ;;  %s3214_s23 = sphi %s3310_s23, %s4259_s23   ;;  %s3210_s22 = sphi %s3308_s22, %s4250_s22   ;;  %s3206_s21 = sphi %s3306_s21, %s4258_s21   ;;  %s3202_s2 = sphi %s3304_s2, %s4249_s2   ;;  %s3198_s20 = sphi %s3302_s20, %s4257_s20   ;;  %s3194_s19 = sphi %s3300_s19, %s4256_s19   ;;  %s3190_s18 = sphi %s3298_s18, %s4255_s18   ;;  %s3186_s17 = sphi %s3296_s17, %s4254_s17   ;;  %s3182_s16 = sphi %s3294_s16, %s4253_s16   ;;  %s3178_s15 = sphi %s3292_s15, %s4252_s15  }
  0x26   : > { %4199 = sst [smem:[#allocation24_spill]] %s3202_s2  ;;  %s2544_s26 = sadd.s32 4294967294, %s3218_s24  }
  0x27   : > { %4200 = sst [smem:[#allocation25_spill]] %s3206_s21  ;;  %p97_p10 = scmp.ne.s32.totalorder %s3194_s19, %s3190_s18 }
  0x28   : > { %4201 = sst [smem:[#allocation26_spill]] %s3210_s22  ;;  %p4177_p11 = scmp.eq.s32.totalorder %s3346_s25, 0 }
  0x29   : > { %p144_p12 = scmp.ne.s32.totalorder %s3182_s16, %s3178_s15  ;;  %p216_p1 = scmp.eq.s32.totalorder %s2544_s26, 3 }
  0x2a   : > { %p3356_p0 = por %p4177_p11, %p97_p10  ;;  %p2547_p3 = scmp.ge.s32.totalorder %s3218_s24, 1 }
  0x2b   : > { %p3362_p2 = por %p144_p12, %p4177_p11  ;;  %p3367_p4 = por %p216_p1, %p144_p12 }
  0x2c   : > { %s4202_s27 = scalar_select %p3356_p0, 1, 0 }
  0x2d   : > { %s4203_s28 = scalar_select %p3362_p2, 1, 0 }
  0x2e   : > { %s4205_s29 = scalar_select %p3367_p4, 1, 0 }
  0x2f   : > { %4204 = sst [smem:[#allocation27_spill]] %s4203_s28  ;;  %p223_p5 = scmp.lt.s32.totalorder %s3218_s24, 5 }
  0x30   : > { %4206 = sst [smem:[#allocation28_spill]] %s4205_s29  ;;  %s3222_s9 = smov [#allocation10]  }
  0x31   : > { %p3372_p6 = pnand %p2547_p3, %p223_p5  ;;  %s238_s10 = sshll.u32 %s3222_s9, 4  ;;  %s239_s10 = int_to_ptr.vmem [resolvable:$true] %s238_s10 }
  0x32   : > { %s4209_s4 = sld [smem:[#allocation31_spill]] }
  0x33   : > { %s4207_s30 = scalar_select %p3372_p6, 1, 0 }
  0x34   : > { %p2773_p7 = pneg %p3372_p6 }
  0x36   : > { %p3380_p8 = pnand %p2773_p7, %p4177_p11 }
  0x38   : > { %s2966_s0 = scalar_lea.hbm %s4209_s4, 8192  ;;  %p2968_p10 = pneg %p3380_p8 }
  0x39   : > { %p2967_p9 = scmp.ne.s32.totalorder %s4209_s4, %s2966_s0  ;;  %p2973_p3 = scmp.lt.u32.totalorder %s2966_s0, %s4209_s4 }
  0x3b   : > { %p2969_p12 = pnand %p2968_p10, %p2967_p9 }
  0x3d   : > { %p2970_p1 = pneg %p2969_p12 }
  0x3f   : > { %p2975_p5 = pnand %p2973_p3, %p2970_p1 }
  0x41   : > { %2978 = shalt.err (!%p2975_p5)
}
  0x42   : > { %s2979_s9 = scalar_lea.vmem %s239_s10, 8192  ;;  %p2987_p4 = scmp.lt.s32.totalorder %s239_s10, %s239_s10 }
  0x43   : > { %p2980_p7 = scmp.ne.s32.totalorder %s239_s10, %s2979_s9  ;;  %p2988_p2 = scmp.lt.s32.totalorder %s2979_s9, %s2979_s9 }
  0x45   : > { %p2982_p11 = pnand %p2980_p7, %p2968_p10  ;;  %p2989_p0 = por %p2988_p2, %p2987_p4 }
  0x47   : > { %p2983_p13 = pneg %p2982_p11 }
  0x49   : > { %p2990_p6 = pnand %p2989_p0, %p2983_p13 }
  0x4b   : > { %2993 = shalt.err (!%p2990_p6)
}
  0x4c   : > { %s4182_s12 = smov 64   ;;  %s4183_s13 = smov 4  }
  0x4d   : > { %2776 = dma.hbm_to_vmem [thread:$0]  (!%p3380_p8), %s4209_s4, 8192, %s239_s10, [#allocation11], %s4182_s12, %s4182_s12, %s4183_s13  }
  0x4e   : > { %s45_s14 = sadd.s32 1, %s3210_s22  ;;  %s48_s18 = sadd.s32 1, %s3214_s23 }
  0x4f   : > { %p46_p11 = scmp.ge.s32.totalorder %s45_s14, 2  ;;  %s2545_s26 = sshll.u32 %s3214_s23, 1 }
  0x50   : > { %s74_s29 = sadd.s32 %s3210_s22, %s2545_s26  ;;  %p91_p13 = scmp.ne.s32.totalorder %s3198_s20, %s3194_s19 }
  0x51   : > { %s4261_s14 = smov (%p46_p11, %s45_s14), 0  ;;  %s4263_s18 = smov (!%p46_p11, %s48_s18), %s3214_s23 }
  0x52   : > { %4210 = sst [smem:[#allocation29_spill]] %s4261_s14  ;;  %p50_p0 = scmp.ge.s32.totalorder %s4263_s18, 2 }
  0x53   : > { %s75_s0 = sld [smem:[#allocation5 + %s74_s29]]  ;;  %p4192_p2 = scmp.eq.s32.totalorder %s3218_s24, 0 }
  0x54   : > { %p4191_p4 = scmp.lt.s32.totalorder %s3218_s24, 4  ;;  %s4265_s18 = smov (%p50_p0, %s4263_s18), 0 }
  0x55   : > { %4211 = sst [smem:[#allocation30_spill]] %s4265_s18  ;;  %p3425_p6 = por %p4192_p2, %p91_p13 }
  0x56   : > { %s2546_s26 = sshll.u32 %s4265_s18, 1  ;;  %s3433_s12 = ssub.s32 %s3214_s23, %s4265_s18 }
  0x57   : > { %s77_s13 = sadd.s32 %s2546_s26, %s4261_s14  ;;  %s270_s4 = sand.u32 1, %s3198_s20  }
  0x58   : > { %s78_s9 = sld [smem:[#allocation5 + %s77_s13]]  ;;  %s2551_s22 = sshll.u32 %s270_s4, 9 }
  0x59   : > { %p3442_p9 = pnand %p4191_p4, %p3425_p6  ;;  %s4267_s29 = smov (!%p3425_p6, %s74_s29), 0 }
  0x5a   : > { %s2761_s1 = scalar_select %p3425_p6, [#allocation5], [#allocation15] }
  0x5b   : > { %s4213_s8 = scalar_select %p3442_p9, 1, 0 }
  0x5c   : > { %s4269_s1 = smov (!%p4191_p4, %s2761_s1), [#allocation16]  ;;  %s272_s18 = scalar_lea.vmem [#allocation7], %s2551_s22 }
  0x5d   : > { %s285_s13 = sshll.u32 %s272_s18, 4  ;;  %s4271_s29 = smov (!%p4191_p4, %s4267_s29), 0  ;;  %s3453_s13 = int_to_ptr.vmem [resolvable:$true] %s285_s13 }
  0x5e   : > { %s80_s26 = ssub.s32 %s75_s0, %s78_s9  ;;  %s4214_s4 = sadd.s32 1, %s3198_s20 }
  0x5f   : > { %s81_s14 = sor.u32 %s80_s26, %s3433_s12  ;;  %s275_s7 = sld [smem:[%s4269_s1 + %s4271_s29]] }
  0x60   : > { %p82_p12 = scmp.eq.s32.totalorder %s81_s14, 0  ;;  %s3225_s21 = smov [#allocation13]  }
  0x61   : > { %s251_s2 = sshll.u32 %s3225_s21, 4  ;;  %s2994_s9 = scalar_lea.hbm %s4172_s6, 1024  ;;  %s252_s2 = int_to_ptr.vmem [resolvable:$true] %s251_s2 }
  0x62   : > { %s3460_s15 = scalar_select %p82_p12, %s3198_s20, %s4214_s4  }
  0x63   : > { %p2995_p3 = scmp.ne.s32.totalorder %s4172_s6, %s2994_s9  ;;  %p3001_p11 = scmp.lt.u32.totalorder %s2994_s9, %s4172_s6 }
  0x65   : > { %p2997_p5 = pnand %p2995_p3, %p2968_p10 }
  0x67   : > { %p2998_p7 = pneg %p2997_p5 }
  0x69   : > { %p3003_p13 = pnand %p3001_p11, %p2998_p7 }
  0x6b   : > { %3006 = shalt.err (!%p3003_p13)
}
  0x6c   : > { %s3007_s21 = scalar_lea.vmem %s252_s2, 1024  ;;  %p3015_p4 = scmp.lt.s32.totalorder %s252_s2, %s252_s2 }
  0x6d   : > { %p3008_p0 = scmp.ne.s32.totalorder %s252_s2, %s3007_s21  ;;  %p3016_p1 = scmp.lt.s32.totalorder %s3007_s21, %s3007_s21 }
  0x6f   : > { %p3010_p6 = pnand %p3008_p0, %p2968_p10  ;;  %p3017_p2 = por %p3016_p1, %p3015_p4 }
  0x71   : > { %p3011_p12 = pneg %p3010_p6 }
  0x73   : > { %p3018_p9 = pnand %p3017_p2, %p3011_p12 }
  0x75   : > { %3021 = shalt.err (!%p3018_p9)
}
  0x76   : > { %s4215_s28 = smov 4   ;;  %s4216_s29 = smov 64  }
  0x77   : > { %2779 = dma.hbm_to_vmem [thread:$0]  (!%p3380_p8), %s4172_s6, 1024, %s252_s2, [#allocation11], %s4216_s29, %s4216_s29, %s4215_s28  }
  0x78   : > { %s2554_s4 = sshll.u32 %s275_s7, 2  ;;  %s131_s11 = sadd.s32 1, %s3186_s17 }
  0x79   : > { %s4217_s10 = sshll.u32 %s3214_s23, 7  ;;  %p4194_p10 = scmp.ne.s32.totalorder %s3186_s17, %s3182_s16 }
  0x7a   : > { %s282_s9 = sadd.s32 %s4217_s10, %s2554_s4  ;;  %s297_s18 = sand.u32 1, %s3186_s17  }
  0x7b   : > { %s2556_s22 = sshll.u32 %s282_s9, 7  ;;  %p4218_p2 = scmp.eq.s32.totalorder %s3218_s24, 0 }
  0x7c   : > { %s3495_s21 = scalar_lea.hbm %s4169_s3, %s2556_s22  ;;  %s4220_s7 = sand.u32 1, %s3218_s24  }
  0x7d   : > { %p3502_p4 = por %p4194_p10, %p4218_p2  ;;  %s3508_s28 = scalar_lea.sflag [#allocation8], %s4220_s7 }
  0x7e   : > { %s3022_s29 = scalar_lea.hbm %s3495_s21, 8192  ;;  %p4221_p9 = scmp.ne.s32.totalorder %s4213_s8, 0 }
  0x7f   : > { %p3023_p8 = scmp.ne.s32.totalorder %s3495_s21, %s3022_s29  ;;  %s3027_s4 = scalar_lea.hbm %s4169_s3, 32768 }
  0x80   : > { %p3024_p1 = pneg %p4221_p9  ;;  %p3028_p7 = scmp.lt.u32.totalorder %s3495_s21, %s4169_s3 }
  0x81   : > { %p3029_p11 = scmp.lt.u32.totalorder %s3027_s4, %s3022_s29  ;;  %p3031_p0 = scmp.lt.u32.totalorder %s3022_s29, %s3495_s21 }
  0x82   : > { %p3025_p3 = pnand %p3024_p1, %p3023_p8 }
  0x83   : > { %p3030_p13 = por %p3029_p11, %p3028_p7 }
  0x84   : > { %p3026_p5 = pneg %p3025_p3 }
  0x85   : > { %p3032_p6 = por %p3031_p0, %p3030_p13 }
  0x87   : > { %p3033_p12 = pnand %p3032_p6, %p3026_p5 }
  0x89   : > { %3036 = shalt.err (!%p3033_p12)
}
  0x8a   : > { %s3037_s22 = scalar_lea.vmem %s3453_s13, 8192  ;;  %s3226_s14 = smov [#allocation7]  }
  0x8b   : > { %p3038_p2 = scmp.ne.s32.totalorder %s3453_s13, %s3037_s22  ;;  %s3042_s0 = sshll.u32 %s3226_s14, 4  ;;  %s3043_s0 = int_to_ptr.vmem [resolvable:$false] %s3042_s0 }
  0x8c   : > { %s3044_s7 = scalar_lea.vmem %s3043_s0, 16384  ;;  %p3045_p10 = scmp.lt.s32.totalorder %s3453_s13, %s3043_s0 }
  0x8d   : > { %p3040_p8 = pnand %p3038_p2, %p3024_p1  ;;  %p3046_p7 = scmp.lt.s32.totalorder %s3044_s7, %s3037_s22 }
  0x8f   : > { %p3041_p3 = pneg %p3040_p8  ;;  %p3047_p11 = por %p3046_p7, %p3045_p10 }
  0x91   : > { %p3048_p13 = pnand %p3047_p11, %p3041_p3 }
  0x93   : > { %3051 = shalt.err (!%p3048_p13)
}
  0x94   : > { %s3227_s29 = smov 1024   ;;  %s3228_s1 = smov 512  }
  0x95   : > { %s3229_s26 = smov 32   ;;  %p4222_p10 = scmp.eq.s32.totalorder %s3433_s12, 0 }
  0x96   : > { %2785 = dma.hbm_to_vmem [thread:$0]  (!%p4221_p9), %s3495_s21, 8192, %s3453_s13, %s3508_s28, %s3227_s29, %s3228_s1, %s3229_s26  }
  0x97   : > { %s3541_s4 = scalar_select %p4222_p10, %s3186_s17, %s131_s11  }
  0x98   : > { %p4223_p1 = scmp.ne.s32.totalorder %s3186_s17, %s3182_s16  ;;  %p4224_p5 = scmp.eq.s32.totalorder %s3346_s25, 3 }
  0x99   : > { %s2557_s9 = sshll.u32 %s297_s18, 9  ;;  %s2619_s22 = sshll.u32 %s3214_s23, 13 }
  0x9a   : > { %p3548_p0 = por %p4224_p5, %p4223_p1  ;;  %s3558_s7 = scalar_lea.hbm %s4171_s5, %s2619_s22 }
  0x9b   : > { %s299_s8 = scalar_lea.vmem [#allocation12], %s2557_s9  ;;  %p4226_p9 = scmp.lt.s32.totalorder %s3218_s24, 4 }
  0x9c   : > { %s306_s12 = sshll.u32 %s299_s8, 4  ;;  %s3052_s11 = scalar_lea.hbm %s3558_s7, 8192  ;;  %s3560_s12 = int_to_ptr.vmem [resolvable:$true] %s306_s12 }
  0x9d   : > { %p3566_p6 = pnand %p4226_p9, %p3502_p4  ;;  %p3053_p12 = scmp.ne.s32.totalorder %s3558_s7, %s3052_s11 }
  0x9e   : > { %s3057_s29 = scalar_lea.hbm %s4171_s5, 16384  ;;  %p3058_p4 = scmp.lt.u32.totalorder %s3558_s7, %s4171_s5 }
  0x9f   : > { %p3054_p2 = pneg %p3566_p6  ;;  %p3059_p7 = scmp.lt.u32.totalorder %s3057_s29, %s3052_s11 }
  0xa0   : > { %p3061_p13 = scmp.lt.u32.totalorder %s3052_s11, %s3558_s7 }
  0xa1   : > { %p3055_p8 = pnand %p3054_p2, %p3053_p12  ;;  %p3060_p11 = por %p3059_p7, %p3058_p4 }
  0xa3   : > { %p3056_p3 = pneg %p3055_p8  ;;  %p3062_p10 = por %p3061_p13, %p3060_p11 }
  0xa5   : > { %p3063_p1 = pnand %p3062_p10, %p3056_p3 }
  0xa7   : > { %3066 = shalt.err (!%p3063_p1)
}
  0xa8   : > { %s3067_s26 = scalar_lea.vmem %s3560_s12, 8192  ;;  %s3230_s9 = smov [#allocation12]  }
  0xa9   : > { %p3068_p5 = scmp.ne.s32.totalorder %s3560_s12, %s3067_s26  ;;  %s3072_s22 = sshll.u32 %s3230_s9, 4  ;;  %s3073_s22 = int_to_ptr.vmem [resolvable:$false] %s3072_s22 }
  0xaa   : > { %s3074_s14 = scalar_lea.vmem %s3073_s22, 16384  ;;  %p3075_p8 = scmp.lt.s32.totalorder %s3560_s12, %s3073_s22 }
  0xab   : > { %p3070_p9 = pnand %p3068_p5, %p3054_p2  ;;  %p3076_p4 = scmp.lt.s32.totalorder %s3074_s14, %s3067_s26 }
  0xad   : > { %p3071_p12 = pneg %p3070_p9  ;;  %p3077_p7 = por %p3076_p4, %p3075_p8 }
  0xaf   : > { %p3078_p11 = pnand %p3077_p7, %p3071_p12 }
  0xb1   : > { %3081 = shalt.err (!%p3078_p11)
}
  0xb2   : > { %s3231_s0 = smov 128   ;;  %s3232_s8 = smov 8  }
  0xb3   : > { %2788 = dma.hbm_to_vmem [thread:$0]  (!%p3566_p6), %s3558_s7, 8192, %s3560_s12, %s3508_s28, %s3231_s0, %s3231_s0, %s3232_s8  }
  0xb4   : > { %p4228_p2 = scmp.ne.s32.totalorder %s4207_s30, 0 }
  0xb5   : > { %s320_s11 = sand.u32 (!%p4228_p2), 1, %s3346_s25   ;;  %s322_s18 = sand.u32 (!%p4228_p2), 1, %s3194_s19  }
  0xb6   : > { %318 = sbr.rel (%p4228_p2) target bundleno = 1148 (0x47c), region = 44  ;;  %s2561_s21 = sshll.u32 (!%p4228_p2), %s322_s18, 9 }
  0xb7   : > { %s321_s29 = scalar_lea.sflag (!%p4228_p2), [#allocation8], %s320_s11  ;;  %s3600_s2 = scalar_lea.vmem (!%p4228_p2), [#allocation7], %s2561_s21 }
  0xb8   : > { %p4229_p3 = scmp.ne.s32.totalorder (!%p4228_p2), %s4202_s27, 0 }
  0xbd   : > { %3157 = dma.done.wait (%p4229_p3), %s321_s29, 8192  }
  0xbe   : > { %3159 = vsyncadd (%p4229_p3), %s321_s29, 4294959104  ;;  %p4230_p13 = scmp.eq.s32.totalorder %s3346_s25, 0 }
  0xc0   : > { %3161 = dma.done.wait (%p4230_p13), [#allocation11], 8192   ;;  %p4231_p6 = pmov %p4230_p13 }
  0xc1   : > { %s4232_s30 = sld [smem:[#allocation27_spill]]  ;;  %s335_s28 = sand.u32 1, %s3182_s16  }
  0xc2   : > { %3163 = vsyncadd (%p4231_p6), [#allocation11], 4294959104  ;;  %s2563_s7 = sshll.u32 %s335_s28, 9 }
  0xc3   : > { %s3613_s12 = scalar_lea.vmem [#allocation12], %s2563_s7 }
  0xc7   : > { %p4233_p10 = scmp.ne.s32.totalorder %s4232_s30, 0 }
  0xc9   : > { %3165 = dma.done.wait (%p4233_p10), %s321_s29, 8192  }
  0xca   : > { %3167 = vsyncadd (%p4233_p10), %s321_s29, 4294959104  ;;  %p4234_p1 = pmov %p4231_p6 }
  0xcc   : > { %3169 = dma.done.wait (%p4234_p1), [#allocation11], 1024   ;;  %p4235_p5 = pmov %p4234_p1 }
  0xcd   : > { %s3623_s27 = scalar_lea.vmem [#allocation14], %s2563_s7  ;;  %s4236_s13 = sld [smem:[#allocation24_spill]] }
  0xce   : > { %3171 = vsyncadd (%p4235_p5), [#allocation11], 4294966272 }
  0xd3   : > { %p2566_p9 = scmp.ne.s32.totalorder %s4236_s13, 0 }
  0xd4   : > { %v3233_v0 = vmov (!%p2566_p9), 0.0  }
  0xd5   : > { %386 = sbr.rel (%p2566_p9) target bundleno = 245 (0xf5), region = 64  ;;  %387 = vst [vmem:[#allocation2] sm:$0xff] (!%p2566_p9), %v3233_v0  ;;  %388 = vst [vmem:[#allocation2 + $0x8] sm:$0xff] (!%p2566_p9), %v3233_v0 }
  0xd6   : > { %389 = vst [vmem:[#allocation2 + $0x10] sm:$0xff] (!%p2566_p9), %v3233_v0  ;;  %390 = vst [vmem:[#allocation2 + $0x18] sm:$0xff] (!%p2566_p9), %v3233_v0 }
  0xd7   : > { %391 = vst [vmem:[#allocation2 + $0x20] sm:$0xff] (!%p2566_p9), %v3233_v0  ;;  %392 = vst [vmem:[#allocation2 + $0x28] sm:$0xff] (!%p2566_p9), %v3233_v0 }
  0xd8   : > { %393 = vst [vmem:[#allocation2 + $0x30] sm:$0xff] (!%p2566_p9), %v3233_v0  ;;  %394 = vst [vmem:[#allocation2 + $0x38] sm:$0xff] (!%p2566_p9), %v3233_v0 }
  0xd9   : > { %395 = vst [vmem:[#allocation2 + $0x40] sm:$0xff] (!%p2566_p9), %v3233_v0  ;;  %396 = vst [vmem:[#allocation2 + $0x48] sm:$0xff] (!%p2566_p9), %v3233_v0 }
  0xda   : > { %397 = vst [vmem:[#allocation2 + $0x50] sm:$0xff] (!%p2566_p9), %v3233_v0  ;;  %398 = vst [vmem:[#allocation2 + $0x58] sm:$0xff] (!%p2566_p9), %v3233_v0 }
  0xdb   : > { %399 = vst [vmem:[#allocation2 + $0x60] sm:$0xff] (!%p2566_p9), %v3233_v0  ;;  %400 = vst [vmem:[#allocation2 + $0x68] sm:$0xff] (!%p2566_p9), %v3233_v0 }
  0xdc   : > { %401 = vst [vmem:[#allocation2 + $0x70] sm:$0xff] %v3233_v0  ;;  %402 = vst [vmem:[#allocation2 + $0x78] sm:$0xff] %v3233_v0 }
  0xdd   : > { %403 = vst [vmem:[#allocation2 + $0x80] sm:$0xff] %v3233_v0  ;;  %404 = vst [vmem:[#allocation2 + $0x88] sm:$0xff] %v3233_v0 }
  0xde   : > { %405 = vst [vmem:[#allocation2 + $0x90] sm:$0xff] %v3233_v0  ;;  %406 = vst [vmem:[#allocation2 + $0x98] sm:$0xff] %v3233_v0 }
  0xdf   : > { %407 = vst [vmem:[#allocation2 + $0xa0] sm:$0xff] %v3233_v0  ;;  %408 = vst [vmem:[#allocation2 + $0xa8] sm:$0xff] %v3233_v0 }
  0xe0   : > { %409 = vst [vmem:[#allocation2 + $0xb0] sm:$0xff] %v3233_v0  ;;  %410 = vst [vmem:[#allocation2 + $0xb8] sm:$0xff] %v3233_v0 }
  0xe1   : > { %411 = vst [vmem:[#allocation2 + $0xc0] sm:$0xff] %v3233_v0  ;;  %412 = vst [vmem:[#allocation2 + $0xc8] sm:$0xff] %v3233_v0 }
  0xe2   : > { %413 = vst [vmem:[#allocation2 + $0xd0] sm:$0xff] %v3233_v0  ;;  %414 = vst [vmem:[#allocation2 + $0xd8] sm:$0xff] %v3233_v0 }
  0xe3   : > { %415 = vst [vmem:[#allocation2 + $0xe0] sm:$0xff] %v3233_v0  ;;  %416 = vst [vmem:[#allocation2 + $0xe8] sm:$0xff] %v3233_v0 }
  0xe4   : > { %417 = vst [vmem:[#allocation2 + $0xf0] sm:$0xff] %v3233_v0  ;;  %418 = vst [vmem:[#allocation2 + $0xf8] sm:$0xff] %v3233_v0 }
  0xe5   : > { %419 = vst [vmem:[#allocation2 + $0x100] sm:$0xff] %v3233_v0  ;;  %420 = vst [vmem:[#allocation2 + $0x108] sm:$0xff] %v3233_v0 }
  0xe6   : > { %421 = vst [vmem:[#allocation2 + $0x110] sm:$0xff] %v3233_v0  ;;  %422 = vst [vmem:[#allocation2 + $0x118] sm:$0xff] %v3233_v0 }
  0xe7   : > { %423 = vst [vmem:[#allocation2 + $0x120] sm:$0xff] %v3233_v0  ;;  %424 = vst [vmem:[#allocation2 + $0x128] sm:$0xff] %v3233_v0 }
  0xe8   : > { %425 = vst [vmem:[#allocation2 + $0x130] sm:$0xff] %v3233_v0  ;;  %426 = vst [vmem:[#allocation2 + $0x138] sm:$0xff] %v3233_v0 }
  0xe9   : > { %427 = vst [vmem:[#allocation2 + $0x140] sm:$0xff] %v3233_v0  ;;  %428 = vst [vmem:[#allocation2 + $0x148] sm:$0xff] %v3233_v0 }
  0xea   : > { %429 = vst [vmem:[#allocation2 + $0x150] sm:$0xff] %v3233_v0  ;;  %430 = vst [vmem:[#allocation2 + $0x158] sm:$0xff] %v3233_v0 }
  0xeb   : > { %431 = vst [vmem:[#allocation2 + $0x160] sm:$0xff] %v3233_v0  ;;  %432 = vst [vmem:[#allocation2 + $0x168] sm:$0xff] %v3233_v0 }
  0xec   : > { %433 = vst [vmem:[#allocation2 + $0x170] sm:$0xff] %v3233_v0  ;;  %434 = vst [vmem:[#allocation2 + $0x178] sm:$0xff] %v3233_v0 }
  0xed   : > { %435 = vst [vmem:[#allocation2 + $0x180] sm:$0xff] %v3233_v0  ;;  %436 = vst [vmem:[#allocation2 + $0x188] sm:$0xff] %v3233_v0 }
  0xee   : > { %437 = vst [vmem:[#allocation2 + $0x190] sm:$0xff] %v3233_v0  ;;  %438 = vst [vmem:[#allocation2 + $0x198] sm:$0xff] %v3233_v0 }
  0xef   : > { %439 = vst [vmem:[#allocation2 + $0x1a0] sm:$0xff] %v3233_v0  ;;  %440 = vst [vmem:[#allocation2 + $0x1a8] sm:$0xff] %v3233_v0 }
  0xf0   : > { %441 = vst [vmem:[#allocation2 + $0x1b0] sm:$0xff] %v3233_v0  ;;  %442 = vst [vmem:[#allocation2 + $0x1b8] sm:$0xff] %v3233_v0 }
  0xf1   : > { %443 = vst [vmem:[#allocation2 + $0x1c0] sm:$0xff] %v3233_v0  ;;  %444 = vst [vmem:[#allocation2 + $0x1c8] sm:$0xff] %v3233_v0 }
  0xf2   : > { %445 = vst [vmem:[#allocation2 + $0x1d0] sm:$0xff] %v3233_v0  ;;  %446 = vst [vmem:[#allocation2 + $0x1d8] sm:$0xff] %v3233_v0 }
  0xf3   : > { %447 = vst [vmem:[#allocation2 + $0x1e0] sm:$0xff] %v3233_v0  ;;  %448 = vst [vmem:[#allocation2 + $0x1e8] sm:$0xff] %v3233_v0 }
  0xf4   : > { %449 = vst [vmem:[#allocation2 + $0x1f0] sm:$0xff] %v3233_v0  ;;  %450 = vst [vmem:[#allocation2 + $0x1f8] sm:$0xff] %v3233_v0 }
  0xf5 PF: > { %s4237_s25 = sld [smem:[#allocation25_spill]]  ;;  %s4238_s26 = sld [smem:[#allocation24_spill]] }
  0xfb   : > { %s451_s1 = sld [smem:[#allocation4 + %s4237_s25]] }
 0x101   : > { %p2567_p12 = scmp.ge.s32.totalorder %s4238_s26, %s451_s1 }
 0x102   : > { %s4239_s9 = sld [smem:[#allocation25_spill]] (!%p2567_p12)  ;;  %s4240_s22 = sld [smem:[#allocation24_spill]] (!%p2567_p12)  ;;  %v3694_v1 = vld [vmem:[%s3600_s2 + $0x8] sm:$0xff] (!%p2567_p12)  ;;  %v3697_v2 = vld [vmem:[%s3600_s2 + $0x18] sm:$0xff] (!%p2567_p12)  ;;  %v3234_v3 = vmov (!%p2567_p12), 0   ;;  %v456_v37 = vld [vmem:[%s3600_s2] sm:$0xff] (!%p2567_p12) }
 0x103   : > { %455 = sbr.rel (%p2567_p12) target bundleno = 808 (0x328), region = 68  ;;  %976 = vmatprep.subr.bf16.mxu0 (!%p2567_p12), %v3234_v3  ;;  %1265 = vmatprep.subr.bf16.mxu1 (!%p2567_p12), %v3234_v3  ;;  %v521_v4 = vunpack.c.l.s8.bf16 (!%p2567_p12), %v3694_v1  ;;  %v523_v5 = vunpack.c.l.s8.bf16 (!%p2567_p12), %v3697_v2  ;;  %v458_v39 = vld [vmem:[%s3600_s2 + $0x10] sm:$0xff] (!%p2567_p12)  ;;  %v520_v40 = vunpack.c.l.s8.bf16 (!%p2567_p12), %v456_v37  ;;  %v525_v41 = vunpack.c.h.s8.bf16 (!%p2567_p12), %v3694_v1  ;;  %v461_v44 = vld [vmem:[%s3600_s2 + $0x28] sm:$0xff] (!%p2567_p12)  ;;  %v463_v45 = vld [vmem:[%s3600_s2 + $0x38] sm:$0xff] (!%p2567_p12) }
 0x104   : > { %v522_v42 = vunpack.c.l.s8.bf16 (!%p2567_p12), %v458_v39  ;;  %v527_v43 = vunpack.c.h.s8.bf16 (!%p2567_p12), %v3697_v2  ;;  %v524_v46 = vunpack.c.h.s8.bf16 (!%p2567_p12), %v456_v37  ;;  %v526_v47 = vunpack.c.h.s8.bf16 (!%p2567_p12), %v458_v39  ;;  %v460_v50 = vld [vmem:[%s3600_s2 + $0x20] sm:$0xff] (!%p2567_p12)  ;;  %v462_v51 = vld [vmem:[%s3600_s2 + $0x30] sm:$0xff] (!%p2567_p12)  ;;  %v465_v56 = vld [vmem:[%s3600_s2 + $0x48] sm:$0xff] (!%p2567_p12) }
 0x105   : > { %1008 = vmatprep.mubr.bf16.mxu0 (!%p2567_p12), %v521_v4  ;;  %1297 = vmatprep.mubr.bf16.mxu1 (!%p2567_p12), %v523_v5  ;;  %v529_v48 = vunpack.c.l.s8.bf16 (!%p2567_p12), %v461_v44  ;;  %v531_v49 = vunpack.c.l.s8.bf16 (!%p2567_p12), %v463_v45  ;;  %v528_v52 = vunpack.c.l.s8.bf16 (!%p2567_p12), %v460_v50  ;;  %v530_v53 = vunpack.c.l.s8.bf16 (!%p2567_p12), %v462_v51  ;;  %v467_v57 = vld [vmem:[%s3600_s2 + $0x58] sm:$0xff] (!%p2567_p12)  ;;  %v464_v62 = vld [vmem:[%s3600_s2 + $0x40] sm:$0xff] (!%p2567_p12)  ;;  %v466_v63 = vld [vmem:[%s3600_s2 + $0x50] sm:$0xff] (!%p2567_p12) }
 0x106   : > { %v533_v54 = vunpack.c.h.s8.bf16 (!%p2567_p12), %v461_v44  ;;  %v535_v55 = vunpack.c.h.s8.bf16 (!%p2567_p12), %v463_v45  ;;  %v532_v58 = vunpack.c.h.s8.bf16 (!%p2567_p12), %v460_v50  ;;  %v534_v59 = vunpack.c.h.s8.bf16 (!%p2567_p12), %v462_v51  ;;  %v469_v4 = vld [vmem:[%s3600_s2 + $0x68] sm:$0xff] (!%p2567_p12)  ;;  %v471_v5 = vld [vmem:[%s3600_s2 + $0x78] sm:$0xff] (!%p2567_p12) }
 0x107   : > { %v537_v60 = vunpack.c.l.s8.bf16 (!%p2567_p12), %v465_v56  ;;  %v539_v61 = vunpack.c.l.s8.bf16 (!%p2567_p12), %v467_v57  ;;  %v536_v0 = vunpack.c.l.s8.bf16 (!%p2567_p12), %v464_v62  ;;  %v538_v1 = vunpack.c.l.s8.bf16 (!%p2567_p12), %v466_v63 }
 0x108   : > { %s2568_s14 = sshll.u32 (!%p2567_p12), %s4239_s9, 1  ;;  %v541_v2 = vunpack.c.h.s8.bf16 (!%p2567_p12), %v465_v56 }
 0x109   : > { %s649_s0 = sadd.s32 (!%p2567_p12), %s4240_s22, %s2568_s14 }
 0x10a   : > { %s650_s8 = sld [smem:[#allocation5 + %s649_s0]] }
 0x110   : > { %s2569_s11 = sshll.u32 %s650_s8, 9 }
 0x111   : > { %s652_s18 = sshra.s32 %s2569_s11, 3 }
 0x112   : > { %s2570_s21 = sshll.u32 %s652_s18, 2 }
 0x113   : > { %s3704_s29 = scalar_lea.vmem [#allocation10], %s2570_s21 }
 0x114   : > { %v2902_v6 = vld [vmem:[%s3704_s29] sm:$0xff]   ;;  %v2904_v8 = vld [vmem:[%s3704_s29 + $0x8] sm:$0xff]   ;;  %v2906_v10 = vld [vmem:[%s3704_s29 + $0x10] sm:$0xff]  }
 0x115   : > { %v2903_v7 = vld [vmem:[%s3704_s29 + $0x80] sm:$0xff]   ;;  %977 = vmatpush1.bf16.msra.mxu0 %v2902_v6  ;;  %v2905_v9 = vld [vmem:[%s3704_s29 + $0x88] sm:$0xff]   ;;  %v2907_v11 = vld [vmem:[%s3704_s29 + $0x90] sm:$0xff]   ;;  %v540_v6 = vunpack.c.h.s8.bf16 %v464_v62 }
 0x116   : > { %1266 = vmatpush1.bf16.msra.mxu1 %v2903_v7  ;;  %978 = vmatprep.subr.bf16.mxu0 %v3234_v3  ;;  %v2908_v12 = vld [vmem:[%s3704_s29 + $0x18] sm:$0xff]   ;;  %v2910_v14 = vld [vmem:[%s3704_s29 + $0x20] sm:$0xff]   ;;  %v2912_v16 = vld [vmem:[%s3704_s29 + $0x28] sm:$0xff]   ;;  %v542_v7 = vunpack.c.h.s8.bf16 %v466_v63 }
 0x117   : > { %1267 = vmatprep.subr.bf16.mxu1 %v3234_v3  ;;  %v2909_v13 = vld [vmem:[%s3704_s29 + $0x98] sm:$0xff]   ;;  %v2911_v15 = vld [vmem:[%s3704_s29 + $0xa0] sm:$0xff]   ;;  %v2913_v17 = vld [vmem:[%s3704_s29 + $0xa8] sm:$0xff]  }
 0x118   : > { %v2914_v18 = vld [vmem:[%s3704_s29 + $0x30] sm:$0xff]   ;;  %v2916_v20 = vld [vmem:[%s3704_s29 + $0x38] sm:$0xff]   ;;  %v2918_v22 = vld [vmem:[%s3704_s29 + $0x40] sm:$0xff]  }
 0x119   : > { %979 = vmatpush1.bf16.msra.mxu0 %v2904_v8  ;;  %v2915_v19 = vld [vmem:[%s3704_s29 + $0xb0] sm:$0xff]   ;;  %v2917_v21 = vld [vmem:[%s3704_s29 + $0xb8] sm:$0xff]   ;;  %v2919_v23 = vld [vmem:[%s3704_s29 + $0xc0] sm:$0xff]   ;;  %v545_v8 = vunpack.c.l.s8.bf16 %v469_v4 }
 0x11a   : > { %1268 = vmatpush1.bf16.msra.mxu1 %v2905_v9  ;;  %980 = vmatprep.subr.bf16.mxu0 %v3234_v3  ;;  %v2920_v24 = vld [vmem:[%s3704_s29 + $0x48] sm:$0xff]   ;;  %v2922_v26 = vld [vmem:[%s3704_s29 + $0x50] sm:$0xff]   ;;  %v2924_v28 = vld [vmem:[%s3704_s29 + $0x58] sm:$0xff]   ;;  %v547_v9 = vunpack.c.l.s8.bf16 %v471_v5 }
 0x11b   : > { %1269 = vmatprep.subr.bf16.mxu1 %v3234_v3  ;;  %v2921_v25 = vld [vmem:[%s3704_s29 + $0xc8] sm:$0xff]   ;;  %v2923_v27 = vld [vmem:[%s3704_s29 + $0xd0] sm:$0xff]   ;;  %v2925_v29 = vld [vmem:[%s3704_s29 + $0xd8] sm:$0xff]  }
 0x11c   : > { %v2926_v30 = vld [vmem:[%s3704_s29 + $0x60] sm:$0xff]   ;;  %v2928_v32 = vld [vmem:[%s3704_s29 + $0x68] sm:$0xff]   ;;  %v2930_v34 = vld [vmem:[%s3704_s29 + $0x70] sm:$0xff]  }
 0x11d   : > { %981 = vmatpush1.bf16.msra.mxu0 %v2906_v10  ;;  %v2927_v31 = vld [vmem:[%s3704_s29 + $0xe0] sm:$0xff]   ;;  %v2929_v33 = vld [vmem:[%s3704_s29 + $0xe8] sm:$0xff]   ;;  %v2931_v35 = vld [vmem:[%s3704_s29 + $0xf0] sm:$0xff]  }
 0x11e   : > { %1270 = vmatpush1.bf16.msra.mxu1 %v2907_v11  ;;  %982 = vmatprep.subr.bf16.mxu0 %v3234_v3  ;;  %v2932_v36 = vld [vmem:[%s3704_s29 + $0x78] sm:$0xff]   ;;  %v468_v10 = vld [vmem:[%s3600_s2 + $0x60] sm:$0xff]  ;;  %v470_v11 = vld [vmem:[%s3600_s2 + $0x70] sm:$0xff] }
 0x11f   : > { %1271 = vmatprep.subr.bf16.mxu1 %v3234_v3  ;;  %v2933_v38 = vld [vmem:[%s3704_s29 + $0xf8] sm:$0xff]  }
 0x121   : > { %983 = vmatpush1.bf16.msra.mxu0 %v2908_v12  ;;  %v544_v12 = vunpack.c.l.s8.bf16 %v468_v10 }
 0x122   : > { %1272 = vmatpush1.bf16.msra.mxu1 %v2909_v13  ;;  %984 = vmatprep.subr.bf16.mxu0 %v3234_v3  ;;  %v546_v13 = vunpack.c.l.s8.bf16 %v470_v11 }
 0x123   : > { %1273 = vmatprep.subr.bf16.mxu1 %v3234_v3 }
 0x125   : > { %985 = vmatpush1.bf16.msra.mxu0 %v2910_v14  ;;  %v549_v14 = vunpack.c.h.s8.bf16 %v469_v4 }
 0x126   : > { %1274 = vmatpush1.bf16.msra.mxu1 %v2911_v15  ;;  %986 = vmatprep.subr.bf16.mxu0 %v3234_v3  ;;  %v551_v15 = vunpack.c.h.s8.bf16 %v471_v5 }
 0x127   : > { %1275 = vmatprep.subr.bf16.mxu1 %v3234_v3 }
 0x129   : > { %987 = vmatpush1.bf16.msra.mxu0 %v2912_v16  ;;  %v473_v16 = vld [vmem:[%s3600_s2 + $0x88] sm:$0xff] }
 0x12a   : > { %1276 = vmatpush1.bf16.msra.mxu1 %v2913_v17  ;;  %988 = vmatprep.subr.bf16.mxu0 %v3234_v3  ;;  %v475_v17 = vld [vmem:[%s3600_s2 + $0x98] sm:$0xff] }
 0x12b   : > { %1277 = vmatprep.subr.bf16.mxu1 %v3234_v3 }
 0x12d   : > { %989 = vmatpush1.bf16.msra.mxu0 %v2914_v18  ;;  %v548_v18 = vunpack.c.h.s8.bf16 %v468_v10 }
 0x12e   : > { %1278 = vmatpush1.bf16.msra.mxu1 %v2915_v19  ;;  %990 = vmatprep.subr.bf16.mxu0 %v3234_v3  ;;  %v550_v19 = vunpack.c.h.s8.bf16 %v470_v11 }
 0x12f   : > { %1279 = vmatprep.subr.bf16.mxu1 %v3234_v3 }
 0x131   : > { %991 = vmatpush1.bf16.msra.mxu0 %v2916_v20  ;;  %v553_v20 = vunpack.c.l.s8.bf16 %v473_v16 }
 0x132   : > { %1280 = vmatpush1.bf16.msra.mxu1 %v2917_v21  ;;  %992 = vmatprep.subr.bf16.mxu0 %v3234_v3  ;;  %v555_v21 = vunpack.c.l.s8.bf16 %v475_v17 }
 0x133   : > { %1281 = vmatprep.subr.bf16.mxu1 %v3234_v3 }
 0x135   : > { %993 = vmatpush1.bf16.msra.mxu0 %v2918_v22  ;;  %v472_v22 = vld [vmem:[%s3600_s2 + $0x80] sm:$0xff] }
 0x136   : > { %1282 = vmatpush1.bf16.msra.mxu1 %v2919_v23  ;;  %994 = vmatprep.subr.bf16.mxu0 %v3234_v3  ;;  %v474_v23 = vld [vmem:[%s3600_s2 + $0x90] sm:$0xff] }
 0x137   : > { %1283 = vmatprep.subr.bf16.mxu1 %v3234_v3 }
 0x139   : > { %995 = vmatpush1.bf16.msra.mxu0 %v2920_v24  ;;  %v552_v24 = vunpack.c.l.s8.bf16 %v472_v22 }
 0x13a   : > { %1284 = vmatpush1.bf16.msra.mxu1 %v2921_v25  ;;  %996 = vmatprep.subr.bf16.mxu0 %v3234_v3  ;;  %v554_v25 = vunpack.c.l.s8.bf16 %v474_v23 }
 0x13b   : > { %1285 = vmatprep.subr.bf16.mxu1 %v3234_v3 }
 0x13d   : > { %997 = vmatpush1.bf16.msra.mxu0 %v2922_v26  ;;  %v557_v26 = vunpack.c.h.s8.bf16 %v473_v16 }
 0x13e   : > { %1286 = vmatpush1.bf16.msra.mxu1 %v2923_v27  ;;  %998 = vmatprep.subr.bf16.mxu0 %v3234_v3  ;;  %v559_v27 = vunpack.c.h.s8.bf16 %v475_v17 }
 0x13f   : > { %1287 = vmatprep.subr.bf16.mxu1 %v3234_v3 }
 0x141   : > { %999 = vmatpush1.bf16.msra.mxu0 %v2924_v28  ;;  %v477_v28 = vld [vmem:[%s3600_s2 + $0xa8] sm:$0xff] }
 0x142   : > { %1288 = vmatpush1.bf16.msra.mxu1 %v2925_v29  ;;  %1000 = vmatprep.subr.bf16.mxu0 %v3234_v3  ;;  %v479_v29 = vld [vmem:[%s3600_s2 + $0xb8] sm:$0xff] }
 0x143   : > { %1289 = vmatprep.subr.bf16.mxu1 %v3234_v3  ;;  %v567_v39 = vunpack.c.h.s8.bf16 %v479_v29 }
 0x145   : > { %1001 = vmatpush1.bf16.msra.mxu0 %v2926_v30  ;;  %v556_v30 = vunpack.c.h.s8.bf16 %v472_v22 }
 0x146   : > { %1290 = vmatpush1.bf16.msra.mxu1 %v2927_v31  ;;  %1002 = vmatprep.subr.bf16.mxu0 %v3234_v3  ;;  %v558_v31 = vunpack.c.h.s8.bf16 %v474_v23 }
 0x147   : > { %1291 = vmatprep.subr.bf16.mxu1 %v3234_v3 }
 0x149   : > { %1003 = vmatpush1.bf16.msra.mxu0 %v2928_v32  ;;  %v561_v32 = vunpack.c.l.s8.bf16 %v477_v28 }
 0x14a   : > { %1292 = vmatpush1.bf16.msra.mxu1 %v2929_v33  ;;  %1004 = vmatprep.subr.bf16.mxu0 %v3234_v3  ;;  %v563_v33 = vunpack.c.l.s8.bf16 %v479_v29 }
 0x14b   : > { %1293 = vmatprep.subr.bf16.mxu1 %v3234_v3 }
 0x14d   : > { %1005 = vmatpush1.bf16.msra.mxu0 %v2930_v34  ;;  %v476_v34 = vld [vmem:[%s3600_s2 + $0xa0] sm:$0xff] }
 0x14e   : > { %1294 = vmatpush1.bf16.msra.mxu1 %v2931_v35  ;;  %1006 = vmatprep.subr.bf16.mxu0 %v3234_v3  ;;  %v478_v35 = vld [vmem:[%s3600_s2 + $0xb0] sm:$0xff] }
 0x14f   : > { %1295 = vmatprep.subr.bf16.mxu1 %v3234_v3  ;;  %v543_v3 = vunpack.c.h.s8.bf16 %v467_v57  ;;  %v562_v37 = vunpack.c.l.s8.bf16 %v478_v35 }
 0x151   : > { %1007 = vmatpush1.bf16.msra.mxu0 %v2932_v36  ;;  %v560_v36 = vunpack.c.l.s8.bf16 %v476_v34 }
 0x152   : > { %1296 = vmatpush1.bf16.msra.mxu1 %v2933_v38  ;;  %v565_v38 = vunpack.c.h.s8.bf16 %v477_v28 }
 0x154   : > { %1009 = vmatmul.mubr.bf16.vlgmr.msra.gmra.mrb[0].mxu0 %v520_v40  ;;  %v481_v40 = vld [vmem:[%s3600_s2 + $0xc8] sm:$0xff] }
 0x155   : > { %1298 = vmatmul.mubr.bf16.vlgmr.msra.gmra.mrb[0].mxu1 %v522_v42  ;;  %1016 = vmatprep.mubr.bf16.mxu0 %v525_v41  ;;  %v483_v41 = vld [vmem:[%s3600_s2 + $0xd8] sm:$0xff]  ;;  %v564_v42 = vunpack.c.h.s8.bf16 %v476_v34  ;;  %v569_v44 = vunpack.c.l.s8.bf16 %v481_v40  ;;  %v573_v50 = vunpack.c.h.s8.bf16 %v481_v40 }
 0x156   : > { %1305 = vmatprep.mubr.bf16.mxu1 %v527_v43  ;;  %v566_v43 = vunpack.c.h.s8.bf16 %v478_v35  ;;  %v571_v45 = vunpack.c.l.s8.bf16 %v483_v41  ;;  %v575_v51 = vunpack.c.h.s8.bf16 %v483_v41 }
 0x15c   : > { %1017 = vmatmul.mubr.bf16.gmra.mrb[4].mxu0 %v524_v46  ;;  %v480_v46 = vld [vmem:[%s3600_s2 + $0xc0] sm:$0xff] }
 0x15d   : > { %1306 = vmatmul.mubr.bf16.gmra.mrb[4].mxu1 %v526_v47  ;;  %1024 = vmatprep.mubr.bf16.mxu0 %v529_v48  ;;  %v482_v47 = vld [vmem:[%s3600_s2 + $0xd0] sm:$0xff]  ;;  %v568_v48 = vunpack.c.l.s8.bf16 %v480_v46 }
 0x15e   : > { %1313 = vmatprep.mubr.bf16.mxu1 %v531_v49  ;;  %v570_v49 = vunpack.c.l.s8.bf16 %v482_v47 }
 0x164   : > { %1025 = vmatmul.mubr.bf16.gmra.mrb[8].mxu0 %v528_v52  ;;  %v485_v52 = vld [vmem:[%s3600_s2 + $0xe8] sm:$0xff] }
 0x165   : > { %1314 = vmatmul.mubr.bf16.gmra.mrb[8].mxu1 %v530_v53  ;;  %1032 = vmatprep.mubr.bf16.mxu0 %v533_v54  ;;  %v487_v53 = vld [vmem:[%s3600_s2 + $0xf8] sm:$0xff]  ;;  %v572_v54 = vunpack.c.h.s8.bf16 %v480_v46  ;;  %v577_v56 = vunpack.c.l.s8.bf16 %v485_v52  ;;  %v581_v62 = vunpack.c.h.s8.bf16 %v485_v52 }
 0x166   : > { %1321 = vmatprep.mubr.bf16.mxu1 %v535_v55  ;;  %v574_v55 = vunpack.c.h.s8.bf16 %v482_v47  ;;  %v579_v57 = vunpack.c.l.s8.bf16 %v487_v53  ;;  %v583_v63 = vunpack.c.h.s8.bf16 %v487_v53 }
 0x16c   : > { %1033 = vmatmul.mubr.bf16.gmra.mrb[12].mxu0 %v532_v58  ;;  %v484_v58 = vld [vmem:[%s3600_s2 + $0xe0] sm:$0xff] }
 0x16d   : > { %1322 = vmatmul.mubr.bf16.gmra.mrb[12].mxu1 %v534_v59  ;;  %1040 = vmatprep.mubr.bf16.mxu0 %v537_v60  ;;  %v486_v59 = vld [vmem:[%s3600_s2 + $0xf0] sm:$0xff]  ;;  %v576_v60 = vunpack.c.l.s8.bf16 %v484_v58 }
 0x16e   : > { %1329 = vmatprep.mubr.bf16.mxu1 %v539_v61  ;;  %v578_v61 = vunpack.c.l.s8.bf16 %v486_v59 }
 0x174   : > { %1041 = vmatmul.mubr.bf16.gmra.mrb[16].mxu0 %v536_v0  ;;  %v489_v0 = vld [vmem:[%s3600_s2 + $0x108] sm:$0xff] }
 0x175   : > { %1330 = vmatmul.mubr.bf16.gmra.mrb[16].mxu1 %v538_v1  ;;  %1048 = vmatprep.mubr.bf16.mxu0 %v541_v2  ;;  %v491_v1 = vld [vmem:[%s3600_s2 + $0x118] sm:$0xff]  ;;  %v580_v2 = vunpack.c.h.s8.bf16 %v484_v58  ;;  %v585_v4 = vunpack.c.l.s8.bf16 %v489_v0  ;;  %v589_v10 = vunpack.c.h.s8.bf16 %v489_v0 }
 0x176   : > { %1337 = vmatprep.mubr.bf16.mxu1 %v543_v3  ;;  %v582_v3 = vunpack.c.h.s8.bf16 %v486_v59  ;;  %v587_v5 = vunpack.c.l.s8.bf16 %v491_v1  ;;  %v591_v11 = vunpack.c.h.s8.bf16 %v491_v1 }
 0x17c   : > { %1049 = vmatmul.mubr.bf16.gmra.mrb[20].mxu0 %v540_v6  ;;  %v488_v6 = vld [vmem:[%s3600_s2 + $0x100] sm:$0xff] }
 0x17d   : > { %1338 = vmatmul.mubr.bf16.gmra.mrb[20].mxu1 %v542_v7  ;;  %1056 = vmatprep.mubr.bf16.mxu0 %v545_v8  ;;  %v490_v7 = vld [vmem:[%s3600_s2 + $0x110] sm:$0xff]  ;;  %v584_v8 = vunpack.c.l.s8.bf16 %v488_v6 }
 0x17e   : > { %1345 = vmatprep.mubr.bf16.mxu1 %v547_v9  ;;  %v586_v9 = vunpack.c.l.s8.bf16 %v490_v7 }
 0x184   : > { %1057 = vmatmul.mubr.bf16.gmra.mrb[24].mxu0 %v544_v12  ;;  %v493_v12 = vld [vmem:[%s3600_s2 + $0x128] sm:$0xff] }
 0x185   : > { %1346 = vmatmul.mubr.bf16.gmra.mrb[24].mxu1 %v546_v13  ;;  %1064 = vmatprep.mubr.bf16.mxu0 %v549_v14  ;;  %v495_v13 = vld [vmem:[%s3600_s2 + $0x138] sm:$0xff]  ;;  %v588_v14 = vunpack.c.h.s8.bf16 %v488_v6  ;;  %v593_v16 = vunpack.c.l.s8.bf16 %v493_v12  ;;  %v597_v22 = vunpack.c.h.s8.bf16 %v493_v12 }
 0x186   : > { %1353 = vmatprep.mubr.bf16.mxu1 %v551_v15  ;;  %v590_v15 = vunpack.c.h.s8.bf16 %v490_v7  ;;  %v595_v17 = vunpack.c.l.s8.bf16 %v495_v13  ;;  %v599_v23 = vunpack.c.h.s8.bf16 %v495_v13 }
 0x18c   : > { %1065 = vmatmul.mubr.bf16.gmra.mrb[28].mxu0 %v548_v18  ;;  %v492_v18 = vld [vmem:[%s3600_s2 + $0x120] sm:$0xff] }
 0x18d   : > { %1354 = vmatmul.mubr.bf16.gmra.mrb[28].mxu1 %v550_v19  ;;  %1072 = vmatprep.mubr.bf16.mxu0 %v553_v20  ;;  %v494_v19 = vld [vmem:[%s3600_s2 + $0x130] sm:$0xff]  ;;  %v592_v20 = vunpack.c.l.s8.bf16 %v492_v18 }
 0x18e   : > { %1361 = vmatprep.mubr.bf16.mxu1 %v555_v21  ;;  %v594_v21 = vunpack.c.l.s8.bf16 %v494_v19 }
 0x194   : > { %1073 = vmatmul.mubr.bf16.gmra.mrb[32].mxu0 %v552_v24  ;;  %v497_v24 = vld [vmem:[%s3600_s2 + $0x148] sm:$0xff] }
 0x195   : > { %1362 = vmatmul.mubr.bf16.gmra.mrb[32].mxu1 %v554_v25  ;;  %1080 = vmatprep.mubr.bf16.mxu0 %v557_v26  ;;  %v499_v25 = vld [vmem:[%s3600_s2 + $0x158] sm:$0xff]  ;;  %v596_v26 = vunpack.c.h.s8.bf16 %v492_v18  ;;  %v601_v28 = vunpack.c.l.s8.bf16 %v497_v24  ;;  %v605_v34 = vunpack.c.h.s8.bf16 %v497_v24 }
 0x196   : > { %1369 = vmatprep.mubr.bf16.mxu1 %v559_v27  ;;  %v598_v27 = vunpack.c.h.s8.bf16 %v494_v19  ;;  %v603_v29 = vunpack.c.l.s8.bf16 %v499_v25  ;;  %v607_v35 = vunpack.c.h.s8.bf16 %v499_v25 }
 0x19c   : > { %1081 = vmatmul.mubr.bf16.gmra.mrb[36].mxu0 %v556_v30  ;;  %v496_v30 = vld [vmem:[%s3600_s2 + $0x140] sm:$0xff] }
 0x19d   : > { %1370 = vmatmul.mubr.bf16.gmra.mrb[36].mxu1 %v558_v31  ;;  %1088 = vmatprep.mubr.bf16.mxu0 %v561_v32  ;;  %v498_v31 = vld [vmem:[%s3600_s2 + $0x150] sm:$0xff]  ;;  %v600_v32 = vunpack.c.l.s8.bf16 %v496_v30 }
 0x19e   : > { %1377 = vmatprep.mubr.bf16.mxu1 %v563_v33  ;;  %v602_v33 = vunpack.c.l.s8.bf16 %v498_v31 }
 0x1a4   : > { %1089 = vmatmul.mubr.bf16.gmra.mrb[40].mxu0 %v560_v36  ;;  %v501_v36 = vld [vmem:[%s3600_s2 + $0x168] sm:$0xff] }
 0x1a5   : > { %1378 = vmatmul.mubr.bf16.gmra.mrb[40].mxu1 %v562_v37  ;;  %1096 = vmatprep.mubr.bf16.mxu0 %v565_v38  ;;  %v503_v37 = vld [vmem:[%s3600_s2 + $0x178] sm:$0xff]  ;;  %v604_v38 = vunpack.c.h.s8.bf16 %v496_v30  ;;  %v609_v40 = vunpack.c.l.s8.bf16 %v501_v36  ;;  %v613_v46 = vunpack.c.h.s8.bf16 %v501_v36 }
 0x1a6   : > { %1385 = vmatprep.mubr.bf16.mxu1 %v567_v39  ;;  %v606_v39 = vunpack.c.h.s8.bf16 %v498_v31  ;;  %v611_v41 = vunpack.c.l.s8.bf16 %v503_v37  ;;  %v615_v47 = vunpack.c.h.s8.bf16 %v503_v37  ;;  %v722_v31 = vld [vmem:[#allocation2 + $0x10] sm:$0xff] }
 0x1ac   : > { %1097 = vmatmul.mubr.bf16.gmra.mrb[44].mxu0 %v564_v42  ;;  %v500_v42 = vld [vmem:[%s3600_s2 + $0x160] sm:$0xff] }
 0x1ad   : > { %1386 = vmatmul.mubr.bf16.gmra.mrb[44].mxu1 %v566_v43  ;;  %1104 = vmatprep.mubr.bf16.mxu0 %v569_v44  ;;  %v502_v43 = vld [vmem:[%s3600_s2 + $0x170] sm:$0xff]  ;;  %v608_v44 = vunpack.c.l.s8.bf16 %v500_v42 }
 0x1ae   : > { %1393 = vmatprep.mubr.bf16.mxu1 %v571_v45  ;;  %v610_v45 = vunpack.c.l.s8.bf16 %v502_v43 }
 0x1b4   : > { %1105 = vmatmul.mubr.bf16.gmra.mrb[48].mxu0 %v568_v48  ;;  %v505_v48 = vld [vmem:[%s3600_s2 + $0x188] sm:$0xff] }
 0x1b5   : > { %1394 = vmatmul.mubr.bf16.gmra.mrb[48].mxu1 %v570_v49  ;;  %1112 = vmatprep.mubr.bf16.mxu0 %v573_v50  ;;  %v507_v49 = vld [vmem:[%s3600_s2 + $0x198] sm:$0xff]  ;;  %v612_v50 = vunpack.c.h.s8.bf16 %v500_v42  ;;  %v617_v52 = vunpack.c.l.s8.bf16 %v505_v48  ;;  %v621_v58 = vunpack.c.h.s8.bf16 %v505_v48  ;;  %v517_v48 = vld [vmem:[%s3600_s2 + $0x1e8] sm:$0xff] }
 0x1b6   : > { %1401 = vmatprep.mubr.bf16.mxu1 %v575_v51  ;;  %v614_v51 = vunpack.c.h.s8.bf16 %v502_v43  ;;  %v619_v53 = vunpack.c.l.s8.bf16 %v507_v49  ;;  %v623_v59 = vunpack.c.h.s8.bf16 %v507_v49 }
 0x1bc   : > { %1113 = vmatmul.mubr.bf16.gmra.mrb[52].mxu0 %v572_v54  ;;  %v504_v54 = vld [vmem:[%s3600_s2 + $0x180] sm:$0xff] }
 0x1bd   : > { %1402 = vmatmul.mubr.bf16.gmra.mrb[52].mxu1 %v574_v55  ;;  %1120 = vmatprep.mubr.bf16.mxu0 %v577_v56  ;;  %v506_v55 = vld [vmem:[%s3600_s2 + $0x190] sm:$0xff]  ;;  %v616_v56 = vunpack.c.l.s8.bf16 %v504_v54 }
 0x1be   : > { %1409 = vmatprep.mubr.bf16.mxu1 %v579_v57  ;;  %v618_v57 = vunpack.c.l.s8.bf16 %v506_v55 }
 0x1c4   : > { %1121 = vmatmul.mubr.bf16.gmra.mrb[56].mxu0 %v576_v60  ;;  %v509_v60 = vld [vmem:[%s3600_s2 + $0x1a8] sm:$0xff] }
 0x1c5   : > { %1410 = vmatmul.mubr.bf16.gmra.mrb[56].mxu1 %v578_v61  ;;  %1128 = vmatprep.mubr.bf16.mxu0 %v581_v62  ;;  %v511_v61 = vld [vmem:[%s3600_s2 + $0x1b8] sm:$0xff]  ;;  %v620_v62 = vunpack.c.h.s8.bf16 %v504_v54  ;;  %v625_v0 = vunpack.c.l.s8.bf16 %v509_v60  ;;  %v629_v6 = vunpack.c.h.s8.bf16 %v509_v60  ;;  %v725_v60 = vld [vmem:[#allocation2 + $0x28] sm:$0xff] }
 0x1c6   : > { %1417 = vmatprep.mubr.bf16.mxu1 %v583_v63  ;;  %v622_v63 = vunpack.c.h.s8.bf16 %v506_v55  ;;  %v627_v1 = vunpack.c.l.s8.bf16 %v511_v61  ;;  %v631_v7 = vunpack.c.h.s8.bf16 %v511_v61 }
 0x1cc   : > { %1129 = vmatmul.mubr.bf16.gmra.mrb[60].mxu0 %v580_v2  ;;  %v508_v2 = vld [vmem:[%s3600_s2 + $0x1a0] sm:$0xff] }
 0x1cd   : > { %1418 = vmatmul.mubr.bf16.gmra.mrb[60].mxu1 %v582_v3  ;;  %1136 = vmatprep.mubr.bf16.mxu0 %v585_v4  ;;  %v510_v3 = vld [vmem:[%s3600_s2 + $0x1b0] sm:$0xff]  ;;  %v624_v4 = vunpack.c.l.s8.bf16 %v508_v2 }
 0x1ce   : > { %1425 = vmatprep.mubr.bf16.mxu1 %v587_v5  ;;  %v626_v5 = vunpack.c.l.s8.bf16 %v510_v3  ;;  %v630_v18 = vunpack.c.h.s8.bf16 %v510_v3 }
 0x1d4   : > { %1137 = vmatmul.mubr.bf16.gmra.mrb[64].mxu0 %v584_v8  ;;  %v513_v8 = vld [vmem:[%s3600_s2 + $0x1c8] sm:$0xff] }
 0x1d5   : > { %1426 = vmatmul.mubr.bf16.gmra.mrb[64].mxu1 %v586_v9  ;;  %1144 = vmatprep.mubr.bf16.mxu0 %v589_v10  ;;  %v515_v10 = vld [vmem:[%s3600_s2 + $0x1d8] sm:$0xff]  ;;  %v633_v19 = vunpack.c.l.s8.bf16 %v513_v8 }
 0x1d6   : > { %1433 = vmatprep.mubr.bf16.mxu1 %v591_v11  ;;  %v720_v11 = vld [vmem:[#allocation2] sm:$0xff]  ;;  %v639_v43 = vunpack.c.h.s8.bf16 %v515_v10 }
 0x1dc   : > { %1145 = vmatmul.mubr.bf16.gmra.mrb[68].mxu0 %v588_v14  ;;  %v628_v14 = vunpack.c.h.s8.bf16 %v508_v2 }
 0x1dd   : > { %1434 = vmatmul.mubr.bf16.gmra.mrb[68].mxu1 %v590_v15  ;;  %1152 = vmatprep.mubr.bf16.mxu0 %v593_v16 }
 0x1de   : > { %1441 = vmatprep.mubr.bf16.mxu1 %v595_v17 }
 0x1e4   : > { %1153 = vmatmul.mubr.bf16.gmra.mrb[72].mxu0 %v592_v20  ;;  %v721_v20 = vld [vmem:[#allocation2 + $0x8] sm:$0xff] }
 0x1e5   : > { %1442 = vmatmul.mubr.bf16.gmra.mrb[72].mxu1 %v594_v21  ;;  %1160 = vmatprep.mubr.bf16.mxu0 %v597_v22 }
 0x1e6   : > { %1449 = vmatprep.mubr.bf16.mxu1 %v599_v23  ;;  %v635_v23 = vunpack.c.l.s8.bf16 %v515_v10 }
 0x1ec   : > { %1161 = vmatmul.mubr.bf16.gmra.mrb[76].mxu0 %v596_v26 }
 0x1ed   : > { %1450 = vmatmul.mubr.bf16.gmra.mrb[76].mxu1 %v598_v27  ;;  %1168 = vmatprep.mubr.bf16.mxu0 %v601_v28  ;;  %v512_v28 = vld [vmem:[%s3600_s2 + $0x1c0] sm:$0xff] }
 0x1ee   : > { %1457 = vmatprep.mubr.bf16.mxu1 %v603_v29  ;;  %v514_v29 = vld [vmem:[%s3600_s2 + $0x1d0] sm:$0xff]  ;;  %v636_v54 = vunpack.c.h.s8.bf16 %v512_v28 }
 0x1f4   : > { %1169 = vmatmul.mubr.bf16.gmra.mrb[80].mxu0 %v600_v32 }
 0x1f5   : > { %1458 = vmatmul.mubr.bf16.gmra.mrb[80].mxu1 %v602_v33  ;;  %1176 = vmatprep.mubr.bf16.mxu0 %v605_v34  ;;  %v632_v34 = vunpack.c.l.s8.bf16 %v512_v28 }
 0x1f6   : > { %1465 = vmatprep.mubr.bf16.mxu1 %v607_v35 }
 0x1fc   : > { %1177 = vmatmul.mubr.bf16.gmra.mrb[84].mxu0 %v604_v38  ;;  %v634_v38 = vunpack.c.l.s8.bf16 %v514_v29 }
 0x1fd   : > { %1466 = vmatmul.mubr.bf16.gmra.mrb[84].mxu1 %v606_v39  ;;  %1184 = vmatprep.mubr.bf16.mxu0 %v609_v40  ;;  %v637_v39 = vunpack.c.h.s8.bf16 %v513_v8  ;;  %v723_v40 = vld [vmem:[#allocation2 + $0x18] sm:$0xff] }
 0x1fe   : > { %1473 = vmatprep.mubr.bf16.mxu1 %v611_v41 }
 0x204   : > { %1185 = vmatmul.mubr.bf16.gmra.mrb[88].mxu0 %v608_v44 }
 0x205   : > { %1474 = vmatmul.mubr.bf16.gmra.mrb[88].mxu1 %v610_v45  ;;  %1192 = vmatprep.mubr.bf16.mxu0 %v613_v46 }
 0x206   : > { %1481 = vmatprep.mubr.bf16.mxu1 %v615_v47 }
 0x20c   : > { %1193 = vmatmul.mubr.bf16.gmra.mrb[92].mxu0 %v612_v50  ;;  %v519_v50 = vld [vmem:[%s3600_s2 + $0x1f8] sm:$0xff] }
 0x20d   : > { %1482 = vmatmul.mubr.bf16.gmra.mrb[92].mxu1 %v614_v51  ;;  %1200 = vmatprep.mubr.bf16.mxu0 %v617_v52  ;;  %v724_v51 = vld [vmem:[#allocation2 + $0x20] sm:$0xff] }
 0x20e   : > { %1489 = vmatprep.mubr.bf16.mxu1 %v619_v53 }
 0x214   : > { %1201 = vmatmul.mubr.bf16.gmra.mrb[96].mxu0 %v616_v56 }
 0x215   : > { %1490 = vmatmul.mubr.bf16.gmra.mrb[96].mxu1 %v618_v57  ;;  %1208 = vmatprep.mubr.bf16.mxu0 %v621_v58  ;;  %v638_v58 = vunpack.c.h.s8.bf16 %v514_v29 }
 0x216   : > { %1497 = vmatprep.mubr.bf16.mxu1 %v623_v59  ;;  %v641_v59 = vunpack.c.l.s8.bf16 %v517_v48 }
 0x21c   : > { %1209 = vmatmul.mubr.bf16.gmra.mrb[100].mxu0 %v620_v62 }
 0x21d   : > { %1498 = vmatmul.mubr.bf16.gmra.mrb[100].mxu1 %v622_v63  ;;  %1216 = vmatprep.mubr.bf16.mxu0 %v625_v0  ;;  %v643_v63 = vunpack.c.l.s8.bf16 %v519_v50 }
 0x21e   : > { %1505 = vmatprep.mubr.bf16.mxu1 %v627_v1 }
 0x224   : > { %1217 = vmatmul.mubr.bf16.gmra.mrb[104].mxu0 %v624_v4  ;;  %v516_v4 = vld [vmem:[%s3600_s2 + $0x1e0] sm:$0xff] }
 0x225   : > { %1506 = vmatmul.mubr.bf16.gmra.mrb[104].mxu1 %v626_v5  ;;  %1224 = vmatprep.mubr.bf16.mxu0 %v629_v6  ;;  %v518_v5 = vld [vmem:[%s3600_s2 + $0x1f0] sm:$0xff]  ;;  %v640_v10 = vunpack.c.l.s8.bf16 %v516_v4  ;;  %v644_v28 = vunpack.c.h.s8.bf16 %v516_v4 }
 0x226   : > { %1513 = vmatprep.mubr.bf16.mxu1 %v631_v7  ;;  %v726_v7 = vld [vmem:[#allocation2 + $0x30] sm:$0xff] }
 0x227   : > { %v1010_v9 = vpop.f32.mrb[0].mxu0 }
 0x228   : > { %v1299_v12 = vpop.f32.mrb[0].mxu1  ;;  %v1012_v13 = vpop.f32.mrb[1].mxu0 }
 0x229   : > { %v1300_v15 = vadd.f32 %v1299_v12, %v1010_v9  ;;  %v1301_v16 = vpop.f32.mrb[1].mxu1  ;;  %v1013_v17 = vpop.f32.mrb[2].mxu0 }
 0x22a   : > { %v1302_v21 = vpop.f32.mrb[2].mxu1  ;;  %v1015_v22 = vpop.f32.mrb[3].mxu0  ;;  %v727_v16 = vld [vmem:[#allocation2 + $0x38] sm:$0xff] }
 0x22b   : > { %v1554_v24 = vadd.f32 %v1300_v15, %v720_v11  ;;  %v1303_v25 = vadd.f32 %v1302_v21, %v1013_v17  ;;  %v1304_v26 = vpop.f32.mrb[3].mxu1  ;;  %v645_v15 = vunpack.c.h.s8.bf16 %v517_v48 }
 0x22c   : > { %1225 = vmatmul.mubr.bf16.gmra.mrb[108].mxu0 %v628_v14  ;;  %v642_v14 = vunpack.c.l.s8.bf16 %v518_v5 }
 0x22d   : > { %1618 = vst [vmem:[#allocation2] sm:$0xff] %v1554_v24  ;;  %v1555_v27 = vadd.f32 %v1303_v25, %v721_v20  ;;  %1514 = vmatmul.mubr.bf16.gmra.mrb[108].mxu1 %v630_v18  ;;  %1232 = vmatprep.mubr.bf16.mxu0 %v633_v19  ;;  %v647_v19 = vunpack.c.h.s8.bf16 %v519_v50  ;;  %v728_v25 = vld [vmem:[#allocation2 + $0x40] sm:$0xff] }
 0x22e   : > { %1521 = vmatprep.mubr.bf16.mxu1 %v635_v23 }
 0x22f   : > { %1619 = vst [vmem:[#allocation2 + $0x8] sm:$0xff] %v1555_v27  ;;  %v1018_v30 = vpop.f32.mrb[4].mxu0 }
 0x230   : > { %v1307_v32 = vpop.f32.mrb[4].mxu1  ;;  %v1020_v33 = vpop.f32.mrb[5].mxu0 }
 0x231   : > { %v1308_v35 = vadd.f32 %v1307_v32, %v1018_v30  ;;  %v1309_v36 = vpop.f32.mrb[5].mxu1  ;;  %v1021_v37 = vpop.f32.mrb[6].mxu0  ;;  %v646_v32 = vunpack.c.h.s8.bf16 %v518_v5  ;;  %v729_v33 = vld [vmem:[#allocation2 + $0x48] sm:$0xff]  ;;  %v734_v5 = vld [vmem:[#allocation2 + $0x70] sm:$0xff] }
 0x232   : > { %v1310_v41 = vpop.f32.mrb[6].mxu1  ;;  %v1023_v42 = vpop.f32.mrb[7].mxu0 }
 0x233   : > { %v1556_v44 = vadd.f32 %v1308_v35, %v722_v31  ;;  %v1311_v45 = vadd.f32 %v1310_v41, %v1021_v37  ;;  %v1312_v46 = vpop.f32.mrb[7].mxu1  ;;  %v730_v41 = vld [vmem:[#allocation2 + $0x50] sm:$0xff] }
 0x234   : > { %1233 = vmatmul.mubr.bf16.gmra.mrb[112].mxu0 %v632_v34 }
 0x235   : > { %1620 = vst [vmem:[#allocation2 + $0x10] sm:$0xff] %v1556_v44  ;;  %v1557_v47 = vadd.f32 %v1311_v45, %v723_v40  ;;  %1522 = vmatmul.mubr.bf16.gmra.mrb[112].mxu1 %v634_v38  ;;  %1240 = vmatprep.mubr.bf16.mxu0 %v637_v39 }
 0x236   : > { %1529 = vmatprep.mubr.bf16.mxu1 %v639_v43 }
 0x237   : > { %1621 = vst [vmem:[#allocation2 + $0x18] sm:$0xff] %v1557_v47  ;;  %v1026_v49 = vpop.f32.mrb[8].mxu0  ;;  %v731_v47 = vld [vmem:[#allocation2 + $0x58] sm:$0xff] }
 0x238   : > { %v1315_v52 = vpop.f32.mrb[8].mxu1  ;;  %v1028_v53 = vpop.f32.mrb[9].mxu0 }
 0x239   : > { %v1316_v55 = vadd.f32 %v1315_v52, %v1026_v49  ;;  %v1317_v56 = vpop.f32.mrb[9].mxu1  ;;  %v1029_v57 = vpop.f32.mrb[10].mxu0 }
 0x23a   : > { %v1318_v61 = vpop.f32.mrb[10].mxu1  ;;  %v1031_v62 = vpop.f32.mrb[11].mxu0 }
 0x23b   : > { %v1558_v0 = vadd.f32 %v1316_v55, %v724_v51  ;;  %v1319_v1 = vadd.f32 %v1318_v61, %v1029_v57  ;;  %v1320_v2 = vpop.f32.mrb[11].mxu1  ;;  %v732_v55 = vld [vmem:[#allocation2 + $0x60] sm:$0xff]  ;;  %v733_v61 = vld [vmem:[#allocation2 + $0x68] sm:$0xff] }
 0x23c   : > { %1241 = vmatmul.mubr.bf16.gmra.mrb[116].mxu0 %v636_v54 }
 0x23d   : > { %1622 = vst [vmem:[#allocation2 + $0x20] sm:$0xff] %v1558_v0  ;;  %v1559_v3 = vadd.f32 %v1319_v1, %v725_v60  ;;  %1530 = vmatmul.mubr.bf16.gmra.mrb[116].mxu1 %v638_v58  ;;  %1248 = vmatprep.mubr.bf16.mxu0 %v641_v59 }
 0x23e   : > { %1537 = vmatprep.mubr.bf16.mxu1 %v643_v63 }
 0x23f   : > { %1623 = vst [vmem:[#allocation2 + $0x28] sm:$0xff] %v1559_v3  ;;  %v1034_v6 = vpop.f32.mrb[12].mxu0 }
 0x240   : > { %v1323_v8 = vpop.f32.mrb[12].mxu1  ;;  %v1036_v9 = vpop.f32.mrb[13].mxu0 }
 0x241   : > { %v1324_v11 = vadd.f32 %v1323_v8, %v1034_v6  ;;  %v1325_v12 = vpop.f32.mrb[13].mxu1  ;;  %v1037_v13 = vpop.f32.mrb[14].mxu0 }
 0x242   : > { %v1326_v17 = vpop.f32.mrb[14].mxu1  ;;  %v1039_v18 = vpop.f32.mrb[15].mxu0 }
 0x243   : > { %v1560_v20 = vadd.f32 %v1324_v11, %v726_v7  ;;  %v1327_v21 = vadd.f32 %v1326_v17, %v1037_v13  ;;  %v1328_v22 = vpop.f32.mrb[15].mxu1  ;;  %v735_v11 = vld [vmem:[#allocation2 + $0x78] sm:$0xff] }
 0x244   : > { %1249 = vmatmul.mubr.bf16.gmra.mrb[120].mxu0 %v640_v10 }
 0x245   : > { %1624 = vst [vmem:[#allocation2 + $0x30] sm:$0xff] %v1560_v20  ;;  %v1561_v23 = vadd.f32 %v1327_v21, %v727_v16  ;;  %1538 = vmatmul.mubr.bf16.gmra.mrb[120].mxu1 %v642_v14  ;;  %1256 = vmatprep.mubr.bf16.mxu0 %v645_v15 }
 0x246   : > { %1545 = vmatprep.mubr.bf16.mxu1 %v647_v19  ;;  %v736_v19 = vld [vmem:[#allocation2 + $0x80] sm:$0xff] }
 0x247   : > { %1625 = vst [vmem:[#allocation2 + $0x38] sm:$0xff] %v1561_v23  ;;  %v1042_v24 = vpop.f32.mrb[16].mxu0 }
 0x248   : > { %v1331_v26 = vpop.f32.mrb[16].mxu1  ;;  %v1044_v27 = vpop.f32.mrb[17].mxu0 }
 0x249   : > { %v1332_v29 = vadd.f32 %v1331_v26, %v1042_v24  ;;  %v1333_v30 = vpop.f32.mrb[17].mxu1  ;;  %v1045_v31 = vpop.f32.mrb[18].mxu0 }
 0x24a   : > { %v1334_v34 = vpop.f32.mrb[18].mxu1  ;;  %v1047_v35 = vpop.f32.mrb[19].mxu0 }
 0x24b   : > { %v1562_v36 = vadd.f32 %v1332_v29, %v728_v25  ;;  %v1335_v37 = vadd.f32 %v1334_v34, %v1045_v31  ;;  %v1336_v38 = vpop.f32.mrb[19].mxu1  ;;  %v737_v25 = vld [vmem:[#allocation2 + $0x88] sm:$0xff] }
 0x24c   : > { %1257 = vmatmul.mubr.bf16.gmra.mrb[124].mxu0 %v644_v28 }
 0x24d   : > { %1626 = vst [vmem:[#allocation2 + $0x40] sm:$0xff] %v1562_v36  ;;  %v1563_v39 = vadd.f32 %v1335_v37, %v729_v33  ;;  %1546 = vmatmul.mubr.bf16.gmra.mrb[124].mxu1 %v646_v32  ;;  %v738_v33 = vld [vmem:[#allocation2 + $0x90] sm:$0xff] }
 0x24f   : > { %1627 = vst [vmem:[#allocation2 + $0x48] sm:$0xff] %v1563_v39  ;;  %v1050_v40 = vpop.f32.mrb[20].mxu0  ;;  %v739_v39 = vld [vmem:[#allocation2 + $0x98] sm:$0xff] }
 0x250   : > { %v1339_v42 = vpop.f32.mrb[20].mxu1  ;;  %v1052_v43 = vpop.f32.mrb[21].mxu0 }
 0x251   : > { %v1340_v44 = vadd.f32 %v1339_v42, %v1050_v40  ;;  %v1341_v45 = vpop.f32.mrb[21].mxu1  ;;  %v1053_v46 = vpop.f32.mrb[22].mxu0 }
 0x252   : > { %v1342_v48 = vpop.f32.mrb[22].mxu1  ;;  %v1055_v49 = vpop.f32.mrb[23].mxu0 }
 0x253   : > { %v1564_v50 = vadd.f32 %v1340_v44, %v730_v41  ;;  %v1343_v51 = vadd.f32 %v1342_v48, %v1053_v46  ;;  %v1344_v52 = vpop.f32.mrb[23].mxu1 }
 0x255   : > { %1628 = vst [vmem:[#allocation2 + $0x50] sm:$0xff] %v1564_v50  ;;  %v1565_v53 = vadd.f32 %v1343_v51, %v731_v47  ;;  %v740_v47 = vld [vmem:[#allocation2 + $0xa0] sm:$0xff] }
 0x257   : > { %1629 = vst [vmem:[#allocation2 + $0x58] sm:$0xff] %v1565_v53  ;;  %v1058_v54 = vpop.f32.mrb[24].mxu0  ;;  %v741_v53 = vld [vmem:[#allocation2 + $0xa8] sm:$0xff] }
 0x258   : > { %v1347_v56 = vpop.f32.mrb[24].mxu1  ;;  %v1060_v57 = vpop.f32.mrb[25].mxu0 }
 0x259   : > { %v1348_v58 = vadd.f32 %v1347_v56, %v1058_v54  ;;  %v1349_v59 = vpop.f32.mrb[25].mxu1  ;;  %v1061_v60 = vpop.f32.mrb[26].mxu0 }
 0x25a   : > { %v1350_v62 = vpop.f32.mrb[26].mxu1  ;;  %v1063_v63 = vpop.f32.mrb[27].mxu0 }
 0x25b   : > { %v1566_v0 = vadd.f32 %v1348_v58, %v732_v55  ;;  %v1351_v1 = vadd.f32 %v1350_v62, %v1061_v60  ;;  %v1352_v2 = vpop.f32.mrb[27].mxu1 }
 0x25d   : > { %1630 = vst [vmem:[#allocation2 + $0x60] sm:$0xff] %v1566_v0  ;;  %v1567_v3 = vadd.f32 %v1351_v1, %v733_v61  ;;  %v742_v61 = vld [vmem:[#allocation2 + $0xb0] sm:$0xff] }
 0x25f   : > { %1631 = vst [vmem:[#allocation2 + $0x68] sm:$0xff] %v1567_v3  ;;  %v1066_v4 = vpop.f32.mrb[28].mxu0  ;;  %v743_v3 = vld [vmem:[#allocation2 + $0xb8] sm:$0xff] }
 0x260   : > { %v1355_v6 = vpop.f32.mrb[28].mxu1  ;;  %v1068_v7 = vpop.f32.mrb[29].mxu0 }
 0x261   : > { %v1356_v8 = vadd.f32 %v1355_v6, %v1066_v4  ;;  %v1357_v9 = vpop.f32.mrb[29].mxu1  ;;  %v1069_v10 = vpop.f32.mrb[30].mxu0 }
 0x262   : > { %v1358_v12 = vpop.f32.mrb[30].mxu1  ;;  %v1071_v13 = vpop.f32.mrb[31].mxu0 }
 0x263   : > { %v1568_v14 = vadd.f32 %v1356_v8, %v734_v5  ;;  %v1359_v15 = vadd.f32 %v1358_v12, %v1069_v10  ;;  %v1360_v16 = vpop.f32.mrb[31].mxu1 }
 0x265   : > { %1632 = vst [vmem:[#allocation2 + $0x70] sm:$0xff] %v1568_v14  ;;  %v1569_v17 = vadd.f32 %v1359_v15, %v735_v11  ;;  %v744_v11 = vld [vmem:[#allocation2 + $0xc0] sm:$0xff] }
 0x267   : > { %1633 = vst [vmem:[#allocation2 + $0x78] sm:$0xff] %v1569_v17  ;;  %v1074_v18 = vpop.f32.mrb[32].mxu0  ;;  %v745_v17 = vld [vmem:[#allocation2 + $0xc8] sm:$0xff] }
 0x268   : > { %v1363_v20 = vpop.f32.mrb[32].mxu1  ;;  %v1076_v21 = vpop.f32.mrb[33].mxu0 }
 0x269   : > { %v1364_v22 = vadd.f32 %v1363_v20, %v1074_v18  ;;  %v1365_v23 = vpop.f32.mrb[33].mxu1  ;;  %v1077_v24 = vpop.f32.mrb[34].mxu0 }
 0x26a   : > { %v1366_v26 = vpop.f32.mrb[34].mxu1  ;;  %v1079_v27 = vpop.f32.mrb[35].mxu0 }
 0x26b   : > { %v1570_v28 = vadd.f32 %v1364_v22, %v736_v19  ;;  %v1367_v29 = vadd.f32 %v1366_v26, %v1077_v24  ;;  %v1368_v30 = vpop.f32.mrb[35].mxu1 }
 0x26d   : > { %1634 = vst [vmem:[#allocation2 + $0x80] sm:$0xff] %v1570_v28  ;;  %v1571_v31 = vadd.f32 %v1367_v29, %v737_v25  ;;  %v746_v25 = vld [vmem:[#allocation2 + $0xd0] sm:$0xff] }
 0x26f   : > { %1635 = vst [vmem:[#allocation2 + $0x88] sm:$0xff] %v1571_v31  ;;  %v1082_v32 = vpop.f32.mrb[36].mxu0  ;;  %v747_v31 = vld [vmem:[#allocation2 + $0xd8] sm:$0xff] }
 0x270   : > { %v1371_v34 = vpop.f32.mrb[36].mxu1  ;;  %v1084_v35 = vpop.f32.mrb[37].mxu0 }
 0x271   : > { %v1372_v36 = vadd.f32 %v1371_v34, %v1082_v32  ;;  %v1373_v37 = vpop.f32.mrb[37].mxu1  ;;  %v1085_v38 = vpop.f32.mrb[38].mxu0 }
 0x272   : > { %v1374_v40 = vpop.f32.mrb[38].mxu1  ;;  %v1087_v41 = vpop.f32.mrb[39].mxu0 }
 0x273   : > { %v1572_v42 = vadd.f32 %v1372_v36, %v738_v33  ;;  %v1375_v43 = vadd.f32 %v1374_v40, %v1085_v38  ;;  %v1376_v44 = vpop.f32.mrb[39].mxu1 }
 0x275   : > { %1636 = vst [vmem:[#allocation2 + $0x90] sm:$0xff] %v1572_v42  ;;  %v1573_v45 = vadd.f32 %v1375_v43, %v739_v39  ;;  %v748_v39 = vld [vmem:[#allocation2 + $0xe0] sm:$0xff] }
 0x277   : > { %1637 = vst [vmem:[#allocation2 + $0x98] sm:$0xff] %v1573_v45  ;;  %v1090_v46 = vpop.f32.mrb[40].mxu0  ;;  %v749_v45 = vld [vmem:[#allocation2 + $0xe8] sm:$0xff] }
 0x278   : > { %v1379_v48 = vpop.f32.mrb[40].mxu1  ;;  %v1092_v49 = vpop.f32.mrb[41].mxu0 }
 0x279   : > { %v1380_v50 = vadd.f32 %v1379_v48, %v1090_v46  ;;  %v1381_v51 = vpop.f32.mrb[41].mxu1  ;;  %v1093_v52 = vpop.f32.mrb[42].mxu0 }
 0x27a   : > { %v1382_v54 = vpop.f32.mrb[42].mxu1  ;;  %v1095_v55 = vpop.f32.mrb[43].mxu0 }
 0x27b   : > { %v1574_v56 = vadd.f32 %v1380_v50, %v740_v47  ;;  %v1383_v57 = vadd.f32 %v1382_v54, %v1093_v52  ;;  %v1384_v58 = vpop.f32.mrb[43].mxu1 }
 0x27d   : > { %1638 = vst [vmem:[#allocation2 + $0xa0] sm:$0xff] %v1574_v56  ;;  %v1575_v59 = vadd.f32 %v1383_v57, %v741_v53  ;;  %v750_v53 = vld [vmem:[#allocation2 + $0xf0] sm:$0xff] }
 0x27f   : > { %1639 = vst [vmem:[#allocation2 + $0xa8] sm:$0xff] %v1575_v59  ;;  %v1098_v60 = vpop.f32.mrb[44].mxu0  ;;  %v751_v59 = vld [vmem:[#allocation2 + $0xf8] sm:$0xff] }
 0x280   : > { %v1387_v62 = vpop.f32.mrb[44].mxu1  ;;  %v1100_v63 = vpop.f32.mrb[45].mxu0 }
 0x281   : > { %v1388_v0 = vadd.f32 %v1387_v62, %v1098_v60  ;;  %v1389_v1 = vpop.f32.mrb[45].mxu1  ;;  %v1101_v2 = vpop.f32.mrb[46].mxu0 }
 0x282   : > { %v1390_v4 = vpop.f32.mrb[46].mxu1  ;;  %v1103_v5 = vpop.f32.mrb[47].mxu0 }
 0x283   : > { %v1576_v6 = vadd.f32 %v1388_v0, %v742_v61  ;;  %v1391_v7 = vadd.f32 %v1390_v4, %v1101_v2  ;;  %v1392_v8 = vpop.f32.mrb[47].mxu1 }
 0x285   : > { %1640 = vst [vmem:[#allocation2 + $0xb0] sm:$0xff] %v1576_v6  ;;  %v1577_v9 = vadd.f32 %v1391_v7, %v743_v3  ;;  %v752_v3 = vld [vmem:[#allocation2 + $0x100] sm:$0xff] }
 0x287   : > { %1641 = vst [vmem:[#allocation2 + $0xb8] sm:$0xff] %v1577_v9  ;;  %v1106_v10 = vpop.f32.mrb[48].mxu0  ;;  %v753_v9 = vld [vmem:[#allocation2 + $0x108] sm:$0xff] }
 0x288   : > { %v1395_v12 = vpop.f32.mrb[48].mxu1  ;;  %v1108_v13 = vpop.f32.mrb[49].mxu0 }
 0x289   : > { %v1396_v14 = vadd.f32 %v1395_v12, %v1106_v10  ;;  %v1397_v15 = vpop.f32.mrb[49].mxu1  ;;  %v1109_v16 = vpop.f32.mrb[50].mxu0 }
 0x28a   : > { %v1398_v18 = vpop.f32.mrb[50].mxu1  ;;  %v1111_v19 = vpop.f32.mrb[51].mxu0 }
 0x28b   : > { %v1578_v20 = vadd.f32 %v1396_v14, %v744_v11  ;;  %v1399_v21 = vadd.f32 %v1398_v18, %v1109_v16  ;;  %v1400_v22 = vpop.f32.mrb[51].mxu1 }
 0x28d   : > { %1642 = vst [vmem:[#allocation2 + $0xc0] sm:$0xff] %v1578_v20  ;;  %v1579_v23 = vadd.f32 %v1399_v21, %v745_v17  ;;  %v754_v17 = vld [vmem:[#allocation2 + $0x110] sm:$0xff] }
 0x28f   : > { %1643 = vst [vmem:[#allocation2 + $0xc8] sm:$0xff] %v1579_v23  ;;  %v1114_v24 = vpop.f32.mrb[52].mxu0  ;;  %v755_v23 = vld [vmem:[#allocation2 + $0x118] sm:$0xff] }
 0x290   : > { %v1403_v26 = vpop.f32.mrb[52].mxu1  ;;  %v1116_v27 = vpop.f32.mrb[53].mxu0 }
 0x291   : > { %v1404_v28 = vadd.f32 %v1403_v26, %v1114_v24  ;;  %v1405_v29 = vpop.f32.mrb[53].mxu1  ;;  %v1117_v30 = vpop.f32.mrb[54].mxu0 }
 0x292   : > { %v1406_v32 = vpop.f32.mrb[54].mxu1  ;;  %v1119_v33 = vpop.f32.mrb[55].mxu0 }
 0x293   : > { %v1580_v34 = vadd.f32 %v1404_v28, %v746_v25  ;;  %v1407_v35 = vadd.f32 %v1406_v32, %v1117_v30  ;;  %v1408_v36 = vpop.f32.mrb[55].mxu1 }
 0x295   : > { %1644 = vst [vmem:[#allocation2 + $0xd0] sm:$0xff] %v1580_v34  ;;  %v1581_v37 = vadd.f32 %v1407_v35, %v747_v31  ;;  %v756_v31 = vld [vmem:[#allocation2 + $0x120] sm:$0xff] }
 0x297   : > { %1645 = vst [vmem:[#allocation2 + $0xd8] sm:$0xff] %v1581_v37  ;;  %v1122_v38 = vpop.f32.mrb[56].mxu0  ;;  %v757_v37 = vld [vmem:[#allocation2 + $0x128] sm:$0xff] }
 0x298   : > { %v1411_v40 = vpop.f32.mrb[56].mxu1  ;;  %v1124_v41 = vpop.f32.mrb[57].mxu0 }
 0x299   : > { %v1412_v42 = vadd.f32 %v1411_v40, %v1122_v38  ;;  %v1413_v43 = vpop.f32.mrb[57].mxu1  ;;  %v1125_v44 = vpop.f32.mrb[58].mxu0 }
 0x29a   : > { %v1414_v46 = vpop.f32.mrb[58].mxu1  ;;  %v1127_v47 = vpop.f32.mrb[59].mxu0 }
 0x29b   : > { %v1582_v48 = vadd.f32 %v1412_v42, %v748_v39  ;;  %v1415_v49 = vadd.f32 %v1414_v46, %v1125_v44  ;;  %v1416_v50 = vpop.f32.mrb[59].mxu1 }
 0x29d   : > { %1646 = vst [vmem:[#allocation2 + $0xe0] sm:$0xff] %v1582_v48  ;;  %v1583_v51 = vadd.f32 %v1415_v49, %v749_v45  ;;  %v758_v45 = vld [vmem:[#allocation2 + $0x130] sm:$0xff] }
 0x29f   : > { %1647 = vst [vmem:[#allocation2 + $0xe8] sm:$0xff] %v1583_v51  ;;  %v1130_v52 = vpop.f32.mrb[60].mxu0  ;;  %v759_v51 = vld [vmem:[#allocation2 + $0x138] sm:$0xff] }
 0x2a0   : > { %v1419_v54 = vpop.f32.mrb[60].mxu1  ;;  %v1132_v55 = vpop.f32.mrb[61].mxu0 }
 0x2a1   : > { %v1420_v56 = vadd.f32 %v1419_v54, %v1130_v52  ;;  %v1421_v57 = vpop.f32.mrb[61].mxu1  ;;  %v1133_v58 = vpop.f32.mrb[62].mxu0 }
 0x2a2   : > { %v1422_v60 = vpop.f32.mrb[62].mxu1  ;;  %v1135_v61 = vpop.f32.mrb[63].mxu0 }
 0x2a3   : > { %v1584_v62 = vadd.f32 %v1420_v56, %v750_v53  ;;  %v1423_v63 = vadd.f32 %v1422_v60, %v1133_v58  ;;  %v1424_v0 = vpop.f32.mrb[63].mxu1 }
 0x2a5   : > { %1648 = vst [vmem:[#allocation2 + $0xf0] sm:$0xff] %v1584_v62  ;;  %v1585_v1 = vadd.f32 %v1423_v63, %v751_v59  ;;  %v760_v59 = vld [vmem:[#allocation2 + $0x140] sm:$0xff] }
 0x2a7   : > { %1649 = vst [vmem:[#allocation2 + $0xf8] sm:$0xff] %v1585_v1  ;;  %v1138_v2 = vpop.f32.mrb[64].mxu0  ;;  %v761_v1 = vld [vmem:[#allocation2 + $0x148] sm:$0xff] }
 0x2a8   : > { %v1427_v4 = vpop.f32.mrb[64].mxu1  ;;  %v1140_v5 = vpop.f32.mrb[65].mxu0 }
 0x2a9   : > { %v1428_v6 = vadd.f32 %v1427_v4, %v1138_v2  ;;  %v1429_v7 = vpop.f32.mrb[65].mxu1  ;;  %v1141_v8 = vpop.f32.mrb[66].mxu0 }
 0x2aa   : > { %v1430_v10 = vpop.f32.mrb[66].mxu1  ;;  %v1143_v11 = vpop.f32.mrb[67].mxu0 }
 0x2ab   : > { %v1586_v12 = vadd.f32 %v1428_v6, %v752_v3  ;;  %v1431_v13 = vadd.f32 %v1430_v10, %v1141_v8  ;;  %v1432_v14 = vpop.f32.mrb[67].mxu1 }
 0x2ad   : > { %1650 = vst [vmem:[#allocation2 + $0x100] sm:$0xff] %v1586_v12  ;;  %v1587_v15 = vadd.f32 %v1431_v13, %v753_v9  ;;  %v762_v9 = vld [vmem:[#allocation2 + $0x150] sm:$0xff] }
 0x2af   : > { %1651 = vst [vmem:[#allocation2 + $0x108] sm:$0xff] %v1587_v15  ;;  %v1146_v16 = vpop.f32.mrb[68].mxu0  ;;  %v763_v15 = vld [vmem:[#allocation2 + $0x158] sm:$0xff] }
 0x2b0   : > { %v1435_v18 = vpop.f32.mrb[68].mxu1  ;;  %v1148_v19 = vpop.f32.mrb[69].mxu0 }
 0x2b1   : > { %v1436_v20 = vadd.f32 %v1435_v18, %v1146_v16  ;;  %v1437_v21 = vpop.f32.mrb[69].mxu1  ;;  %v1149_v22 = vpop.f32.mrb[70].mxu0 }
 0x2b2   : > { %v1438_v24 = vpop.f32.mrb[70].mxu1  ;;  %v1151_v25 = vpop.f32.mrb[71].mxu0 }
 0x2b3   : > { %v1588_v26 = vadd.f32 %v1436_v20, %v754_v17  ;;  %v1439_v27 = vadd.f32 %v1438_v24, %v1149_v22  ;;  %v1440_v28 = vpop.f32.mrb[71].mxu1 }
 0x2b5   : > { %1652 = vst [vmem:[#allocation2 + $0x110] sm:$0xff] %v1588_v26  ;;  %v1589_v29 = vadd.f32 %v1439_v27, %v755_v23  ;;  %v764_v23 = vld [vmem:[#allocation2 + $0x160] sm:$0xff] }
 0x2b7   : > { %1653 = vst [vmem:[#allocation2 + $0x118] sm:$0xff] %v1589_v29  ;;  %v1154_v30 = vpop.f32.mrb[72].mxu0  ;;  %v765_v29 = vld [vmem:[#allocation2 + $0x168] sm:$0xff] }
 0x2b8   : > { %v1443_v32 = vpop.f32.mrb[72].mxu1  ;;  %v1156_v33 = vpop.f32.mrb[73].mxu0 }
 0x2b9   : > { %v1444_v34 = vadd.f32 %v1443_v32, %v1154_v30  ;;  %v1445_v35 = vpop.f32.mrb[73].mxu1  ;;  %v1157_v36 = vpop.f32.mrb[74].mxu0 }
 0x2ba   : > { %v1446_v38 = vpop.f32.mrb[74].mxu1  ;;  %v1159_v39 = vpop.f32.mrb[75].mxu0 }
 0x2bb   : > { %v1590_v40 = vadd.f32 %v1444_v34, %v756_v31  ;;  %v1447_v41 = vadd.f32 %v1446_v38, %v1157_v36  ;;  %v1448_v42 = vpop.f32.mrb[75].mxu1 }
 0x2bd   : > { %1654 = vst [vmem:[#allocation2 + $0x120] sm:$0xff] %v1590_v40  ;;  %v1591_v43 = vadd.f32 %v1447_v41, %v757_v37  ;;  %v766_v37 = vld [vmem:[#allocation2 + $0x170] sm:$0xff] }
 0x2bf   : > { %1655 = vst [vmem:[#allocation2 + $0x128] sm:$0xff] %v1591_v43  ;;  %v1162_v44 = vpop.f32.mrb[76].mxu0  ;;  %v767_v43 = vld [vmem:[#allocation2 + $0x178] sm:$0xff] }
 0x2c0   : > { %v1451_v46 = vpop.f32.mrb[76].mxu1  ;;  %v1164_v47 = vpop.f32.mrb[77].mxu0 }
 0x2c1   : > { %v1452_v48 = vadd.f32 %v1451_v46, %v1162_v44  ;;  %v1453_v49 = vpop.f32.mrb[77].mxu1  ;;  %v1165_v50 = vpop.f32.mrb[78].mxu0 }
 0x2c2   : > { %v1454_v52 = vpop.f32.mrb[78].mxu1  ;;  %v1167_v53 = vpop.f32.mrb[79].mxu0 }
 0x2c3   : > { %v1592_v54 = vadd.f32 %v1452_v48, %v758_v45  ;;  %v1455_v55 = vadd.f32 %v1454_v52, %v1165_v50  ;;  %v1456_v56 = vpop.f32.mrb[79].mxu1 }
 0x2c5   : > { %1656 = vst [vmem:[#allocation2 + $0x130] sm:$0xff] %v1592_v54  ;;  %v1593_v57 = vadd.f32 %v1455_v55, %v759_v51  ;;  %v768_v51 = vld [vmem:[#allocation2 + $0x180] sm:$0xff] }
 0x2c7   : > { %1657 = vst [vmem:[#allocation2 + $0x138] sm:$0xff] %v1593_v57  ;;  %v1170_v58 = vpop.f32.mrb[80].mxu0  ;;  %v769_v57 = vld [vmem:[#allocation2 + $0x188] sm:$0xff] }
 0x2c8   : > { %v1459_v60 = vpop.f32.mrb[80].mxu1  ;;  %v1172_v61 = vpop.f32.mrb[81].mxu0 }
 0x2c9   : > { %v1460_v62 = vadd.f32 %v1459_v60, %v1170_v58  ;;  %v1461_v63 = vpop.f32.mrb[81].mxu1  ;;  %v1173_v0 = vpop.f32.mrb[82].mxu0 }
 0x2ca   : > { %v1462_v2 = vpop.f32.mrb[82].mxu1  ;;  %v1175_v3 = vpop.f32.mrb[83].mxu0 }
 0x2cb   : > { %v1594_v4 = vadd.f32 %v1460_v62, %v760_v59  ;;  %v1463_v5 = vadd.f32 %v1462_v2, %v1173_v0  ;;  %v1464_v6 = vpop.f32.mrb[83].mxu1 }
 0x2cd   : > { %1658 = vst [vmem:[#allocation2 + $0x140] sm:$0xff] %v1594_v4  ;;  %v1595_v7 = vadd.f32 %v1463_v5, %v761_v1  ;;  %v770_v1 = vld [vmem:[#allocation2 + $0x190] sm:$0xff] }
 0x2cf   : > { %1659 = vst [vmem:[#allocation2 + $0x148] sm:$0xff] %v1595_v7  ;;  %v1178_v8 = vpop.f32.mrb[84].mxu0  ;;  %v771_v7 = vld [vmem:[#allocation2 + $0x198] sm:$0xff] }
 0x2d0   : > { %v1467_v10 = vpop.f32.mrb[84].mxu1  ;;  %v1180_v11 = vpop.f32.mrb[85].mxu0 }
 0x2d1   : > { %v1468_v12 = vadd.f32 %v1467_v10, %v1178_v8  ;;  %v1469_v13 = vpop.f32.mrb[85].mxu1  ;;  %v1181_v14 = vpop.f32.mrb[86].mxu0 }
 0x2d2   : > { %v1470_v16 = vpop.f32.mrb[86].mxu1  ;;  %v1183_v17 = vpop.f32.mrb[87].mxu0 }
 0x2d3   : > { %v1596_v18 = vadd.f32 %v1468_v12, %v762_v9  ;;  %v1471_v19 = vadd.f32 %v1470_v16, %v1181_v14  ;;  %v1472_v20 = vpop.f32.mrb[87].mxu1 }
 0x2d5   : > { %1660 = vst [vmem:[#allocation2 + $0x150] sm:$0xff] %v1596_v18  ;;  %v1597_v21 = vadd.f32 %v1471_v19, %v763_v15  ;;  %v772_v15 = vld [vmem:[#allocation2 + $0x1a0] sm:$0xff] }
 0x2d7   : > { %1661 = vst [vmem:[#allocation2 + $0x158] sm:$0xff] %v1597_v21  ;;  %v1186_v22 = vpop.f32.mrb[88].mxu0  ;;  %v773_v21 = vld [vmem:[#allocation2 + $0x1a8] sm:$0xff] }
 0x2d8   : > { %v1475_v24 = vpop.f32.mrb[88].mxu1  ;;  %v1188_v25 = vpop.f32.mrb[89].mxu0 }
 0x2d9   : > { %v1476_v26 = vadd.f32 %v1475_v24, %v1186_v22  ;;  %v1477_v27 = vpop.f32.mrb[89].mxu1  ;;  %v1189_v28 = vpop.f32.mrb[90].mxu0 }
 0x2da   : > { %v1478_v30 = vpop.f32.mrb[90].mxu1  ;;  %v1191_v31 = vpop.f32.mrb[91].mxu0 }
 0x2db   : > { %v1598_v32 = vadd.f32 %v1476_v26, %v764_v23  ;;  %v1479_v33 = vadd.f32 %v1478_v30, %v1189_v28  ;;  %v1480_v34 = vpop.f32.mrb[91].mxu1 }
 0x2dd   : > { %1662 = vst [vmem:[#allocation2 + $0x160] sm:$0xff] %v1598_v32  ;;  %v1599_v35 = vadd.f32 %v1479_v33, %v765_v29  ;;  %v774_v29 = vld [vmem:[#allocation2 + $0x1b0] sm:$0xff] }
 0x2df   : > { %1663 = vst [vmem:[#allocation2 + $0x168] sm:$0xff] %v1599_v35  ;;  %v1194_v36 = vpop.f32.mrb[92].mxu0  ;;  %v775_v35 = vld [vmem:[#allocation2 + $0x1b8] sm:$0xff] }
 0x2e0   : > { %v1483_v38 = vpop.f32.mrb[92].mxu1  ;;  %v1196_v39 = vpop.f32.mrb[93].mxu0 }
 0x2e1   : > { %v1484_v40 = vadd.f32 %v1483_v38, %v1194_v36  ;;  %v1485_v41 = vpop.f32.mrb[93].mxu1  ;;  %v1197_v42 = vpop.f32.mrb[94].mxu0 }
 0x2e2   : > { %v1486_v44 = vpop.f32.mrb[94].mxu1  ;;  %v1199_v45 = vpop.f32.mrb[95].mxu0 }
 0x2e3   : > { %v1600_v46 = vadd.f32 %v1484_v40, %v766_v37  ;;  %v1487_v47 = vadd.f32 %v1486_v44, %v1197_v42  ;;  %v1488_v48 = vpop.f32.mrb[95].mxu1 }
 0x2e5   : > { %1664 = vst [vmem:[#allocation2 + $0x170] sm:$0xff] %v1600_v46  ;;  %v1601_v49 = vadd.f32 %v1487_v47, %v767_v43  ;;  %v776_v43 = vld [vmem:[#allocation2 + $0x1c0] sm:$0xff] }
 0x2e7   : > { %1665 = vst [vmem:[#allocation2 + $0x178] sm:$0xff] %v1601_v49  ;;  %v1202_v50 = vpop.f32.mrb[96].mxu0  ;;  %v777_v49 = vld [vmem:[#allocation2 + $0x1c8] sm:$0xff] }
 0x2e8   : > { %v1491_v52 = vpop.f32.mrb[96].mxu1  ;;  %v1204_v53 = vpop.f32.mrb[97].mxu0 }
 0x2e9   : > { %v1492_v54 = vadd.f32 %v1491_v52, %v1202_v50  ;;  %v1493_v55 = vpop.f32.mrb[97].mxu1  ;;  %v1205_v56 = vpop.f32.mrb[98].mxu0 }
 0x2ea   : > { %v1494_v58 = vpop.f32.mrb[98].mxu1  ;;  %v1207_v59 = vpop.f32.mrb[99].mxu0 }
 0x2eb   : > { %v1602_v60 = vadd.f32 %v1492_v54, %v768_v51  ;;  %v1495_v61 = vadd.f32 %v1494_v58, %v1205_v56  ;;  %v1496_v62 = vpop.f32.mrb[99].mxu1 }
 0x2ed   : > { %1666 = vst [vmem:[#allocation2 + $0x180] sm:$0xff] %v1602_v60  ;;  %v1603_v63 = vadd.f32 %v1495_v61, %v769_v57  ;;  %v778_v57 = vld [vmem:[#allocation2 + $0x1d0] sm:$0xff] }
 0x2ef   : > { %1667 = vst [vmem:[#allocation2 + $0x188] sm:$0xff] %v1603_v63  ;;  %v1210_v0 = vpop.f32.mrb[100].mxu0  ;;  %v779_v63 = vld [vmem:[#allocation2 + $0x1d8] sm:$0xff] }
 0x2f0   : > { %v1499_v2 = vpop.f32.mrb[100].mxu1  ;;  %v1212_v3 = vpop.f32.mrb[101].mxu0 }
 0x2f1   : > { %v1500_v4 = vadd.f32 %v1499_v2, %v1210_v0  ;;  %v1501_v5 = vpop.f32.mrb[101].mxu1  ;;  %v1213_v6 = vpop.f32.mrb[102].mxu0 }
 0x2f2   : > { %v1502_v8 = vpop.f32.mrb[102].mxu1  ;;  %v1215_v9 = vpop.f32.mrb[103].mxu0 }
 0x2f3   : > { %v1604_v10 = vadd.f32 %v1500_v4, %v770_v1  ;;  %v1503_v11 = vadd.f32 %v1502_v8, %v1213_v6  ;;  %v1504_v12 = vpop.f32.mrb[103].mxu1 }
 0x2f5   : > { %1668 = vst [vmem:[#allocation2 + $0x190] sm:$0xff] %v1604_v10  ;;  %v1605_v13 = vadd.f32 %v1503_v11, %v771_v7  ;;  %v780_v7 = vld [vmem:[#allocation2 + $0x1e0] sm:$0xff] }
 0x2f7   : > { %1669 = vst [vmem:[#allocation2 + $0x198] sm:$0xff] %v1605_v13  ;;  %v1218_v14 = vpop.f32.mrb[104].mxu0  ;;  %v781_v13 = vld [vmem:[#allocation2 + $0x1e8] sm:$0xff] }
 0x2f8   : > { %v1507_v16 = vpop.f32.mrb[104].mxu1  ;;  %v1220_v17 = vpop.f32.mrb[105].mxu0 }
 0x2f9   : > { %v1508_v18 = vadd.f32 %v1507_v16, %v1218_v14  ;;  %v1509_v19 = vpop.f32.mrb[105].mxu1  ;;  %v1221_v20 = vpop.f32.mrb[106].mxu0 }
 0x2fa   : > { %v1510_v22 = vpop.f32.mrb[106].mxu1  ;;  %v1223_v23 = vpop.f32.mrb[107].mxu0 }
 0x2fb   : > { %v1606_v24 = vadd.f32 %v1508_v18, %v772_v15  ;;  %v1511_v25 = vadd.f32 %v1510_v22, %v1221_v20  ;;  %v1512_v26 = vpop.f32.mrb[107].mxu1 }
 0x2fd   : > { %1670 = vst [vmem:[#allocation2 + $0x1a0] sm:$0xff] %v1606_v24  ;;  %v1607_v27 = vadd.f32 %v1511_v25, %v773_v21  ;;  %v782_v21 = vld [vmem:[#allocation2 + $0x1f0] sm:$0xff] }
 0x2ff   : > { %1671 = vst [vmem:[#allocation2 + $0x1a8] sm:$0xff] %v1607_v27  ;;  %v1226_v28 = vpop.f32.mrb[108].mxu0  ;;  %v783_v27 = vld [vmem:[#allocation2 + $0x1f8] sm:$0xff] }
 0x300   : > { %v1515_v30 = vpop.f32.mrb[108].mxu1  ;;  %v1228_v31 = vpop.f32.mrb[109].mxu0 }
 0x301   : > { %v1516_v32 = vadd.f32 %v1515_v30, %v1226_v28  ;;  %v1517_v33 = vpop.f32.mrb[109].mxu1  ;;  %v1229_v34 = vpop.f32.mrb[110].mxu0 }
 0x302   : > { %v1518_v36 = vpop.f32.mrb[110].mxu1  ;;  %v1231_v37 = vpop.f32.mrb[111].mxu0 }
 0x303   : > { %v1608_v38 = vadd.f32 %v1516_v32, %v774_v29  ;;  %v1519_v39 = vadd.f32 %v1518_v36, %v1229_v34  ;;  %v1520_v40 = vpop.f32.mrb[111].mxu1 }
 0x305   : > { %1672 = vst [vmem:[#allocation2 + $0x1b0] sm:$0xff] %v1608_v38  ;;  %v1609_v41 = vadd.f32 %v1519_v39, %v775_v35 }
 0x307   : > { %1673 = vst [vmem:[#allocation2 + $0x1b8] sm:$0xff] %v1609_v41  ;;  %v1234_v42 = vpop.f32.mrb[112].mxu0 }
 0x308   : > { %v1523_v44 = vpop.f32.mrb[112].mxu1  ;;  %v1236_v45 = vpop.f32.mrb[113].mxu0 }
 0x309   : > { %v1524_v46 = vadd.f32 %v1523_v44, %v1234_v42  ;;  %v1525_v47 = vpop.f32.mrb[113].mxu1  ;;  %v1237_v48 = vpop.f32.mrb[114].mxu0 }
 0x30a   : > { %v1526_v50 = vpop.f32.mrb[114].mxu1  ;;  %v1239_v51 = vpop.f32.mrb[115].mxu0 }
 0x30b   : > { %v1610_v52 = vadd.f32 %v1524_v46, %v776_v43  ;;  %v1527_v53 = vadd.f32 %v1526_v50, %v1237_v48  ;;  %v1528_v54 = vpop.f32.mrb[115].mxu1 }
 0x30d   : > { %1674 = vst [vmem:[#allocation2 + $0x1c0] sm:$0xff] %v1610_v52  ;;  %v1611_v55 = vadd.f32 %v1527_v53, %v777_v49 }
 0x30f   : > { %1675 = vst [vmem:[#allocation2 + $0x1c8] sm:$0xff] %v1611_v55  ;;  %v1242_v56 = vpop.f32.mrb[116].mxu0 }
 0x310   : > { %v1531_v58 = vpop.f32.mrb[116].mxu1  ;;  %v1244_v59 = vpop.f32.mrb[117].mxu0 }
 0x311   : > { %v1532_v60 = vadd.f32 %v1531_v58, %v1242_v56  ;;  %v1533_v61 = vpop.f32.mrb[117].mxu1  ;;  %v1245_v62 = vpop.f32.mrb[118].mxu0 }
 0x312   : > { %v1534_v0 = vpop.f32.mrb[118].mxu1  ;;  %v1247_v1 = vpop.f32.mrb[119].mxu0 }
 0x313   : > { %v1612_v2 = vadd.f32 %v1532_v60, %v778_v57  ;;  %v1535_v3 = vadd.f32 %v1534_v0, %v1245_v62  ;;  %v1536_v4 = vpop.f32.mrb[119].mxu1 }
 0x315   : > { %1676 = vst [vmem:[#allocation2 + $0x1d0] sm:$0xff] %v1612_v2  ;;  %v1613_v5 = vadd.f32 %v1535_v3, %v779_v63 }
 0x317   : > { %1677 = vst [vmem:[#allocation2 + $0x1d8] sm:$0xff] %v1613_v5  ;;  %v1250_v6 = vpop.f32.mrb[120].mxu0 }
 0x318   : > { %v1539_v8 = vpop.f32.mrb[120].mxu1  ;;  %v1252_v9 = vpop.f32.mrb[121].mxu0 }
 0x319   : > { %v1540_v10 = vadd.f32 %v1539_v8, %v1250_v6  ;;  %v1541_v11 = vpop.f32.mrb[121].mxu1  ;;  %v1253_v12 = vpop.f32.mrb[122].mxu0 }
 0x31a   : > { %v1542_v14 = vpop.f32.mrb[122].mxu1  ;;  %v1255_v15 = vpop.f32.mrb[123].mxu0 }
 0x31b   : > { %v1614_v16 = vadd.f32 %v1540_v10, %v780_v7  ;;  %v1543_v17 = vadd.f32 %v1542_v14, %v1253_v12  ;;  %v1544_v18 = vpop.f32.mrb[123].mxu1 }
 0x31d   : > { %1678 = vst [vmem:[#allocation2 + $0x1e0] sm:$0xff] %v1614_v16  ;;  %v1615_v19 = vadd.f32 %v1543_v17, %v781_v13 }
 0x31f   : > { %1679 = vst [vmem:[#allocation2 + $0x1e8] sm:$0xff] %v1615_v19  ;;  %v1258_v20 = vpop.f32.mrb[124].mxu0 }
 0x320   : > { %v1547_v22 = vpop.f32.mrb[124].mxu1  ;;  %v1260_v23 = vpop.f32.mrb[125].mxu0 }
 0x321   : > { %v1548_v24 = vadd.f32 %v1547_v22, %v1258_v20  ;;  %v1549_v25 = vpop.f32.mrb[125].mxu1  ;;  %v1261_v26 = vpop.f32.mrb[126].mxu0 }
 0x322   : > { %v1550_v28 = vpop.f32.mrb[126].mxu1  ;;  %v1263_v29 = vpop.f32.mrb[127].mxu0 }
 0x323   : > { %v1616_v30 = vadd.f32 %v1548_v24, %v782_v21  ;;  %v1551_v31 = vadd.f32 %v1550_v28, %v1261_v26  ;;  %v1552_v32 = vpop.f32.mrb[127].mxu1 }
 0x325   : > { %1680 = vst [vmem:[#allocation2 + $0x1f0] sm:$0xff] %v1616_v30  ;;  %v1617_v33 = vadd.f32 %v1551_v31, %v783_v27 }
 0x327   : > { %1681 = vst [vmem:[#allocation2 + $0x1f8] sm:$0xff] %v1617_v33 }
 0x328 PF: > { %s4241_s2 = sld [smem:[#allocation24_spill]] }
 0x32e   : > { %p2603_p8 = scmp.ne.s32.totalorder %s4241_s2, 1 }
 0x32f   : > { %v2934_v34 = vld [vmem:[#allocation13] sm:$0xff] (!%p2603_p8)   ;;  %v2935_v35 = vld [vmem:[#allocation13 + $0x8] sm:$0xff] (!%p2603_p8)   ;;  %v2936_v36 = vld [vmem:[#allocation13 + $0x10] sm:$0xff] (!%p2603_p8)   ;;  %s1686_s30 = sld [smem:[#allocation6]] (!%p2603_p8)  ;;  %s4242_s25 = sld [smem:[#allocation32_spill]] (!%p2603_p8) }
 0x330   : > { %1685 = sbr.rel (%p2603_p8) target bundleno = 1122 (0x462), region = 72  ;;  %2661 = vmatprep.subr.bf16.mxu0 (!%p2603_p8), %v2934_v34  ;;  %2741 = vmatprep.subr.bf16.mxu1 (!%p2603_p8), %v2934_v34  ;;  %v2937_v37 = vld [vmem:[#allocation13 + $0x18] sm:$0xff] (!%p2603_p8)   ;;  %v2938_v38 = vld [vmem:[#allocation13 + $0x20] sm:$0xff] (!%p2603_p8)   ;;  %v1689_v40 = vld [vmem:[%s3613_s12 + $0x8] sm:$0xff] (!%p2603_p8) }
 0x331   : > { %2662 = vmatpush3.bf16.msra.mxu0 (!%p2603_p8), %v2934_v34  ;;  %2749 = vmatpush3.bf16.msra.mxu1 (!%p2603_p8), %v2934_v34  ;;  %v1688_v39 = vld [vmem:[%s3613_s12] sm:$0xff] (!%p2603_p8)  ;;  %v1721_v42 = vld [vmem:[%s3613_s12 + $0x108] sm:$0xff] (!%p2603_p8)  ;;  %v1690_v53 = vld [vmem:[%s3613_s12 + $0x10] sm:$0xff] (!%p2603_p8) }
 0x332   : > { %2663 = vmatprep.subr.bf16.mxu0 (!%p2603_p8), %v2935_v35  ;;  %2742 = vmatprep.subr.bf16.mxu1 (!%p2603_p8), %v2935_v35  ;;  %v1720_v41 = vld [vmem:[%s3613_s12 + $0x100] sm:$0xff] (!%p2603_p8)  ;;  %v2939_v43 = vld [vmem:[#allocation13 + $0x28] sm:$0xff] (!%p2603_p8)   ;;  %v1691_v54 = vld [vmem:[%s3613_s12 + $0x18] sm:$0xff] (!%p2603_p8) }
 0x333   : > { %v1817_v45 = vld [vmem:[#allocation2] sm:$0xff] (!%p2603_p8)  ;;  %v1818_v46 = vld [vmem:[#allocation2 + $0x8] sm:$0xff] (!%p2603_p8)  ;;  %v1722_v55 = vld [vmem:[%s3613_s12 + $0x110] sm:$0xff] (!%p2603_p8) }
 0x334   : > { %v1849_v47 = vld [vmem:[#allocation2 + $0x100] sm:$0xff] (!%p2603_p8)  ;;  %v1850_v52 = vld [vmem:[#allocation2 + $0x108] sm:$0xff] (!%p2603_p8)  ;;  %v1723_v59 = vld [vmem:[%s3613_s12 + $0x118] sm:$0xff] (!%p2603_p8) }
 0x335   : > { %2664 = vmatpush3.bf16.msra.mxu0 (!%p2603_p8), %v2935_v35  ;;  %2750 = vmatpush3.bf16.msra.mxu1 (!%p2603_p8), %v2935_v35  ;;  %s1687_s7 = sadd.f32 (!%p2603_p8), 1.0, %s1686_s30  ;;  %v1692_v60 = vld [vmem:[%s3613_s12 + $0x20] sm:$0xff] (!%p2603_p8)  ;;  %v1693_v61 = vld [vmem:[%s3613_s12 + $0x28] sm:$0xff] (!%p2603_p8)  ;;  %v2940_v62 = vld [vmem:[#allocation13 + $0x30] sm:$0xff] (!%p2603_p8)  }
 0x336   : > { %2665 = vmatprep.subr.bf16.mxu0 (!%p2603_p8), %v2936_v36  ;;  %2743 = vmatprep.subr.bf16.mxu1 (!%p2603_p8), %v2936_v36  ;;  %v1724_v2 = vld [vmem:[%s3613_s12 + $0x120] sm:$0xff] (!%p2603_p8)  ;;  %v1725_v3 = vld [vmem:[%s3613_s12 + $0x128] sm:$0xff] (!%p2603_p8)  ;;  %v1819_v5 = vld [vmem:[#allocation2 + $0x10] sm:$0xff] (!%p2603_p8) }
 0x337   : > { %v3837_v44 = vstv %s1687_s7  ;;  %v1820_v6 = vld [vmem:[#allocation2 + $0x18] sm:$0xff]  ;;  %v1851_v10 = vld [vmem:[#allocation2 + $0x110] sm:$0xff]  ;;  %v1821_v14 = vld [vmem:[#allocation2 + $0x20] sm:$0xff] }
 0x338   : > { %v1753_v48 = vmul.f32 %v3837_v44, %v1688_v39  ;;  %v1754_v49 = vmul.f32 %v3837_v44, %v1689_v40  ;;  %v1785_v50 = vmul.f32 %v3837_v44, %v1720_v41  ;;  %v1786_v51 = vmul.f32 %v3837_v44, %v1721_v42  ;;  %v1852_v13 = vld [vmem:[#allocation2 + $0x118] sm:$0xff]  ;;  %v1822_v15 = vld [vmem:[#allocation2 + $0x28] sm:$0xff]  ;;  %v1853_v21 = vld [vmem:[#allocation2 + $0x120] sm:$0xff] }
 0x339   : > { %2666 = vmatpush3.bf16.msra.mxu0 %v2936_v36  ;;  %2751 = vmatpush3.bf16.msra.mxu1 %v2936_v36  ;;  %v1755_v0 = vmul.f32 %v3837_v44, %v1690_v53  ;;  %v1756_v1 = vmul.f32 %v3837_v44, %v1691_v54  ;;  %v1787_v7 = vmul.f32 %v3837_v44, %v1722_v55  ;;  %v2941_v18 = vld [vmem:[#allocation13 + $0x38] sm:$0xff]   ;;  %v1854_v22 = vld [vmem:[#allocation2 + $0x128] sm:$0xff]  ;;  %v1694_v23 = vld [vmem:[%s3613_s12 + $0x30] sm:$0xff] }
 0x33a   : > { %2667 = vmatprep.subr.bf16.mxu0 %v2937_v37  ;;  %2744 = vmatprep.subr.bf16.mxu1 %v2937_v37  ;;  %v1881_v56 = vadd.f32 %v1817_v45, %v1753_v48  ;;  %v1882_v57 = vadd.f32 %v1818_v46, %v1754_v49  ;;  %v1913_v58 = vadd.f32 %v1849_v47, %v1785_v50  ;;  %v1695_v28 = vld [vmem:[%s3613_s12 + $0x38] sm:$0xff]  ;;  %v1726_v29 = vld [vmem:[%s3613_s12 + $0x130] sm:$0xff]  ;;  %v1696_v33 = vld [vmem:[%s3613_s12 + $0x40] sm:$0xff] }
 0x33b   : > { %v1914_v63 = vadd.f32 %v1850_v52, %v1786_v51  ;;  %v1788_v9 = vmul.f32 %v3837_v44, %v1723_v59  ;;  %v1757_v11 = vmul.f32 %v3837_v44, %v1692_v60  ;;  %v1758_v12 = vmul.f32 %v3837_v44, %v1693_v61  ;;  %v1727_v30 = vld [vmem:[%s3613_s12 + $0x138] sm:$0xff]  ;;  %v1697_v34 = vld [vmem:[%s3613_s12 + $0x48] sm:$0xff]  ;;  %v1728_v36 = vld [vmem:[%s3613_s12 + $0x140] sm:$0xff] }
 0x33c   : > { %v1945_v4 = vpack.c.bf16 %v1882_v57, %v1881_v56  ;;  %v1789_v16 = vmul.f32 %v3837_v44, %v1724_v2  ;;  %v1790_v17 = vmul.f32 %v3837_v44, %v1725_v3  ;;  %v1883_v19 = vadd.f32 %v1819_v5, %v1755_v0  ;;  %v1823_v40 = vld [vmem:[#allocation2 + $0x30] sm:$0xff]  ;;  %v1824_v46 = vld [vmem:[#allocation2 + $0x38] sm:$0xff]  ;;  %v1825_v52 = vld [vmem:[#allocation2 + $0x40] sm:$0xff] }
 0x33d   : > { %2668 = vmatpush3.bf16.msra.mxu0 %v2937_v37  ;;  %2752 = vmatpush3.bf16.msra.mxu1 %v2937_v37  ;;  %v1961_v8 = vpack.c.bf16 %v1914_v63, %v1913_v58  ;;  %v1884_v20 = vadd.f32 %v1820_v6, %v1756_v1  ;;  %v1915_v24 = vadd.f32 %v1851_v10, %v1787_v7  ;;  %v1729_v37 = vld [vmem:[%s3613_s12 + $0x148] sm:$0xff]  ;;  %v1855_v47 = vld [vmem:[#allocation2 + $0x130] sm:$0xff]  ;;  %v1856_v48 = vld [vmem:[#allocation2 + $0x138] sm:$0xff] }
 0x33e   : > { %2669 = vmatprep.subr.bf16.mxu0 %v2938_v38  ;;  %2745 = vmatprep.subr.bf16.mxu1 %v2938_v38  ;;  %v1916_v25 = vadd.f32 %v1852_v13, %v1788_v9  ;;  %v1885_v26 = vadd.f32 %v1821_v14, %v1757_v11  ;;  %v1886_v27 = vadd.f32 %v1822_v15, %v1758_v12  ;;  %v1826_v53 = vld [vmem:[#allocation2 + $0x48] sm:$0xff]  ;;  %v1857_v56 = vld [vmem:[#allocation2 + $0x140] sm:$0xff]  ;;  %v1698_v0 = vld [vmem:[%s3613_s12 + $0x50] sm:$0xff] }
 0x33f   : > { %2677 = vmatprep.mubr.bf16.mxu0 %v1945_v4  ;;  %2709 = vmatprep.mubr.bf16.mxu1 %v1961_v8  ;;  %v1917_v31 = vadd.f32 %v1853_v21, %v1789_v16  ;;  %v1918_v32 = vadd.f32 %v1854_v22, %v1790_v17  ;;  %v1946_v35 = vpack.c.bf16 %v1884_v20, %v1883_v19  ;;  %v1858_v57 = vld [vmem:[#allocation2 + $0x148] sm:$0xff]  ;;  %v1699_v1 = vld [vmem:[%s3613_s12 + $0x58] sm:$0xff]  ;;  %v1730_v4 = vld [vmem:[%s3613_s12 + $0x150] sm:$0xff] }
 0x340   : > { %v1760_v39 = vmul.f32 %v3837_v44, %v1695_v28  ;;  %v1791_v41 = vmul.f32 %v3837_v44, %v1726_v29  ;;  %v1792_v42 = vmul.f32 %v3837_v44, %v1727_v30  ;;  %v1947_v45 = vpack.c.bf16 %v1886_v27, %v1885_v26  ;;  %v1731_v5 = vld [vmem:[%s3613_s12 + $0x158] sm:$0xff]  ;;  %v1700_v6 = vld [vmem:[%s3613_s12 + $0x60] sm:$0xff]  ;;  %v1701_v7 = vld [vmem:[%s3613_s12 + $0x68] sm:$0xff] }
 0x341   : > { %2670 = vmatpush3.bf16.msra.mxu0 %v2938_v38  ;;  %2753 = vmatpush3.bf16.msra.mxu1 %v2938_v38  ;;  %v1759_v38 = vmul.f32 %v3837_v44, %v1694_v23  ;;  %v1761_v49 = vmul.f32 %v3837_v44, %v1696_v33  ;;  %v1762_v50 = vmul.f32 %v3837_v44, %v1697_v34  ;;  %v1732_v8 = vld [vmem:[%s3613_s12 + $0x160] sm:$0xff]  ;;  %v1733_v9 = vld [vmem:[%s3613_s12 + $0x168] sm:$0xff]  ;;  %v1827_v15 = vld [vmem:[#allocation2 + $0x50] sm:$0xff] }
 0x342   : > { %2671 = vmatprep.subr.bf16.mxu0 %v2939_v43  ;;  %2746 = vmatprep.subr.bf16.mxu1 %v2939_v43  ;;  %v1963_v51 = vpack.c.bf16 %v1918_v32, %v1917_v31  ;;  %v1793_v54 = vmul.f32 %v3837_v44, %v1728_v36  ;;  %v1794_v55 = vmul.f32 %v3837_v44, %v1729_v37  ;;  %v1828_v16 = vld [vmem:[#allocation2 + $0x58] sm:$0xff]  ;;  %v1859_v21 = vld [vmem:[#allocation2 + $0x150] sm:$0xff]  ;;  %v1830_v27 = vld [vmem:[#allocation2 + $0x68] sm:$0xff] }
 0x343   : > { %v1887_v58 = vadd.f32 %v1823_v40, %v1759_v38  ;;  %v1888_v59 = vadd.f32 %v1824_v46, %v1760_v39  ;;  %v1919_v60 = vadd.f32 %v1855_v47, %v1791_v41  ;;  %v1920_v61 = vadd.f32 %v1856_v48, %v1792_v42  ;;  %v1860_v22 = vld [vmem:[#allocation2 + $0x158] sm:$0xff]  ;;  %v1861_v28 = vld [vmem:[#allocation2 + $0x160] sm:$0xff]  ;;  %v1862_v29 = vld [vmem:[#allocation2 + $0x168] sm:$0xff] }
 0x344   : > { %v1890_v63 = vadd.f32 %v1826_v53, %v1762_v50  ;;  %v1921_v2 = vadd.f32 %v1857_v56, %v1793_v54  ;;  %v1922_v3 = vadd.f32 %v1858_v57, %v1794_v55  ;;  %v1763_v12 = vmul.f32 %v3837_v44, %v1698_v0  ;;  %v1702_v32 = vld [vmem:[%s3613_s12 + $0x70] sm:$0xff]  ;;  %v1703_v36 = vld [vmem:[%s3613_s12 + $0x78] sm:$0xff]  ;;  %v1704_v42 = vld [vmem:[%s3613_s12 + $0x80] sm:$0xff] }
 0x345   : > { %2672 = vmatpush3.bf16.msra.mxu0 %v2939_v43  ;;  %2754 = vmatpush3.bf16.msra.mxu1 %v2939_v43  ;;  %v1962_v43 = vpack.c.bf16 %v1916_v25, %v1915_v24  ;;  %v1948_v10 = vpack.c.bf16 %v1888_v59, %v1887_v58  ;;  %v1964_v11 = vpack.c.bf16 %v1920_v61, %v1919_v60  ;;  %v1829_v24 = vld [vmem:[#allocation2 + $0x60] sm:$0xff]  ;;  %v1734_v37 = vld [vmem:[%s3613_s12 + $0x170] sm:$0xff]  ;;  %v1735_v38 = vld [vmem:[%s3613_s12 + $0x178] sm:$0xff] }
 0x346   : > { %2673 = vmatprep.subr.bf16.mxu0 %v2940_v62  ;;  %2747 = vmatprep.subr.bf16.mxu1 %v2940_v62  ;;  %v1764_v13 = vmul.f32 %v3837_v44, %v1699_v1  ;;  %v1795_v17 = vmul.f32 %v3837_v44, %v1730_v4  ;;  %v1765_v19 = vmul.f32 %v3837_v44, %v1700_v6  ;;  %v1737_v46 = vld [vmem:[%s3613_s12 + $0x188] sm:$0xff]  ;;  %v1832_v54 = vld [vmem:[#allocation2 + $0x78] sm:$0xff]  ;;  %v1863_v55 = vld [vmem:[#allocation2 + $0x170] sm:$0xff] }
 0x347   : > { %v1965_v20 = vpack.c.bf16 %v1922_v3, %v1921_v2  ;;  %v1766_v23 = vmul.f32 %v3837_v44, %v1701_v7  ;;  %v1797_v25 = vmul.f32 %v3837_v44, %v1732_v8  ;;  %v1798_v26 = vmul.f32 %v3837_v44, %v1733_v9  ;;  %v1864_v56 = vld [vmem:[#allocation2 + $0x178] sm:$0xff]  ;;  %v1833_v61 = vld [vmem:[#allocation2 + $0x80] sm:$0xff]  ;;  %v1866_v2 = vld [vmem:[#allocation2 + $0x188] sm:$0xff] }
 0x348   : > { %v1891_v30 = vadd.f32 %v1827_v15, %v1763_v12  ;;  %v1892_v31 = vadd.f32 %v1828_v16, %v1764_v13  ;;  %v1923_v33 = vadd.f32 %v1859_v21, %v1795_v17  ;;  %v1767_v47 = vmul.f32 %v3837_v44, %v1702_v32  ;;  %v1865_v1 = vld [vmem:[#allocation2 + $0x180] sm:$0xff]  ;;  %v1706_v9 = vld [vmem:[%s3613_s12 + $0x90] sm:$0xff]  ;;  %v1709_v16 = vld [vmem:[%s3613_s12 + $0xa8] sm:$0xff] }
 0x349   : > { %2674 = vmatpush3.bf16.msra.mxu0 %v2940_v62  ;;  %2755 = vmatpush3.bf16.msra.mxu1 %v2940_v62  ;;  %v1889_v62 = vadd.f32 %v1825_v52, %v1761_v49  ;;  %v1894_v39 = vadd.f32 %v1830_v27, %v1766_v23  ;;  %v1925_v40 = vadd.f32 %v1861_v28, %v1797_v25  ;;  %v1831_v49 = vld [vmem:[#allocation2 + $0x70] sm:$0xff]  ;;  %v1708_v15 = vld [vmem:[%s3613_s12 + $0xa0] sm:$0xff]  ;;  %v1836_v25 = vld [vmem:[#allocation2 + $0x98] sm:$0xff] }
 0x34a   : > { %2675 = vmatprep.subr.bf16.mxu0 %v2941_v18  ;;  %2748 = vmatprep.subr.bf16.mxu1 %v2941_v18  ;;  %v1926_v41 = vadd.f32 %v1862_v29, %v1798_v26  ;;  %v1768_v48 = vmul.f32 %v3837_v44, %v1703_v36  ;;  %v1799_v50 = vmul.f32 %v3837_v44, %v1734_v37  ;;  %v1738_v13 = vld [vmem:[%s3613_s12 + $0x190] sm:$0xff]  ;;  %v1740_v17 = vld [vmem:[%s3613_s12 + $0x1a0] sm:$0xff]  ;;  %v1838_v36 = vld [vmem:[#allocation2 + $0xa8] sm:$0xff] }
 0x34b   : > { %v1949_v14 = vpack.c.bf16 %v1890_v63, %v1889_v62  ;;  %v1950_v52 = vpack.c.bf16 %v1892_v31, %v1891_v30  ;;  %v1769_v57 = vmul.f32 %v3837_v44, %v1704_v42  ;;  %v1834_v62 = vld [vmem:[#allocation2 + $0x88] sm:$0xff]  ;;  %v1802_v0 = vmul.f32 %v3837_v44, %v1737_v46  ;;  %v1867_v30 = vld [vmem:[#allocation2 + $0x190] sm:$0xff]  ;;  %v1868_v31 = vld [vmem:[#allocation2 + $0x198] sm:$0xff] }
 0x34c   : > { %v1967_v60 = vpack.c.bf16 %v1926_v41, %v1925_v40  ;;  %v1895_v3 = vadd.f32 %v1831_v49, %v1767_v47  ;;  %v1896_v4 = vadd.f32 %v1832_v54, %v1768_v48  ;;  %v1771_v21 = vmul.f32 %v3837_v44, %v1706_v9  ;;  %v1869_v37 = vld [vmem:[#allocation2 + $0x1a0] sm:$0xff]  ;;  %v1710_v41 = vld [vmem:[%s3613_s12 + $0xb0] sm:$0xff]  ;;  %v1711_v46 = vld [vmem:[%s3613_s12 + $0xb8] sm:$0xff] }
 0x34d   : > { %2676 = vmatpush3.bf16.msra.mxu0 %v2941_v18  ;;  %2756 = vmatpush3.bf16.msra.mxu1 %v2941_v18  ;;  %v1796_v18 = vmul.f32 %v3837_v44, %v1731_v5  ;;  %v1927_v5 = vadd.f32 %v1863_v55, %v1799_v50  ;;  %v1897_v7 = vadd.f32 %v1833_v61, %v1769_v57  ;;  %v1742_v47 = vld [vmem:[%s3613_s12 + $0x1b0] sm:$0xff]  ;;  %v1743_v48 = vld [vmem:[%s3613_s12 + $0x1b8] sm:$0xff]  ;;  %v1744_v54 = vld [vmem:[%s3613_s12 + $0x1c0] sm:$0xff] }
 0x34e   : > { %v1930_v12 = vadd.f32 %v1866_v2, %v1802_v0  ;;  %v1803_v26 = vmul.f32 %v3837_v44, %v1738_v13  ;;  %v1773_v28 = vmul.f32 %v3837_v44, %v1708_v15  ;;  %v1774_v32 = vmul.f32 %v3837_v44, %v1709_v16  ;;  %v1745_v55 = vld [vmem:[%s3613_s12 + $0x1c8] sm:$0xff]  ;;  %v1871_v0 = vld [vmem:[#allocation2 + $0x1b0] sm:$0xff] }
 0x34f   : > { %v1924_v34 = vadd.f32 %v1860_v22, %v1796_v18  ;;  %v1741_v18 = vld [vmem:[%s3613_s12 + $0x1a8] sm:$0xff]  ;;  %v1776_v57 = vmul.f32 %v3837_v44, %v1711_v46  ;;  %v1810_v9 = vmul.f32 %v3837_v44, %v1745_v55 }
 0x350   : > { %2678 = vmatmul.mubr.bf16.vlgmr.msra.gmra.mrb[0].mxu0 %v1946_v35  ;;  %2710 = vmatmul.mubr.bf16.vlgmr.msra.gmra.mrb[0].mxu1 %v1962_v43  ;;  %v1893_v35 = vadd.f32 %v1829_v24, %v1765_v19  ;;  %v1705_v43 = vld [vmem:[%s3613_s12 + $0x88] sm:$0xff]  ;;  %v1952_v19 = vpack.c.bf16 %v1896_v4, %v1895_v3  ;;  %v1835_v24 = vld [vmem:[#allocation2 + $0x90] sm:$0xff]  ;;  %v1931_v42 = vadd.f32 %v1867_v30, %v1803_v26  ;;  %v1748_v26 = vld [vmem:[%s3613_s12 + $0x1e0] sm:$0xff] }
 0x351   : > { %2681 = vmatprep.mubr.bf16.mxu0 %v1947_v45  ;;  %2713 = vmatprep.mubr.bf16.mxu1 %v1963_v51  ;;  %v1736_v45 = vld [vmem:[%s3613_s12 + $0x180] sm:$0xff]  ;;  %v1800_v51 = vmul.f32 %v3837_v44, %v1735_v38  ;;  %v1966_v53 = vpack.c.bf16 %v1924_v34, %v1923_v33  ;;  %v1770_v58 = vmul.f32 %v3837_v44, %v1705_v43  ;;  %v1870_v38 = vld [vmem:[#allocation2 + $0x1a8] sm:$0xff] }
 0x352   : > { %v1951_v59 = vpack.c.bf16 %v1894_v39, %v1893_v35  ;;  %v1801_v63 = vmul.f32 %v3837_v44, %v1736_v45  ;;  %v1837_v33 = vld [vmem:[#allocation2 + $0xa0] sm:$0xff]  ;;  %v1805_v34 = vmul.f32 %v3837_v44, %v1740_v17  ;;  %v1806_v35 = vmul.f32 %v3837_v44, %v1741_v18  ;;  %v1714_v18 = vld [vmem:[%s3613_s12 + $0xd0] sm:$0xff]  ;;  %v1846_v46 = vld [vmem:[#allocation2 + $0xe8] sm:$0xff] }
 0x353   : > { %v1928_v6 = vadd.f32 %v1864_v56, %v1800_v51  ;;  %v1898_v8 = vadd.f32 %v1834_v62, %v1770_v58  ;;  %v1899_v39 = vadd.f32 %v1835_v24, %v1771_v21  ;;  %v1901_v45 = vadd.f32 %v1837_v33, %v1773_v28  ;;  %v1839_v58 = vld [vmem:[#allocation2 + $0xb0] sm:$0xff]  ;;  %v1716_v24 = vld [vmem:[%s3613_s12 + $0xe0] sm:$0xff] }
 0x354   : > { %v1902_v49 = vadd.f32 %v1838_v36, %v1774_v32  ;;  %v1933_v50 = vadd.f32 %v1869_v37, %v1805_v34  ;;  %v1934_v51 = vadd.f32 %v1870_v38, %v1806_v35  ;;  %v1775_v56 = vmul.f32 %v3837_v44, %v1710_v41  ;;  %v1843_v33 = vld [vmem:[#allocation2 + $0xd0] sm:$0xff]  ;;  %v1844_v34 = vld [vmem:[#allocation2 + $0xd8] sm:$0xff] }
 0x355   : > { %v1953_v23 = vpack.c.bf16 %v1898_v8, %v1897_v7  ;;  %v1842_v7 = vld [vmem:[#allocation2 + $0xc8] sm:$0xff]  ;;  %v1809_v8 = vmul.f32 %v3837_v44, %v1744_v54  ;;  %v1779_v30 = vmul.f32 %v3837_v44, %v1714_v18  ;;  %v1781_v37 = vmul.f32 %v3837_v44, %v1716_v24  ;;  %v1718_v54 = vld [vmem:[%s3613_s12 + $0xf0] sm:$0xff] }
 0x356   : > { %v1955_v4 = vpack.c.bf16 %v1902_v49, %v1901_v45 }
 0x357   : > { %v1907_v49 = vadd.f32 %v1843_v33, %v1779_v30 }
 0x358   : > { %2682 = vmatmul.mubr.bf16.gmra.mrb[4].mxu0 %v1948_v10  ;;  %2714 = vmatmul.mubr.bf16.gmra.mrb[4].mxu1 %v1964_v11  ;;  %v1707_v10 = vld [vmem:[%s3613_s12 + $0x98] sm:$0xff]  ;;  %v1929_v11 = vadd.f32 %v1865_v1, %v1801_v63 }
 0x359   : > { %2685 = vmatprep.mubr.bf16.mxu0 %v1949_v14  ;;  %2717 = vmatprep.mubr.bf16.mxu1 %v1965_v20  ;;  %v1739_v14 = vld [vmem:[%s3613_s12 + $0x198] sm:$0xff]  ;;  %v1968_v20 = vpack.c.bf16 %v1928_v6, %v1927_v5  ;;  %v1772_v22 = vmul.f32 %v3837_v44, %v1707_v10  ;;  %v1971_v5 = vpack.c.bf16 %v1934_v51, %v1933_v50  ;;  %v1841_v6 = vld [vmem:[#allocation2 + $0xc0] sm:$0xff] }
 0x35a   : > { %v1804_v27 = vmul.f32 %v3837_v44, %v1739_v14  ;;  %v1969_v29 = vpack.c.bf16 %v1930_v12, %v1929_v11  ;;  %v1840_v63 = vld [vmem:[#allocation2 + $0xb8] sm:$0xff]  ;;  %v1873_v10 = vld [vmem:[#allocation2 + $0x1c0] sm:$0xff]  ;;  %v1874_v11 = vld [vmem:[#allocation2 + $0x1c8] sm:$0xff]  ;;  %v1903_v12 = vadd.f32 %v1839_v58, %v1775_v56 }
 0x35b   : > { %v1900_v40 = vadd.f32 %v1836_v25, %v1772_v22  ;;  %v1872_v1 = vld [vmem:[#allocation2 + $0x1b8] sm:$0xff]  ;;  %v1904_v13 = vadd.f32 %v1840_v63, %v1776_v57  ;;  %v1938_v21 = vadd.f32 %v1874_v11, %v1810_v9  ;;  %v1746_v22 = vld [vmem:[%s3613_s12 + $0x1d0] sm:$0xff]  ;;  %v1717_v25 = vld [vmem:[%s3613_s12 + $0xe8] sm:$0xff] }
 0x35c   : > { %v1932_v43 = vadd.f32 %v1868_v31, %v1804_v27  ;;  %v1749_v27 = vld [vmem:[%s3613_s12 + $0x1e8] sm:$0xff]  ;;  %v1811_v35 = vmul.f32 %v3837_v44, %v1746_v22  ;;  %v1782_v41 = vmul.f32 %v3837_v44, %v1717_v25  ;;  %v1719_v58 = vld [vmem:[%s3613_s12 + $0xf8] sm:$0xff] }
 0x35d   : > { %v1954_v61 = vpack.c.bf16 %v1900_v40, %v1899_v39  ;;  %v1956_v28 = vpack.c.bf16 %v1904_v13, %v1903_v12  ;;  %v1875_v39 = vld [vmem:[#allocation2 + $0x1d0] sm:$0xff]  ;;  %v1876_v40 = vld [vmem:[#allocation2 + $0x1d8] sm:$0xff]  ;;  %v1814_v45 = vmul.f32 %v3837_v44, %v1749_v27 }
 0x35e   : > { %v1970_v62 = vpack.c.bf16 %v1932_v43, %v1931_v42  ;;  %v1845_v42 = vld [vmem:[#allocation2 + $0xe0] sm:$0xff]  ;;  %v1813_v43 = vmul.f32 %v3837_v44, %v1748_v26  ;;  %v1939_v51 = vadd.f32 %v1875_v39, %v1811_v35  ;;  %v1910_v55 = vadd.f32 %v1846_v46, %v1782_v41 }
 0x360   : > { %2686 = vmatmul.mubr.bf16.gmra.mrb[8].mxu0 %v1950_v52  ;;  %2718 = vmatmul.mubr.bf16.gmra.mrb[8].mxu1 %v1966_v53  ;;  %v1712_v52 = vld [vmem:[%s3613_s12 + $0xc0] sm:$0xff]  ;;  %v1713_v53 = vld [vmem:[%s3613_s12 + $0xc8] sm:$0xff] }
 0x361   : > { %2689 = vmatprep.mubr.bf16.mxu0 %v1951_v59  ;;  %2721 = vmatprep.mubr.bf16.mxu1 %v1967_v60  ;;  %v1807_v59 = vmul.f32 %v3837_v44, %v1742_v47  ;;  %v1808_v60 = vmul.f32 %v3837_v44, %v1743_v48  ;;  %v1777_v2 = vmul.f32 %v3837_v44, %v1712_v52  ;;  %v1877_v47 = vld [vmem:[#allocation2 + $0x1e0] sm:$0xff]  ;;  %v1878_v48 = vld [vmem:[#allocation2 + $0x1e8] sm:$0xff] }
 0x362   : > { %v1778_v3 = vmul.f32 %v3837_v44, %v1713_v53  ;;  %v1909_v53 = vadd.f32 %v1845_v42, %v1781_v37  ;;  %v1941_v56 = vadd.f32 %v1877_v47, %v1813_v43  ;;  %v1942_v57 = vadd.f32 %v1878_v48, %v1814_v45 }
 0x363   : > { %v1935_v14 = vadd.f32 %v1871_v0, %v1807_v59  ;;  %v1936_v15 = vadd.f32 %v1872_v1, %v1808_v60  ;;  %v1905_v16 = vadd.f32 %v1841_v6, %v1777_v2  ;;  %v1750_v59 = vld [vmem:[%s3613_s12 + $0x1f0] sm:$0xff]  ;;  %v1751_v60 = vld [vmem:[%s3613_s12 + $0x1f8] sm:$0xff]  ;;  %v1784_v0 = vmul.f32 %v3837_v44, %v1719_v58 }
 0x364   : > { %v1906_v17 = vadd.f32 %v1842_v7, %v1778_v3  ;;  %v1847_v1 = vld [vmem:[#allocation2 + $0xf0] sm:$0xff]  ;;  %v1815_v2 = vmul.f32 %v3837_v44, %v1750_v59  ;;  %v1816_v3 = vmul.f32 %v3837_v44, %v1751_v60  ;;  %v1848_v6 = vld [vmem:[#allocation2 + $0xf8] sm:$0xff] }
 0x365   : > { %v1879_v7 = vld [vmem:[#allocation2 + $0x1f0] sm:$0xff] }
 0x366   : > { %v1957_v32 = vpack.c.bf16 %v1906_v17, %v1905_v16  ;;  %v1943_v11 = vadd.f32 %v1879_v7, %v1815_v2 }
 0x368   : > { %2690 = vmatmul.mubr.bf16.gmra.mrb[12].mxu0 %v1952_v19  ;;  %2722 = vmatmul.mubr.bf16.gmra.mrb[12].mxu1 %v1968_v20  ;;  %v1715_v19 = vld [vmem:[%s3613_s12 + $0xd8] sm:$0xff]  ;;  %v1937_v20 = vadd.f32 %v1873_v10, %v1809_v8  ;;  %v1912_v10 = vadd.f32 %v1848_v6, %v1784_v0 }
 0x369   : > { %2693 = vmatprep.mubr.bf16.mxu0 %v1953_v23  ;;  %2725 = vmatprep.mubr.bf16.mxu1 %v1969_v29  ;;  %v1747_v23 = vld [vmem:[%s3613_s12 + $0x1d8] sm:$0xff]  ;;  %v1972_v29 = vpack.c.bf16 %v1936_v15, %v1935_v14  ;;  %v1780_v31 = vmul.f32 %v3837_v44, %v1715_v19 }
 0x36a   : > { %v1812_v36 = vmul.f32 %v3837_v44, %v1747_v23  ;;  %v1973_v38 = vpack.c.bf16 %v1938_v21, %v1937_v20  ;;  %v1880_v8 = vld [vmem:[#allocation2 + $0x1f8] sm:$0xff] }
 0x36b   : > { %v1908_v50 = vadd.f32 %v1844_v34, %v1780_v31  ;;  %v1944_v12 = vadd.f32 %v1880_v8, %v1816_v3 }
 0x36c   : > { %v1940_v52 = vadd.f32 %v1876_v40, %v1812_v36 }
 0x36d   : > { %v1976_v14 = vpack.c.bf16 %v1944_v12, %v1943_v11 }
 0x36e   : > { %v1974_v63 = vpack.c.bf16 %v1940_v52, %v1939_v51 }
 0x370   : > { %2694 = vmatmul.mubr.bf16.gmra.mrb[16].mxu0 %v1954_v61  ;;  %2726 = vmatmul.mubr.bf16.gmra.mrb[16].mxu1 %v1970_v62  ;;  %v1958_v61 = vpack.c.bf16 %v1908_v50, %v1907_v49  ;;  %v1783_v62 = vmul.f32 %v3837_v44, %v1718_v54  ;;  %v3966_v44 = vld [vmem:[%s4242_s25] ss:$0 sm:$0xff] }
 0x371   : > { %2697 = vmatprep.mubr.bf16.mxu0 %v1955_v4  ;;  %2729 = vmatprep.mubr.bf16.mxu1 %v1971_v5  ;;  %v1959_v4 = vpack.c.bf16 %v1910_v55, %v1909_v53  ;;  %v1975_v5 = vpack.c.bf16 %v1942_v57, %v1941_v56 }
 0x372   : > { %v1911_v9 = vadd.f32 %v1847_v1, %v1783_v62 }
 0x374   : > { %v1960_v13 = vpack.c.bf16 %v1912_v10, %v1911_v9 }
 0x378   : > { %2698 = vmatmul.mubr.bf16.gmra.mrb[20].mxu0 %v1956_v28  ;;  %2730 = vmatmul.mubr.bf16.gmra.mrb[20].mxu1 %v1972_v29 }
 0x379   : > { %2701 = vmatprep.mubr.bf16.mxu0 %v1957_v32  ;;  %2733 = vmatprep.mubr.bf16.mxu1 %v1973_v38 }
 0x380   : > { %2702 = vmatmul.mubr.bf16.gmra.mrb[24].mxu0 %v1958_v61  ;;  %2734 = vmatmul.mubr.bf16.gmra.mrb[24].mxu1 %v1974_v63 }
 0x381   : > { %2705 = vmatprep.mubr.bf16.mxu0 %v1959_v4  ;;  %2737 = vmatprep.mubr.bf16.mxu1 %v1975_v5 }
 0x388   : > { %2706 = vmatmul.mubr.bf16.gmra.mrb[28].mxu0 %v1960_v13  ;;  %2738 = vmatmul.mubr.bf16.gmra.mrb[28].mxu1 %v1976_v14 }
 0x423   : > { %v2679_v15 = vpop.f32.mrb[0].mxu0  ;;  %v2711_v16 = vpop.f32.mrb[0].mxu1 }
 0x424   : > { %v2091_v17 = vadd.f32 %v2679_v15, %v3966_v44  ;;  %v2219_v18 = vadd.f32 %v2711_v16, %v3966_v44  ;;  %v2082_v19 = vpop.f32.mrb[1].mxu0  ;;  %v2210_v20 = vpop.f32.mrb[1].mxu1 }
 0x425   : > { %v2083_v21 = vadd.f32 %v3966_v44, %v2082_v19  ;;  %v2211_v22 = vadd.f32 %v3966_v44, %v2210_v20  ;;  %v2680_v23 = vpop.f32.mrb[2].mxu0  ;;  %v2712_v24 = vpop.f32.mrb[2].mxu1 }
 0x426   : > { %2339 = vst [vmem:[%s3623_s27 + $0x10] sm:$0xff] %v2091_v17  ;;  %2371 = vst [vmem:[%s3623_s27 + $0x110] sm:$0xff] %v2219_v18  ;;  %v2094_v25 = vadd.f32 %v2680_v23, %v3966_v44  ;;  %v2222_v26 = vadd.f32 %v2712_v24, %v3966_v44  ;;  %v2085_v27 = vpop.f32.mrb[3].mxu0  ;;  %v2213_v28 = vpop.f32.mrb[3].mxu1 }
 0x427   : > { %2337 = vst [vmem:[%s3623_s27] sm:$0xff] %v2083_v21  ;;  %2369 = vst [vmem:[%s3623_s27 + $0x100] sm:$0xff] %v2211_v22  ;;  %v2086_v29 = vadd.f32 %v3966_v44, %v2085_v27  ;;  %v2214_v30 = vadd.f32 %v3966_v44, %v2213_v28 }
 0x428   : > { %2340 = vst [vmem:[%s3623_s27 + $0x18] sm:$0xff] %v2094_v25  ;;  %2372 = vst [vmem:[%s3623_s27 + $0x118] sm:$0xff] %v2222_v26 }
 0x429   : > { %2338 = vst [vmem:[%s3623_s27 + $0x8] sm:$0xff] %v2086_v29  ;;  %2370 = vst [vmem:[%s3623_s27 + $0x108] sm:$0xff] %v2214_v30 }
 0x42b   : > { %v2683_v31 = vpop.f32.mrb[4].mxu0  ;;  %v2715_v32 = vpop.f32.mrb[4].mxu1 }
 0x42c   : > { %v2107_v33 = vadd.f32 %v2683_v31, %v3966_v44  ;;  %v2235_v34 = vadd.f32 %v2715_v32, %v3966_v44  ;;  %v2098_v35 = vpop.f32.mrb[5].mxu0  ;;  %v2226_v36 = vpop.f32.mrb[5].mxu1 }
 0x42d   : > { %v2099_v37 = vadd.f32 %v3966_v44, %v2098_v35  ;;  %v2227_v38 = vadd.f32 %v3966_v44, %v2226_v36  ;;  %v2684_v39 = vpop.f32.mrb[6].mxu0  ;;  %v2716_v40 = vpop.f32.mrb[6].mxu1 }
 0x42e   : > { %2343 = vst [vmem:[%s3623_s27 + $0x30] sm:$0xff] %v2107_v33  ;;  %2375 = vst [vmem:[%s3623_s27 + $0x130] sm:$0xff] %v2235_v34  ;;  %v2110_v41 = vadd.f32 %v2684_v39, %v3966_v44  ;;  %v2238_v42 = vadd.f32 %v2716_v40, %v3966_v44  ;;  %v2101_v43 = vpop.f32.mrb[7].mxu0  ;;  %v2229_v45 = vpop.f32.mrb[7].mxu1 }
 0x42f   : > { %2341 = vst [vmem:[%s3623_s27 + $0x20] sm:$0xff] %v2099_v37  ;;  %2373 = vst [vmem:[%s3623_s27 + $0x120] sm:$0xff] %v2227_v38  ;;  %v2102_v46 = vadd.f32 %v3966_v44, %v2101_v43  ;;  %v2230_v47 = vadd.f32 %v3966_v44, %v2229_v45 }
 0x430   : > { %2344 = vst [vmem:[%s3623_s27 + $0x38] sm:$0xff] %v2110_v41  ;;  %2376 = vst [vmem:[%s3623_s27 + $0x138] sm:$0xff] %v2238_v42 }
 0x431   : > { %2342 = vst [vmem:[%s3623_s27 + $0x28] sm:$0xff] %v2102_v46  ;;  %2374 = vst [vmem:[%s3623_s27 + $0x128] sm:$0xff] %v2230_v47 }
 0x433   : > { %v2687_v48 = vpop.f32.mrb[8].mxu0  ;;  %v2719_v49 = vpop.f32.mrb[8].mxu1 }
 0x434   : > { %v2123_v50 = vadd.f32 %v2687_v48, %v3966_v44  ;;  %v2251_v51 = vadd.f32 %v2719_v49, %v3966_v44  ;;  %v2114_v52 = vpop.f32.mrb[9].mxu0  ;;  %v2242_v53 = vpop.f32.mrb[9].mxu1 }
 0x435   : > { %v2115_v54 = vadd.f32 %v3966_v44, %v2114_v52  ;;  %v2243_v55 = vadd.f32 %v3966_v44, %v2242_v53  ;;  %v2688_v56 = vpop.f32.mrb[10].mxu0  ;;  %v2720_v57 = vpop.f32.mrb[10].mxu1 }
 0x436   : > { %2347 = vst [vmem:[%s3623_s27 + $0x50] sm:$0xff] %v2123_v50  ;;  %2379 = vst [vmem:[%s3623_s27 + $0x150] sm:$0xff] %v2251_v51  ;;  %v2126_v58 = vadd.f32 %v2688_v56, %v3966_v44  ;;  %v2254_v59 = vadd.f32 %v2720_v57, %v3966_v44  ;;  %v2117_v60 = vpop.f32.mrb[11].mxu0  ;;  %v2245_v61 = vpop.f32.mrb[11].mxu1 }
 0x437   : > { %2345 = vst [vmem:[%s3623_s27 + $0x40] sm:$0xff] %v2115_v54  ;;  %2377 = vst [vmem:[%s3623_s27 + $0x140] sm:$0xff] %v2243_v55  ;;  %v2118_v62 = vadd.f32 %v3966_v44, %v2117_v60  ;;  %v2246_v63 = vadd.f32 %v3966_v44, %v2245_v61 }
 0x438   : > { %2348 = vst [vmem:[%s3623_s27 + $0x58] sm:$0xff] %v2126_v58  ;;  %2380 = vst [vmem:[%s3623_s27 + $0x158] sm:$0xff] %v2254_v59 }
 0x439   : > { %2346 = vst [vmem:[%s3623_s27 + $0x48] sm:$0xff] %v2118_v62  ;;  %2378 = vst [vmem:[%s3623_s27 + $0x148] sm:$0xff] %v2246_v63 }
 0x43b   : > { %v2691_v0 = vpop.f32.mrb[12].mxu0  ;;  %v2723_v1 = vpop.f32.mrb[12].mxu1 }
 0x43c   : > { %v2139_v2 = vadd.f32 %v2691_v0, %v3966_v44  ;;  %v2267_v3 = vadd.f32 %v2723_v1, %v3966_v44  ;;  %v2130_v4 = vpop.f32.mrb[13].mxu0  ;;  %v2258_v5 = vpop.f32.mrb[13].mxu1 }
 0x43d   : > { %v2131_v6 = vadd.f32 %v3966_v44, %v2130_v4  ;;  %v2259_v7 = vadd.f32 %v3966_v44, %v2258_v5  ;;  %v2692_v8 = vpop.f32.mrb[14].mxu0  ;;  %v2724_v9 = vpop.f32.mrb[14].mxu1 }
 0x43e   : > { %2351 = vst [vmem:[%s3623_s27 + $0x70] sm:$0xff] %v2139_v2  ;;  %2383 = vst [vmem:[%s3623_s27 + $0x170] sm:$0xff] %v2267_v3  ;;  %v2142_v10 = vadd.f32 %v2692_v8, %v3966_v44  ;;  %v2270_v11 = vadd.f32 %v2724_v9, %v3966_v44  ;;  %v2133_v12 = vpop.f32.mrb[15].mxu0  ;;  %v2261_v13 = vpop.f32.mrb[15].mxu1 }
 0x43f   : > { %2349 = vst [vmem:[%s3623_s27 + $0x60] sm:$0xff] %v2131_v6  ;;  %2381 = vst [vmem:[%s3623_s27 + $0x160] sm:$0xff] %v2259_v7  ;;  %v2134_v14 = vadd.f32 %v3966_v44, %v2133_v12  ;;  %v2262_v15 = vadd.f32 %v3966_v44, %v2261_v13 }
 0x440   : > { %2352 = vst [vmem:[%s3623_s27 + $0x78] sm:$0xff] %v2142_v10  ;;  %2384 = vst [vmem:[%s3623_s27 + $0x178] sm:$0xff] %v2270_v11 }
 0x441   : > { %2350 = vst [vmem:[%s3623_s27 + $0x68] sm:$0xff] %v2134_v14  ;;  %2382 = vst [vmem:[%s3623_s27 + $0x168] sm:$0xff] %v2262_v15 }
 0x443   : > { %v2695_v16 = vpop.f32.mrb[16].mxu0  ;;  %v2727_v17 = vpop.f32.mrb[16].mxu1 }
 0x444   : > { %v2155_v18 = vadd.f32 %v2695_v16, %v3966_v44  ;;  %v2283_v19 = vadd.f32 %v2727_v17, %v3966_v44  ;;  %v2146_v20 = vpop.f32.mrb[17].mxu0  ;;  %v2274_v21 = vpop.f32.mrb[17].mxu1 }
 0x445   : > { %v2147_v22 = vadd.f32 %v3966_v44, %v2146_v20  ;;  %v2275_v23 = vadd.f32 %v3966_v44, %v2274_v21  ;;  %v2696_v24 = vpop.f32.mrb[18].mxu0  ;;  %v2728_v25 = vpop.f32.mrb[18].mxu1 }
 0x446   : > { %2355 = vst [vmem:[%s3623_s27 + $0x90] sm:$0xff] %v2155_v18  ;;  %2387 = vst [vmem:[%s3623_s27 + $0x190] sm:$0xff] %v2283_v19  ;;  %v2158_v26 = vadd.f32 %v2696_v24, %v3966_v44  ;;  %v2286_v27 = vadd.f32 %v2728_v25, %v3966_v44  ;;  %v2149_v28 = vpop.f32.mrb[19].mxu0  ;;  %v2277_v29 = vpop.f32.mrb[19].mxu1 }
 0x447   : > { %2353 = vst [vmem:[%s3623_s27 + $0x80] sm:$0xff] %v2147_v22  ;;  %2385 = vst [vmem:[%s3623_s27 + $0x180] sm:$0xff] %v2275_v23  ;;  %v2150_v30 = vadd.f32 %v3966_v44, %v2149_v28  ;;  %v2278_v31 = vadd.f32 %v3966_v44, %v2277_v29 }
 0x448   : > { %2356 = vst [vmem:[%s3623_s27 + $0x98] sm:$0xff] %v2158_v26  ;;  %2388 = vst [vmem:[%s3623_s27 + $0x198] sm:$0xff] %v2286_v27 }
 0x449   : > { %2354 = vst [vmem:[%s3623_s27 + $0x88] sm:$0xff] %v2150_v30  ;;  %2386 = vst [vmem:[%s3623_s27 + $0x188] sm:$0xff] %v2278_v31 }
 0x44b   : > { %v2699_v32 = vpop.f32.mrb[20].mxu0  ;;  %v2731_v33 = vpop.f32.mrb[20].mxu1 }
 0x44c   : > { %v2171_v34 = vadd.f32 %v2699_v32, %v3966_v44  ;;  %v2299_v35 = vadd.f32 %v2731_v33, %v3966_v44  ;;  %v2162_v36 = vpop.f32.mrb[21].mxu0  ;;  %v2290_v37 = vpop.f32.mrb[21].mxu1 }
 0x44d   : > { %v2163_v38 = vadd.f32 %v3966_v44, %v2162_v36  ;;  %v2291_v39 = vadd.f32 %v3966_v44, %v2290_v37  ;;  %v2700_v40 = vpop.f32.mrb[22].mxu0  ;;  %v2732_v41 = vpop.f32.mrb[22].mxu1 }
 0x44e   : > { %2359 = vst [vmem:[%s3623_s27 + $0xb0] sm:$0xff] %v2171_v34  ;;  %2391 = vst [vmem:[%s3623_s27 + $0x1b0] sm:$0xff] %v2299_v35  ;;  %v2174_v42 = vadd.f32 %v2700_v40, %v3966_v44  ;;  %v2302_v43 = vadd.f32 %v2732_v41, %v3966_v44  ;;  %v2165_v45 = vpop.f32.mrb[23].mxu0  ;;  %v2293_v46 = vpop.f32.mrb[23].mxu1 }
 0x44f   : > { %2357 = vst [vmem:[%s3623_s27 + $0xa0] sm:$0xff] %v2163_v38  ;;  %2389 = vst [vmem:[%s3623_s27 + $0x1a0] sm:$0xff] %v2291_v39  ;;  %v2166_v47 = vadd.f32 %v3966_v44, %v2165_v45  ;;  %v2294_v48 = vadd.f32 %v3966_v44, %v2293_v46 }
 0x450   : > { %2360 = vst [vmem:[%s3623_s27 + $0xb8] sm:$0xff] %v2174_v42  ;;  %2392 = vst [vmem:[%s3623_s27 + $0x1b8] sm:$0xff] %v2302_v43 }
 0x451   : > { %2358 = vst [vmem:[%s3623_s27 + $0xa8] sm:$0xff] %v2166_v47  ;;  %2390 = vst [vmem:[%s3623_s27 + $0x1a8] sm:$0xff] %v2294_v48 }
 0x453   : > { %v2703_v49 = vpop.f32.mrb[24].mxu0  ;;  %v2735_v50 = vpop.f32.mrb[24].mxu1 }
 0x454   : > { %v2187_v51 = vadd.f32 %v2703_v49, %v3966_v44  ;;  %v2315_v52 = vadd.f32 %v2735_v50, %v3966_v44  ;;  %v2178_v53 = vpop.f32.mrb[25].mxu0  ;;  %v2306_v54 = vpop.f32.mrb[25].mxu1 }
 0x455   : > { %v2179_v55 = vadd.f32 %v3966_v44, %v2178_v53  ;;  %v2307_v56 = vadd.f32 %v3966_v44, %v2306_v54  ;;  %v2704_v57 = vpop.f32.mrb[26].mxu0  ;;  %v2736_v58 = vpop.f32.mrb[26].mxu1 }
 0x456   : > { %2363 = vst [vmem:[%s3623_s27 + $0xd0] sm:$0xff] %v2187_v51  ;;  %2395 = vst [vmem:[%s3623_s27 + $0x1d0] sm:$0xff] %v2315_v52  ;;  %v2190_v59 = vadd.f32 %v2704_v57, %v3966_v44  ;;  %v2318_v60 = vadd.f32 %v2736_v58, %v3966_v44  ;;  %v2181_v61 = vpop.f32.mrb[27].mxu0  ;;  %v2309_v62 = vpop.f32.mrb[27].mxu1 }
 0x457   : > { %2361 = vst [vmem:[%s3623_s27 + $0xc0] sm:$0xff] %v2179_v55  ;;  %2393 = vst [vmem:[%s3623_s27 + $0x1c0] sm:$0xff] %v2307_v56  ;;  %v2182_v63 = vadd.f32 %v3966_v44, %v2181_v61  ;;  %v2310_v0 = vadd.f32 %v3966_v44, %v2309_v62 }
 0x458   : > { %2364 = vst [vmem:[%s3623_s27 + $0xd8] sm:$0xff] %v2190_v59  ;;  %2396 = vst [vmem:[%s3623_s27 + $0x1d8] sm:$0xff] %v2318_v60 }
 0x459   : > { %2362 = vst [vmem:[%s3623_s27 + $0xc8] sm:$0xff] %v2182_v63  ;;  %2394 = vst [vmem:[%s3623_s27 + $0x1c8] sm:$0xff] %v2310_v0 }
 0x45b   : > { %v2707_v1 = vpop.f32.mrb[28].mxu0  ;;  %v2739_v2 = vpop.f32.mrb[28].mxu1 }
 0x45c   : > { %v2203_v3 = vadd.f32 %v2707_v1, %v3966_v44  ;;  %v2331_v4 = vadd.f32 %v2739_v2, %v3966_v44  ;;  %v2194_v5 = vpop.f32.mrb[29].mxu0  ;;  %v2322_v6 = vpop.f32.mrb[29].mxu1 }
 0x45d   : > { %v2195_v7 = vadd.f32 %v3966_v44, %v2194_v5  ;;  %v2323_v8 = vadd.f32 %v3966_v44, %v2322_v6  ;;  %v2708_v9 = vpop.f32.mrb[30].mxu0  ;;  %v2740_v10 = vpop.f32.mrb[30].mxu1 }
 0x45e   : > { %2367 = vst [vmem:[%s3623_s27 + $0xf0] sm:$0xff] %v2203_v3  ;;  %2399 = vst [vmem:[%s3623_s27 + $0x1f0] sm:$0xff] %v2331_v4  ;;  %v2206_v11 = vadd.f32 %v2708_v9, %v3966_v44  ;;  %v2334_v12 = vadd.f32 %v2740_v10, %v3966_v44  ;;  %v2197_v13 = vpop.f32.mrb[31].mxu0  ;;  %v2325_v14 = vpop.f32.mrb[31].mxu1 }
 0x45f   : > { %2365 = vst [vmem:[%s3623_s27 + $0xe0] sm:$0xff] %v2195_v7  ;;  %2397 = vst [vmem:[%s3623_s27 + $0x1e0] sm:$0xff] %v2323_v8  ;;  %v2198_v15 = vadd.f32 %v3966_v44, %v2197_v13  ;;  %v2326_v16 = vadd.f32 %v3966_v44, %v2325_v14 }
 0x460   : > { %2368 = vst [vmem:[%s3623_s27 + $0xf8] sm:$0xff] %v2206_v11  ;;  %2400 = vst [vmem:[%s3623_s27 + $0x1f8] sm:$0xff] %v2334_v12 }
 0x461   : > { %2366 = vst [vmem:[%s3623_s27 + $0xe8] sm:$0xff] %v2198_v15  ;;  %2398 = vst [vmem:[%s3623_s27 + $0x1e8] sm:$0xff] %v2326_v16 }
 0x462 PF: > { %s4243_s1 = sld [smem:[#allocation25_spill]]  ;;  %s4244_s14 = sld [smem:[#allocation33_spill]] }
 0x463   : > { %s2415_s8 = sshll.u32 %s3623_s27, 4  ;;  %s4107_s11 = scalar_lea.sflag [#allocation9], %s335_s28  ;;  %s4103_s8 = int_to_ptr.vmem [resolvable:$true] %s2415_s8 }
 0x464   : > { %s3082_s18 = scalar_lea.vmem %s4103_s8, 8192  ;;  %s3235_s21 = smov [#allocation14]  }
 0x465   : > { %p3083_p4 = scmp.ne.s32.totalorder %s4103_s8, %s3082_s18  ;;  %s3086_s29 = sshll.u32 %s3235_s21, 4  ;;  %s3087_s29 = int_to_ptr.vmem [resolvable:$false] %s3086_s29 }
 0x466   : > { %s3088_s2 = scalar_lea.vmem %s3087_s29, 16384  ;;  %p3089_p2 = scmp.lt.s32.totalorder %s4103_s8, %s3087_s29 }
 0x467   : > { %p3084_p7 = pnand %p3083_p4, %p3548_p0  ;;  %p3090_p3 = scmp.lt.s32.totalorder %s3088_s2, %s3082_s18 }
 0x468   : > { %s2620_s26 = sshll.u32 %s4243_s1, 13 }
 0x469   : > { %s4100_s0 = scalar_lea.hbm %s4244_s14, %s2620_s26  ;;  %p3085_p11 = pneg %p3084_p7 }
 0x46a   : > { %p3091_p13 = por %p3090_p3, %p3089_p2 }
 0x46c   : > { %p3092_p6 = pnand %p3091_p13, %p3085_p11 }
 0x46e   : > { %3095 = shalt.err (!%p3092_p6)
}
 0x46f   : > { %s3096_s28 = scalar_lea.hbm %s4100_s0, 8192  ;;  %s3100_s7 = scalar_lea.hbm %s4244_s14, 16384 }
 0x470   : > { %p3097_p10 = scmp.ne.s32.totalorder %s4100_s0, %s3096_s28  ;;  %p3101_p9 = scmp.lt.u32.totalorder %s4100_s0, %s4244_s14 }
 0x471   : > { %p3102_p12 = scmp.lt.u32.totalorder %s3100_s7, %s3096_s28  ;;  %p3104_p4 = scmp.lt.u32.totalorder %s3096_s28, %s4100_s0 }
 0x472   : > { %p3098_p1 = pnand %p3097_p10, %p3548_p0 }
 0x473   : > { %p3103_p8 = por %p3102_p12, %p3101_p9 }
 0x474   : > { %p3099_p5 = pneg %p3098_p1 }
 0x475   : > { %p3105_p7 = por %p3104_p4, %p3103_p8 }
 0x477   : > { %p3106_p11 = pnand %p3105_p7, %p3099_p5 }
 0x479   : > { %3109 = shalt.err (!%p3106_p11)
}
 0x47a   : > { %s3236_s25 = smov 128   ;;  %s3237_s1 = smov 8  }
 0x47b   : > { %2771 = dma.vmem_to_hbm [thread:$0]  (%p3548_p0), %s4103_s8, 8192, %s4100_s0, %s4107_s11, %s3236_s25, %s3236_s25, %s3237_s1  }
 0x47c PF: > { %s4245_s26 = sld [smem:[#allocation23_spill]]  ;;  %s4246_s9 = sld [smem:[#allocation28_spill]] }
 0x47d   : > { %p2798_p2 = scmp.ge.s32.totalorder %s3218_s24, 2 }
 0x482   : > { %s2430_s22 = sand.u32 1, %s4245_s26   ;;  %p4247_p3 = scmp.ne.s32.totalorder %s4246_s9, 0 }
 0x483   : > { %s2431_s18 = scalar_lea.sflag [#allocation9], %s2430_s22 }
 0x484   : > { %p2790_p13 = pnand %p2798_p2, %p4247_p3 }
 0x486   : > { %3173 = dma.done.wait (!%p2790_p13), %s2431_s18, 8192  }
 0x487   : > { %3175 = vsyncadd (!%p2790_p13), %s2431_s18, 4294959104  ;;  %s36_s24 = sadd.s32 1, %s3218_s24   ;;  %s4248_s10 = smov %s3460_s15 }
 0x488   : > { %p33_p6 = scmp.ge.s32.totalorder %s36_s24, 6   ;;  %s4249_s2 = sld [smem:[#allocation26_spill]] }
 0x489   : > { %s4250_s22 = sld [smem:[#allocation29_spill]]  ;;  %s4251_s0 = sld [smem:[#allocation30_spill]] }
 0x48a   : > { %s4252_s15 = smov %s3182_s16  ;;  %s4253_s16 = smov %s3186_s17 }
 0x48b   : > { %s4254_s17 = smov %s3541_s4  ;;  %s4255_s18 = smov %s3194_s19 }
 0x48c   : > { %s4256_s19 = smov %s3198_s20  ;;  %s4257_s20 = smov %s4248_s10 }
 0x48d   : > { %s4258_s21 = smov %s3214_s23  ;;  %35 = sbr.rel (!%p33_p6) target bundleno = 37 (0x25), region = 121 }
 0x48f   : > { %s4259_s23 = smov %s4251_s0 }
 0x494   :  { %2436 = vsyncpa [#allocation8], 1 }
 0x495   :  { %2438 = vsyncpa [#allocation8 + $0x1], 1 }
 0x496   :  { %2439 = vsyncpa [#allocation11], 1 }
 0x497   :  { %2440 = vsyncpa [#allocation9], 1 }
 0x498   :  { %2442 = vsyncpa [#allocation9 + $0x1], 1 }

</bundles_post_ra>
